<compile_context>
chip_gen: v5e
topology: v5e:2x2
jax: 0.10.0
libtpu: 0.0.40
codegen_flags: <defaults>
</compile_context>

<pallas_src>
import functools

import numpy as np
import jax
import jax.numpy as jnp
from jax.experimental import pallas as pl
from jax.experimental.pallas import tpu as pltpu


def _round_up(x, m):
    return ((x + m - 1) // m) * m


# ----------------------------------------------------------------------------
# Fused matmul + folded-BN(scale, bias) + ReLU (+ residual add + ReLU) kernel.
# Every 1x1 conv in NHWC is a pure channel matmul, so it uses this kernel.
# ----------------------------------------------------------------------------
def _fused_matmul_kernel(*refs, relu, has_res, out_relu):
    if has_res:
        x_ref, w_ref, s_ref, b_ref, r_ref, o_ref, acc_ref = refs
    else:
        x_ref, w_ref, s_ref, b_ref, o_ref, acc_ref = refs
        r_ref = None
    k = pl.program_id(2)

    @pl.when(k == 0)
    def _():
        acc_ref[...] = jnp.zeros_like(acc_ref)

    acc_ref[...] += jnp.dot(x_ref[...], w_ref[...],
                            preferred_element_type=jnp.float32)

    @pl.when(k == pl.num_programs(2) - 1)
    def _():
        y = acc_ref[...] * s_ref[...] + b_ref[...]
        if relu:
            y = jnp.maximum(y, 0.0)
        if r_ref is not None:
            y = y + r_ref[...]
        if out_relu:
            y = jnp.maximum(y, 0.0)
        o_ref[...] = y.astype(o_ref.dtype)


def _pick_tm(M):
    if M >= 1024:
        return 512
    if M > 256:
        return 256          # keep >= 2 parallel M blocks (2 TensorCores on v7x)
    return _round_up(M, 8)


def fused_matmul(x, w, scale, bias, res=None, *, relu=True, out_relu=False):
    """y = act( act((x @ w) * scale + bias) [+ res] ), bf16 MXU / f32 accum."""
    M, K = x.shape
    N = w.shape[1]
    tm = _pick_tm(M)
    tk = K if K <= 512 else 512     # full-extent K block -> no K padding here
    tn = N if N <= 512 else 256     # full-extent N block -> no N padding here
    Mp, Kp, Np = _round_up(M, tm), _round_up(K, tk), _round_up(N, tn)

    xb = x.astype(jnp.bfloat16)
    if (Mp, Kp) != (M, K):
        xb = jnp.pad(xb, ((0, Mp - M), (0, Kp - K)))
    wb = w.astype(jnp.bfloat16)     # pre-cast at build time; no-op here
    sp, bp = scale, bias            # pre-shaped (1, N) at build time
    if (Kp, Np) != (K, N):          # not hit for this module's shapes
        wb = jnp.pad(wb, ((0, Kp - K), (0, Np - N)))
        sp = jnp.pad(sp, ((0, 0), (0, Np - N)))
        bp = jnp.pad(bp, ((0, 0), (0, Np - N)))

    ins = [xb, wb, sp, bp]
    in_specs = [
        pl.BlockSpec((tm, tk), lambda i, j, k: (i, k)),
        pl.BlockSpec((tk, tn), lambda i, j, k: (k, j)),
        pl.BlockSpec((1, tn), lambda i, j, k: (0, j)),
        pl.BlockSpec((1, tn), lambda i, j, k: (0, j)),
    ]
    has_res = res is not None
    if has_res:
        rp = res
        if (Mp, Np) != (M, N):
            rp = jnp.pad(res, ((0, Mp - M), (0, Np - N)))
        ins.append(rp)
        in_specs.append(pl.BlockSpec((tm, tn), lambda i, j, k: (i, j)))

    kernel = functools.partial(_fused_matmul_kernel, relu=relu,
                               has_res=has_res, out_relu=out_relu)
    out = pl.pallas_call(
        kernel,
        out_shape=jax.ShapeDtypeStruct((Mp, Np), jnp.float32),
        grid_spec=pltpu.PrefetchScalarGridSpec(
            num_scalar_prefetch=0,
            grid=(Mp // tm, Np // tn, Kp // tk),
            in_specs=in_specs,
            out_specs=pl.BlockSpec((tm, tn), lambda i, j, k: (i, j)),
            scratch_shapes=[pltpu.VMEM((tm, tn), jnp.float32)],
        ),
        compiler_params=pltpu.CompilerParams(
            dimension_semantics=("parallel", "parallel", "arbitrary")),
    )(*ins)
    if (Mp, Np) != (M, N):
        out = out[:M, :N]
    return out


# ----------------------------------------------------------------------------
# Direct 3x3 'same' conv + folded BN + ReLU (no im2col HBM materialization).
# One grid step per image: the halo-padded image lives in VMEM and the 9 taps
# are accumulated in-kernel with small bf16 MXU matmuls.
# ----------------------------------------------------------------------------
def _conv3x3_kernel(x_ref, w_ref, s_ref, b_ref, o_ref, *, H, W):
    # x_ref: (1, H+2, W+2, Cin) zero-halo-padded image
    # w_ref: (9, Cin, Cout) bf16, tap-major (tap = di*3 + dj)
    # o_ref: (1, H, W, Cout)
    cin = x_ref.shape[-1]
    cout = o_ref.shape[-1]
    xb = x_ref[0]                                       # (H+2, W+2, Cin) f32
    acc = jnp.zeros((H * W, cout), jnp.float32)
    for di in range(3):
        for dj in range(3):
            patch = xb[di:di + H, dj:dj + W, :]         # static slice in VMEM
            p2 = patch.reshape(H * W, cin).astype(jnp.bfloat16)
            acc = acc + jnp.dot(p2, w_ref[di * 3 + dj],
                                preferred_element_type=jnp.float32)
    y = jnp.maximum(acc * s_ref[...] + b_ref[...], 0.0)
    o_ref[0] = y.reshape(H, W, cout).astype(o_ref.dtype)


def conv3x3_bn_relu(x, w, scale, bias):
    """x: (N, H, W, Cin) f32; w: (9, Cin, Cout) bf16; stride 1, 'same' pad."""
    N, H, W, Cin = x.shape
    Cout = w.shape[-1]
    xp = jnp.pad(x, ((0, 0), (1, 1), (1, 1), (0, 0)))   # 1-pixel zero halo only
    kernel = functools.partial(_conv3x3_kernel, H=H, W=W)
    return pl.pallas_call(
        kernel,
        out_shape=jax.ShapeDtypeStruct((N, H, W, Cout), jnp.float32),
        grid_spec=pltpu.PrefetchScalarGridSpec(
            num_scalar_prefetch=0,
            grid=(N,),
            in_specs=[
                pl.BlockSpec((1, H + 2, W + 2, Cin), lambda n: (n, 0, 0, 0)),
                pl.BlockSpec((9, Cin, Cout), lambda n: (0, 0, 0)),
                pl.BlockSpec((1, Cout), lambda n: (0, 0)),
                pl.BlockSpec((1, Cout), lambda n: (0, 0)),
            ],
            out_specs=pl.BlockSpec((1, H, W, Cout), lambda n: (n, 0, 0, 0)),
        ),
        compiler_params=pltpu.CompilerParams(
            dimension_semantics=("parallel",)),
    )(xp, w, scale, bias)


# ----------------------------------------------------------------------------
# Parameter construction (weights bf16, BN folded, scale/bias shaped (1, C)).
# ----------------------------------------------------------------------------
_BN_SCALE = 1.0 / np.sqrt(1.0 + 1e-3)   # gamma / sqrt(running_var + eps)


def _conv1x1_params(key, cin, cout):
    w = (jax.random.normal(key, (cin, cout), jnp.float32)
         * np.sqrt(1.0 / cin)).astype(jnp.bfloat16)
    scale = jnp.full((1, cout), _BN_SCALE, jnp.float32)
    bias = jnp.zeros((1, cout), jnp.float32)
    return w, scale, bias


def _conv3x3_params(key, cin, cout):
    fan_in = 9 * cin
    w = (jax.random.normal(key, (9, cin, cout), jnp.float32)
         * np.sqrt(1.0 / fan_in)).astype(jnp.bfloat16)
    scale = jnp.full((1, cout), _BN_SCALE, jnp.float32)
    bias = jnp.zeros((1, cout), jnp.float32)
    return w, scale, bias


def make_params(key):
    ks = jax.random.split(key, 7)
    wa, sa, ba = _conv1x1_params(ks[0], 384, 32)      # conv_a
    wb1, sb1, bb1 = _conv1x1_params(ks[1], 384, 32)   # conv_b1
    wc1, sc1, bc1 = _conv1x1_params(ks[2], 384, 32)   # conv_c1
    wb2, sb2, bb2 = _conv3x3_params(ks[3], 32, 32)    # conv_b2
    wc2, sc2, bc2 = _conv3x3_params(ks[4], 32, 32)    # conv_c2
    wc3, sc3, bc3 = _conv3x3_params(ks[5], 32, 32)    # conv_c3
    wf, sf, bf = _conv1x1_params(ks[6], 96, 384)      # conv_fin
    return dict(
        # conv_a / conv_b1 / conv_c1 fused along the output-channel axis.
        w_abc=jnp.concatenate([wa, wb1, wc1], axis=1),
        s_abc=jnp.concatenate([sa, sb1, sc1], axis=1),
        b_abc=jnp.concatenate([ba, bb1, bc1], axis=1),
        w_b2=wb2, s_b2=sb2, b_b2=bb2,
        w_c2=wc2, s_c2=sc2, b_c2=bc2,
        w_c3=wc3, s_c3=sc3, b_c3=bc3,
        w_fin=wf, s_fin=sf, b_fin=bf,
    )


# ----------------------------------------------------------------------------
# Forward pass (PyTorch NCHW in / NCHW out; NHWC internally).
# ----------------------------------------------------------------------------
@jax.jit
def inception_a_res_forward(params, x_nchw):
    x = jnp.transpose(x_nchw, (0, 2, 3, 1)).astype(jnp.float32)   # NHWC
    Nb, H, W, C = x.shape            # C == 384
    M = Nb * H * W
    x2 = x.reshape(M, C)

    # conv_a + conv_b1 + conv_c1 (1x1, shared input) fused: 384 -> 96.
    y = fused_matmul(x2, params["w_abc"], params["s_abc"], params["b_abc"])
    a = y[:, 0:32]
    b = y[:, 32:64].reshape(Nb, H, W, 32)
    c = y[:, 64:96].reshape(Nb, H, W, 32)

    # branch b: 3x3 ; branch c: 3x3 -> 3x3 (all 'same', BN+ReLU fused).
    b = conv3x3_bn_relu(b, params["w_b2"], params["s_b2"], params["b_b2"])
    c = conv3x3_bn_relu(c, params["w_c2"], params["s_c2"], params["b_c2"])
    c = conv3x3_bn_relu(c, params["w_c3"], params["s_c3"], params["b_c3"])

    cat = jnp.concatenate([a, b.reshape(M, 32), c.reshape(M, 32)], axis=-1)

    # conv_fin (1x1, 96 -> 384) + BN + ReLU, then residual add + final ReLU,
    # all in a single kernel epilogue (matches: relu(resid + BasicConv2d(cat))).
    out = fused_matmul(cat, params["w_fin"], params["s_fin"], params["b_fin"],
                       res=x2, relu=True, out_relu=True)
    out = out.reshape(Nb, H, W, 384)
    return jnp.transpose(out, (0, 3, 1, 2))   # back to NCHW


if __name__ == "__main__":
    key = jax.random.PRNGKey(0)
    params = make_params(key)

    # Small shapes consistent with the module: N=2, C=384 (required), 16x16.
    x = jax.random.normal(jax.random.fold_in(key, 123),
                          (2, 384, 16, 16), jnp.float32)

    out = inception_a_res_forward(params, x)
    out = jax.block_until_ready(out)
    assert out.shape == (2, 384, 16, 16), out.shape
    assert bool(jnp.all(jnp.isfinite(out)))
    assert bool(jnp.all(out >= 0.0))   # trailing ReLU
    print("KERNEL_OK")
</pallas_src>

<mosaic_0001>
module attributes {stable_mosaic.version = 11 : i64} {
  func.func @_fused_matmul_kernel(%arg0: i32, %arg1: i32, %arg2: i32, %arg3: memref<256x384xbf16, #tpu.memory_space<vmem>>, %arg4: memref<384x96xbf16, #tpu.memory_space<vmem>>, %arg5: memref<1x96xf32, #tpu.memory_space<vmem>>, %arg6: memref<1x96xf32, #tpu.memory_space<vmem>>, %arg7: memref<256x96xf32, #tpu.memory_space<vmem>>, %arg8: memref<256x96xf32, #tpu.memory_space<vmem>>) attributes {dimension_semantics = [#tpu.dimension_semantics<parallel>, #tpu.dimension_semantics<parallel>, #tpu.dimension_semantics<arbitrary>], iteration_bounds = array<i64: 2, 1, 1>, scalar_prefetch = 0 : i64, scratch_operands = 1 : i64, tpu.core_type = #tpu.core_type<tc>, window_params = [{transform_indices = @transform_0, window_bounds = array<i64: 256, 384>}, {transform_indices = @transform_1, window_bounds = array<i64: 384, 96>}, {transform_indices = @transform_2, window_bounds = array<i64: 1, 96>}, {transform_indices = @transform_3, window_bounds = array<i64: 1, 96>}, {transform_indices = @transform_4, window_bounds = array<i64: 256, 96>}]} {
    %c0_i32 = arith.constant 0 : i32
    %0 = arith.cmpi eq, %arg2, %c0_i32 : i32
    %1 = arith.extui %0 : i1 to i32
    %c0_i32_0 = arith.constant 0 : i32
    %2 = arith.cmpi ne, %1, %c0_i32_0 : i32
    scf.if %2 {
      %cst_10 = arith.constant 0.000000e+00 : f32
      %12 = vector.broadcast %cst_10 : f32 to vector<256x96xf32>
      %c0_11 = arith.constant 0 : index
      %c0_12 = arith.constant 0 : index
      %13 = vector.load %arg8[%c0_11, %c0_12] : memref<256x96xf32, #tpu.memory_space<vmem>>, vector<256x96xf32>
      tpu.vector_store %arg8[%c0_11, %c0_12], %12 {strides = array<i32>} : memref<256x96xf32, #tpu.memory_space<vmem>>, vector<256x96xf32>,
    } else {
    }
    %c0 = arith.constant 0 : index
    %c0_1 = arith.constant 0 : index
    %3 = vector.load %arg8[%c0, %c0_1] : memref<256x96xf32, #tpu.memory_space<vmem>>, vector<256x96xf32>
    %c0_2 = arith.constant 0 : index
    %c0_3 = arith.constant 0 : index
    %4 = vector.load %arg3[%c0_2, %c0_3] : memref<256x384xbf16, #tpu.memory_space<vmem>>, vector<256x384xbf16>
    %c0_4 = arith.constant 0 : index
    %c0_5 = arith.constant 0 : index
    %5 = vector.load %arg4[%c0_4, %c0_5] : memref<384x96xbf16, #tpu.memory_space<vmem>>, vector<384x96xbf16>
    %cst = arith.constant dense<0.000000e+00> : vector<256x96xf32>
    %6 = tpu.matmul %4, %5, %cst {dimension_numbers = #tpu.dot_dimension_numbers<[1], [0], [0], [1], [0, 0, 1, 1], [], []>} : vector<256x384xbf16>, vector<384x96xbf16>, vector<256x96xf32> -> vector<256x96xf32>
    %7 = arith.addf %3, %6 : vector<256x96xf32>
    %c0_6 = arith.constant 0 : index
    %c0_7 = arith.constant 0 : index
    %8 = vector.load %arg8[%c0_6, %c0_7] : memref<256x96xf32, #tpu.memory_space<vmem>>, vector<256x96xf32>
    tpu.vector_store %arg8[%c0_6, %c0_7], %7 {strides = array<i32>} : memref<256x96xf32, #tpu.memory_space<vmem>>, vector<256x96xf32>,
    %c0_i32_8 = arith.constant 0 : i32
    %9 = arith.cmpi eq, %arg2, %c0_i32_8 : i32
    %10 = arith.extui %9 : i1 to i32
    %c0_i32_9 = arith.constant 0 : i32
    %11 = arith.cmpi ne, %10, %c0_i32_9 : i32
    scf.if %11 {
      %c0_10 = arith.constant 0 : index
      %c0_11 = arith.constant 0 : index
      %12 = vector.load %arg8[%c0_10, %c0_11] : memref<256x96xf32, #tpu.memory_space<vmem>>, vector<256x96xf32>
      %c0_12 = arith.constant 0 : index
      %c0_13 = arith.constant 0 : index
      %13 = vector.load %arg5[%c0_12, %c0_13] : memref<1x96xf32, #tpu.memory_space<vmem>>, vector<1x96xf32>
      %14 = vector.broadcast %13 : vector<1x96xf32> to vector<256x96xf32>
      %15 = arith.mulf %12, %14 : vector<256x96xf32>
      %c0_14 = arith.constant 0 : index
      %c0_15 = arith.constant 0 : index
      %16 = vector.load %arg6[%c0_14, %c0_15] : memref<1x96xf32, #tpu.memory_space<vmem>>, vector<1x96xf32>
      %17 = vector.broadcast %16 : vector<1x96xf32> to vector<256x96xf32>
      %18 = arith.addf %15, %17 : vector<256x96xf32>
      %cst_16 = arith.constant 0.000000e+00 : f32
      %19 = vector.broadcast %cst_16 : f32 to vector<256x96xf32>
      %20 = arith.maximumf %18, %19 : vector<256x96xf32>
      %c0_17 = arith.constant 0 : index
      %c0_18 = arith.constant 0 : index
      %21 = vector.load %arg7[%c0_17, %c0_18] : memref<256x96xf32, #tpu.memory_space<vmem>>, vector<256x96xf32>
      tpu.vector_store %arg7[%c0_17, %c0_18], %20 {strides = array<i32>} : memref<256x96xf32, #tpu.memory_space<vmem>>, vector<256x96xf32>,
    } else {
    }
    return
  }
  func.func @transform_0(%arg0: i32, %arg1: i32, %arg2: i32) -> (i32, i32) {
    %c0_i32 = arith.constant 0 : i32
    return %arg0, %arg2 : i32, i32
  }
  func.func @transform_1(%arg0: i32, %arg1: i32, %arg2: i32) -> (i32, i32) {
    %c0_i32 = arith.constant 0 : i32
    return %arg2, %arg1 : i32, i32
  }
  func.func @transform_2(%arg0: i32, %arg1: i32, %arg2: i32) -> (i32, i32) {
    %c0_i32 = arith.constant 0 : i32
    %c0_i32_0 = arith.constant 0 : i32
    return %c0_i32, %arg1 : i32, i32
  }
  func.func @transform_3(%arg0: i32, %arg1: i32, %arg2: i32) -> (i32, i32) {
    %c0_i32 = arith.constant 0 : i32
    %c0_i32_0 = arith.constant 0 : i32
    return %c0_i32, %arg1 : i32, i32
  }
  func.func @transform_4(%arg0: i32, %arg1: i32, %arg2: i32) -> (i32, i32) {
    %c0_i32 = arith.constant 0 : i32
    return %arg0, %arg1 : i32, i32
  }
}

module attributes {stable_mosaic.version = 11 : i64} {
  func.func @_conv3x3_kernel(%arg0: i32, %arg1: memref<1x18x18x32xf32, #tpu.memory_space<vmem>>, %arg2: memref<9x32x32xbf16, #tpu.memory_space<vmem>>, %arg3: memref<1x32xf32, #tpu.memory_space<vmem>>, %arg4: memref<1x32xf32, #tpu.memory_space<vmem>>, %arg5: memref<1x16x16x32xf32, #tpu.memory_space<vmem>>) attributes {dimension_semantics = [#tpu.dimension_semantics<parallel>], iteration_bounds = array<i64: 2>, scalar_prefetch = 0 : i64, scratch_operands = 0 : i64, tpu.core_type = #tpu.core_type<tc>, window_params = [{transform_indices = @transform_0, window_bounds = array<i64: 1, 18, 18, 32>}, {pipeline_mode = #tpu.pipeline_mode<synchronous>, transform_indices = @transform_1, window_bounds = array<i64: 9, 32, 32>}, {pipeline_mode = #tpu.pipeline_mode<synchronous>, transform_indices = @transform_2, window_bounds = array<i64: 1, 32>}, {pipeline_mode = #tpu.pipeline_mode<synchronous>, transform_indices = @transform_3, window_bounds = array<i64: 1, 32>}, {transform_indices = @transform_4, window_bounds = array<i64: 1, 16, 16, 32>}]} {
    %c0 = arith.constant 0 : index
    %c0_0 = arith.constant 0 : index
    %c0_1 = arith.constant 0 : index
    %c0_2 = arith.constant 0 : index
    %0 = vector.load %arg1[%c0, %c0_0, %c0_1, %c0_2] : memref<1x18x18x32xf32, #tpu.memory_space<vmem>>, vector<1x18x18x32xf32>
    %1 = vector.shape_cast %0 : vector<1x18x18x32xf32> to vector<18x18x32xf32>
    %cst = arith.constant 0.000000e+00 : f32
    %2 = vector.broadcast %cst : f32 to vector<256x32xf32>
    %3 = vector.extract_strided_slice %1 {offsets = [0, 0, 0], sizes = [16, 16, 32], strides = [1, 1, 1]} : vector<18x18x32xf32> to vector<16x16x32xf32>
    %4 = vector.shape_cast %3 : vector<16x16x32xf32> to vector<256x32xf32>
    %5 = arith.truncf %4 : vector<256x32xf32> to vector<256x32xbf16>
    %c0_3 = arith.constant 0 : index
    %c0_4 = arith.constant 0 : index
    %c0_5 = arith.constant 0 : index
    %6 = vector.load %arg2[%c0_3, %c0_4, %c0_5] : memref<9x32x32xbf16, #tpu.memory_space<vmem>>, vector<1x32x32xbf16>
    %7 = vector.shape_cast %6 : vector<1x32x32xbf16> to vector<32x32xbf16>
    %cst_6 = arith.constant dense<0.000000e+00> : vector<256x32xf32>
    %8 = tpu.matmul %5, %7, %cst_6 {dimension_numbers = #tpu.dot_dimension_numbers<[1], [0], [0], [1], [0, 0, 1, 1], [], []>} : vector<256x32xbf16>, vector<32x32xbf16>, vector<256x32xf32> -> vector<256x32xf32>
    %9 = arith.addf %2, %8 : vector<256x32xf32>
    %10 = vector.extract_strided_slice %1 {offsets = [0, 1, 0], sizes = [16, 16, 32], strides = [1, 1, 1]} : vector<18x18x32xf32> to vector<16x16x32xf32>
    %11 = vector.shape_cast %10 : vector<16x16x32xf32> to vector<256x32xf32>
    %12 = arith.truncf %11 : vector<256x32xf32> to vector<256x32xbf16>
    %c1 = arith.constant 1 : index
    %c0_7 = arith.constant 0 : index
    %c0_8 = arith.constant 0 : index
    %13 = vector.load %arg2[%c1, %c0_7, %c0_8] : memref<9x32x32xbf16, #tpu.memory_space<vmem>>, vector<1x32x32xbf16>
    %14 = vector.shape_cast %13 : vector<1x32x32xbf16> to vector<32x32xbf16>
    %cst_9 = arith.constant dense<0.000000e+00> : vector<256x32xf32>
    %15 = tpu.matmul %12, %14, %cst_9 {dimension_numbers = #tpu.dot_dimension_numbers<[1], [0], [0], [1], [0, 0, 1, 1], [], []>} : vector<256x32xbf16>, vector<32x32xbf16>, vector<256x32xf32> -> vector<256x32xf32>
    %16 = arith.addf %9, %15 : vector<256x32xf32>
    %17 = vector.extract_strided_slice %1 {offsets = [0, 2, 0], sizes = [16, 16, 32], strides = [1, 1, 1]} : vector<18x18x32xf32> to vector<16x16x32xf32>
    %18 = vector.shape_cast %17 : vector<16x16x32xf32> to vector<256x32xf32>
    %19 = arith.truncf %18 : vector<256x32xf32> to vector<256x32xbf16>
    %c2 = arith.constant 2 : index
    %c0_10 = arith.constant 0 : index
    %c0_11 = arith.constant 0 : index
    %20 = vector.load %arg2[%c2, %c0_10, %c0_11] : memref<9x32x32xbf16, #tpu.memory_space<vmem>>, vector<1x32x32xbf16>
    %21 = vector.shape_cast %20 : vector<1x32x32xbf16> to vector<32x32xbf16>
    %cst_12 = arith.constant dense<0.000000e+00> : vector<256x32xf32>
    %22 = tpu.matmul %19, %21, %cst_12 {dimension_numbers = #tpu.dot_dimension_numbers<[1], [0], [0], [1], [0, 0, 1, 1], [], []>} : vector<256x32xbf16>, vector<32x32xbf16>, vector<256x32xf32> -> vector<256x32xf32>
    %23 = arith.addf %16, %22 : vector<256x32xf32>
    %24 = vector.extract_strided_slice %1 {offsets = [1, 0, 0], sizes = [16, 16, 32], strides = [1, 1, 1]} : vector<18x18x32xf32> to vector<16x16x32xf32>
    %25 = vector.shape_cast %24 : vector<16x16x32xf32> to vector<256x32xf32>
    %26 = arith.truncf %25 : vector<256x32xf32> to vector<256x32xbf16>
    %c3 = arith.constant 3 : index
    %c0_13 = arith.constant 0 : index
    %c0_14 = arith.constant 0 : index
    %27 = vector.load %arg2[%c3, %c0_13, %c0_14] : memref<9x32x32xbf16, #tpu.memory_space<vmem>>, vector<1x32x32xbf16>
    %28 = vector.shape_cast %27 : vector<1x32x32xbf16> to vector<32x32xbf16>
    %cst_15 = arith.constant dense<0.000000e+00> : vector<256x32xf32>
    %29 = tpu.matmul %26, %28, %cst_15 {dimension_numbers = #tpu.dot_dimension_numbers<[1], [0], [0], [1], [0, 0, 1, 1], [], []>} : vector<256x32xbf16>, vector<32x32xbf16>, vector<256x32xf32> -> vector<256x32xf32>
    %30 = arith.addf %23, %29 : vector<256x32xf32>
    %31 = vector.extract_strided_slice %1 {offsets = [1, 1, 0], sizes = [16, 16, 32], strides = [1, 1, 1]} : vector<18x18x32xf32> to vector<16x16x32xf32>
    %32 = vector.shape_cast %31 : vector<16x16x32xf32> to vector<256x32xf32>
    %33 = arith.truncf %32 : vector<256x32xf32> to vector<256x32xbf16>
    %c4 = arith.constant 4 : index
    %c0_16 = arith.constant 0 : index
    %c0_17 = arith.constant 0 : index
    %34 = vector.load %arg2[%c4, %c0_16, %c0_17] : memref<9x32x32xbf16, #tpu.memory_space<vmem>>, vector<1x32x32xbf16>
    %35 = vector.shape_cast %34 : vector<1x32x32xbf16> to vector<32x32xbf16>
    %cst_18 = arith.constant dense<0.000000e+00> : vector<256x32xf32>
    %36 = tpu.matmul %33, %35, %cst_18 {dimension_numbers = #tpu.dot_dimension_numbers<[1], [0], [0], [1], [0, 0, 1, 1], [], []>} : vector<256x32xbf16>, vector<32x32xbf16>, vector<256x32xf32> -> vector<256x32xf32>
    %37 = arith.addf %30, %36 : vector<256x32xf32>
    %38 = vector.extract_strided_slice %1 {offsets = [1, 2, 0], sizes = [16, 16, 32], strides = [1, 1, 1]} : vector<18x18x32xf32> to vector<16x16x32xf32>
    %39 = vector.shape_cast %38 : vector<16x16x32xf32> to vector<256x32xf32>
    %40 = arith.truncf %39 : vector<256x32xf32> to vector<256x32xbf16>
    %c5 = arith.constant 5 : index
    %c0_19 = arith.constant 0 : index
    %c0_20 = arith.constant 0 : index
    %41 = vector.load %arg2[%c5, %c0_19, %c0_20] : memref<9x32x32xbf16, #tpu.memory_space<vmem>>, vector<1x32x32xbf16>
    %42 = vector.shape_cast %41 : vector<1x32x32xbf16> to vector<32x32xbf16>
    %cst_21 = arith.constant dense<0.000000e+00> : vector<256x32xf32>
    %43 = tpu.matmul %40, %42, %cst_21 {dimension_numbers = #tpu.dot_dimension_numbers<[1], [0], [0], [1], [0, 0, 1, 1], [], []>} : vector<256x32xbf16>, vector<32x32xbf16>, vector<256x32xf32> -> vector<256x32xf32>
    %44 = arith.addf %37, %43 : vector<256x32xf32>
    %45 = vector.extract_strided_slice %1 {offsets = [2, 0, 0], sizes = [16, 16, 32], strides = [1, 1, 1]} : vector<18x18x32xf32> to vector<16x16x32xf32>
    %46 = vector.shape_cast %45 : vector<16x16x32xf32> to vector<256x32xf32>
    %47 = arith.truncf %46 : vector<256x32xf32> to vector<256x32xbf16>
    %c6 = arith.constant 6 : index
    %c0_22 = arith.constant 0 : index
    %c0_23 = arith.constant 0 : index
    %48 = vector.load %arg2[%c6, %c0_22, %c0_23] : memref<9x32x32xbf16, #tpu.memory_space<vmem>>, vector<1x32x32xbf16>
    %49 = vector.shape_cast %48 : vector<1x32x32xbf16> to vector<32x32xbf16>
    %cst_24 = arith.constant dense<0.000000e+00> : vector<256x32xf32>
    %50 = tpu.matmul %47, %49, %cst_24 {dimension_numbers = #tpu.dot_dimension_numbers<[1], [0], [0], [1], [0, 0, 1, 1], [], []>} : vector<256x32xbf16>, vector<32x32xbf16>, vector<256x32xf32> -> vector<256x32xf32>
    %51 = arith.addf %44, %50 : vector<256x32xf32>
    %52 = vector.extract_strided_slice %1 {offsets = [2, 1, 0], sizes = [16, 16, 32], strides = [1, 1, 1]} : vector<18x18x32xf32> to vector<16x16x32xf32>
    %53 = vector.shape_cast %52 : vector<16x16x32xf32> to vector<256x32xf32>
    %54 = arith.truncf %53 : vector<256x32xf32> to vector<256x32xbf16>
    %c7 = arith.constant 7 : index
    %c0_25 = arith.constant 0 : index
    %c0_26 = arith.constant 0 : index
    %55 = vector.load %arg2[%c7, %c0_25, %c0_26] : memref<9x32x32xbf16, #tpu.memory_space<vmem>>, vector<1x32x32xbf16>
    %56 = vector.shape_cast %55 : vector<1x32x32xbf16> to vector<32x32xbf16>
    %cst_27 = arith.constant dense<0.000000e+00> : vector<256x32xf32>
    %57 = tpu.matmul %54, %56, %cst_27 {dimension_numbers = #tpu.dot_dimension_numbers<[1], [0], [0], [1], [0, 0, 1, 1], [], []>} : vector<256x32xbf16>, vector<32x32xbf16>, vector<256x32xf32> -> vector<256x32xf32>
    %58 = arith.addf %51, %57 : vector<256x32xf32>
    %59 = vector.extract_strided_slice %1 {offsets = [2, 2, 0], sizes = [16, 16, 32], strides = [1, 1, 1]} : vector<18x18x32xf32> to vector<16x16x32xf32>
    %60 = vector.shape_cast %59 : vector<16x16x32xf32> to vector<256x32xf32>
    %61 = arith.truncf %60 : vector<256x32xf32> to vector<256x32xbf16>
    %c8 = arith.constant 8 : index
    %c0_28 = arith.constant 0 : index
    %c0_29 = arith.constant 0 : index
    %62 = vector.load %arg2[%c8, %c0_28, %c0_29] : memref<9x32x32xbf16, #tpu.memory_space<vmem>>, vector<1x32x32xbf16>
    %63 = vector.shape_cast %62 : vector<1x32x32xbf16> to vector<32x32xbf16>
    %cst_30 = arith.constant dense<0.000000e+00> : vector<256x32xf32>
    %64 = tpu.matmul %61, %63, %cst_30 {dimension_numbers = #tpu.dot_dimension_numbers<[1], [0], [0], [1], [0, 0, 1, 1], [], []>} : vector<256x32xbf16>, vector<32x32xbf16>, vector<256x32xf32> -> vector<256x32xf32>
    %65 = arith.addf %58, %64 : vector<256x32xf32>
    %c0_31 = arith.constant 0 : index
    %c0_32 = arith.constant 0 : index
    %66 = vector.load %arg3[%c0_31, %c0_32] : memref<1x32xf32, #tpu.memory_space<vmem>>, vector<1x32xf32>
    %67 = vector.broadcast %66 : vector<1x32xf32> to vector<256x32xf32>
    %68 = arith.mulf %65, %67 : vector<256x32xf32>
    %c0_33 = arith.constant 0 : index
    %c0_34 = arith.constant 0 : index
    %69 = vector.load %arg4[%c0_33, %c0_34] : memref<1x32xf32, #tpu.memory_space<vmem>>, vector<1x32xf32>
    %70 = vector.broadcast %69 : vector<1x32xf32> to vector<256x32xf32>
    %71 = arith.addf %68, %70 : vector<256x32xf32>
    %cst_35 = arith.constant 0.000000e+00 : f32
    %72 = vector.broadcast %cst_35 : f32 to vector<256x32xf32>
    %73 = arith.maximumf %71, %72 : vector<256x32xf32>
    %74 = vector.shape_cast %73 : vector<256x32xf32> to vector<16x16x32xf32>
    %c0_36 = arith.constant 0 : index
    %c0_37 = arith.constant 0 : index
    %c0_38 = arith.constant 0 : index
    %c0_39 = arith.constant 0 : index
    %75 = vector.load %arg5[%c0_36, %c0_37, %c0_38, %c0_39] : memref<1x16x16x32xf32, #tpu.memory_space<vmem>>, vector<1x16x16x32xf32>
    %76 = vector.shape_cast %75 : vector<1x16x16x32xf32> to vector<16x16x32xf32>
    %77 = vector.shape_cast %74 : vector<16x16x32xf32> to vector<1x16x16x32xf32>
    tpu.vector_store %arg5[%c0_36, %c0_37, %c0_38, %c0_39], %77 {strides = array<i32>} : memref<1x16x16x32xf32, #tpu.memory_space<vmem>>, vector<1x16x16x32xf32>,
    return
  }
  func.func @transform_0(%arg0: i32) -> (i32, i32, i32, i32) {
    %c0_i32 = arith.constant 0 : i32
    %c0_i32_0 = arith.constant 0 : i32
    %c0_i32_1 = arith.constant 0 : i32
    %c0_i32_2 = arith.constant 0 : i32
    return %arg0, %c0_i32, %c0_i32_0, %c0_i32_1 : i32, i32, i32, i32
  }
  func.func @transform_1(%arg0: i32) -> (i32, i32, i32) {
    %c0_i32 = arith.constant 0 : i32
    %c0_i32_0 = arith.constant 0 : i32
    %c0_i32_1 = arith.constant 0 : i32
    %c0_i32_2 = arith.constant 0 : i32
    return %c0_i32, %c0_i32_0, %c0_i32_1 : i32, i32, i32
  }
  func.func @transform_2(%arg0: i32) -> (i32, i32) {
    %c0_i32 = arith.constant 0 : i32
    %c0_i32_0 = arith.constant 0 : i32
    %c0_i32_1 = arith.constant 0 : i32
    return %c0_i32, %c0_i32_0 : i32, i32
  }
  func.func @transform_3(%arg0: i32) -> (i32, i32) {
    %c0_i32 = arith.constant 0 : i32
    %c0_i32_0 = arith.constant 0 : i32
    %c0_i32_1 = arith.constant 0 : i32
    return %c0_i32, %c0_i32_0 : i32, i32
  }
  func.func @transform_4(%arg0: i32) -> (i32, i32, i32, i32) {
    %c0_i32 = arith.constant 0 : i32
    %c0_i32_0 = arith.constant 0 : i32
    %c0_i32_1 = arith.constant 0 : i32
    %c0_i32_2 = arith.constant 0 : i32
    return %arg0, %c0_i32, %c0_i32_0, %c0_i32_1 : i32, i32, i32, i32
  }
}

module attributes {stable_mosaic.version = 11 : i64} {
  func.func @_fused_matmul_kernel(%arg0: i32, %arg1: i32, %arg2: i32, %arg3: memref<256x96xbf16, #tpu.memory_space<vmem>>, %arg4: memref<96x384xbf16, #tpu.memory_space<vmem>>, %arg5: memref<1x384xf32, #tpu.memory_space<vmem>>, %arg6: memref<1x384xf32, #tpu.memory_space<vmem>>, %arg7: memref<256x384xf32, #tpu.memory_space<vmem>>, %arg8: memref<256x384xf32, #tpu.memory_space<vmem>>, %arg9: memref<256x384xf32, #tpu.memory_space<vmem>>) attributes {dimension_semantics = [#tpu.dimension_semantics<parallel>, #tpu.dimension_semantics<parallel>, #tpu.dimension_semantics<arbitrary>], iteration_bounds = array<i64: 2, 1, 1>, scalar_prefetch = 0 : i64, scratch_operands = 1 : i64, tpu.core_type = #tpu.core_type<tc>, window_params = [{transform_indices = @transform_0, window_bounds = array<i64: 256, 96>}, {transform_indices = @transform_1, window_bounds = array<i64: 96, 384>}, {transform_indices = @transform_2, window_bounds = array<i64: 1, 384>}, {transform_indices = @transform_3, window_bounds = array<i64: 1, 384>}, {transform_indices = @transform_4, window_bounds = array<i64: 256, 384>}, {transform_indices = @transform_5, window_bounds = array<i64: 256, 384>}]} {
    %c0_i32 = arith.constant 0 : i32
    %0 = arith.cmpi eq, %arg2, %c0_i32 : i32
    %1 = arith.extui %0 : i1 to i32
    %c0_i32_0 = arith.constant 0 : i32
    %2 = arith.cmpi ne, %1, %c0_i32_0 : i32
    scf.if %2 {
      %cst_10 = arith.constant 0.000000e+00 : f32
      %12 = vector.broadcast %cst_10 : f32 to vector<256x384xf32>
      %c0_11 = arith.constant 0 : index
      %c0_12 = arith.constant 0 : index
      %13 = vector.load %arg9[%c0_11, %c0_12] : memref<256x384xf32, #tpu.memory_space<vmem>>, vector<256x384xf32>
      tpu.vector_store %arg9[%c0_11, %c0_12], %12 {strides = array<i32>} : memref<256x384xf32, #tpu.memory_space<vmem>>, vector<256x384xf32>,
    } else {
    }
    %c0 = arith.constant 0 : index
    %c0_1 = arith.constant 0 : index
    %3 = vector.load %arg9[%c0, %c0_1] : memref<256x384xf32, #tpu.memory_space<vmem>>, vector<256x384xf32>
    %c0_2 = arith.constant 0 : index
    %c0_3 = arith.constant 0 : index
    %4 = vector.load %arg3[%c0_2, %c0_3] : memref<256x96xbf16, #tpu.memory_space<vmem>>, vector<256x96xbf16>
    %c0_4 = arith.constant 0 : index
    %c0_5 = arith.constant 0 : index
    %5 = vector.load %arg4[%c0_4, %c0_5] : memref<96x384xbf16, #tpu.memory_space<vmem>>, vector<96x384xbf16>
    %cst = arith.constant dense<0.000000e+00> : vector<256x384xf32>
    %6 = tpu.matmul %4, %5, %cst {dimension_numbers = #tpu.dot_dimension_numbers<[1], [0], [0], [1], [0, 0, 1, 1], [], []>} : vector<256x96xbf16>, vector<96x384xbf16>, vector<256x384xf32> -> vector<256x384xf32>
    %7 = arith.addf %3, %6 : vector<256x384xf32>
    %c0_6 = arith.constant 0 : index
    %c0_7 = arith.constant 0 : index
    %8 = vector.load %arg9[%c0_6, %c0_7] : memref<256x384xf32, #tpu.memory_space<vmem>>, vector<256x384xf32>
    tpu.vector_store %arg9[%c0_6, %c0_7], %7 {strides = array<i32>} : memref<256x384xf32, #tpu.memory_space<vmem>>, vector<256x384xf32>,
    %c0_i32_8 = arith.constant 0 : i32
    %9 = arith.cmpi eq, %arg2, %c0_i32_8 : i32
    %10 = arith.extui %9 : i1 to i32
    %c0_i32_9 = arith.constant 0 : i32
    %11 = arith.cmpi ne, %10, %c0_i32_9 : i32
    scf.if %11 {
      %c0_10 = arith.constant 0 : index
      %c0_11 = arith.constant 0 : index
      %12 = vector.load %arg9[%c0_10, %c0_11] : memref<256x384xf32, #tpu.memory_space<vmem>>, vector<256x384xf32>
      %c0_12 = arith.constant 0 : index
      %c0_13 = arith.constant 0 : index
      %13 = vector.load %arg5[%c0_12, %c0_13] : memref<1x384xf32, #tpu.memory_space<vmem>>, vector<1x384xf32>
      %14 = vector.broadcast %13 : vector<1x384xf32> to vector<256x384xf32>
      %15 = arith.mulf %12, %14 : vector<256x384xf32>
      %c0_14 = arith.constant 0 : index
      %c0_15 = arith.constant 0 : index
      %16 = vector.load %arg6[%c0_14, %c0_15] : memref<1x384xf32, #tpu.memory_space<vmem>>, vector<1x384xf32>
      %17 = vector.broadcast %16 : vector<1x384xf32> to vector<256x384xf32>
      %18 = arith.addf %15, %17 : vector<256x384xf32>
      %cst_16 = arith.constant 0.000000e+00 : f32
      %19 = vector.broadcast %cst_16 : f32 to vector<256x384xf32>
      %20 = arith.maximumf %18, %19 : vector<256x384xf32>
      %c0_17 = arith.constant 0 : index
      %c0_18 = arith.constant 0 : index
      %21 = vector.load %arg7[%c0_17, %c0_18] : memref<256x384xf32, #tpu.memory_space<vmem>>, vector<256x384xf32>
      %22 = arith.addf %20, %21 : vector<256x384xf32>
      %cst_19 = arith.constant 0.000000e+00 : f32
      %23 = vector.broadcast %cst_19 : f32 to vector<256x384xf32>
      %24 = arith.maximumf %22, %23 : vector<256x384xf32>
      %c0_20 = arith.constant 0 : index
      %c0_21 = arith.constant 0 : index
      %25 = vector.load %arg8[%c0_20, %c0_21] : memref<256x384xf32, #tpu.memory_space<vmem>>, vector<256x384xf32>
      tpu.vector_store %arg8[%c0_20, %c0_21], %24 {strides = array<i32>} : memref<256x384xf32, #tpu.memory_space<vmem>>, vector<256x384xf32>,
    } else {
    }
    return
  }
  func.func @transform_0(%arg0: i32, %arg1: i32, %arg2: i32) -> (i32, i32) {
    %c0_i32 = arith.constant 0 : i32
    return %arg0, %arg2 : i32, i32
  }
  func.func @transform_1(%arg0: i32, %arg1: i32, %arg2: i32) -> (i32, i32) {
    %c0_i32 = arith.constant 0 : i32
    return %arg2, %arg1 : i32, i32
  }
  func.func @transform_2(%arg0: i32, %arg1: i32, %arg2: i32) -> (i32, i32) {
    %c0_i32 = arith.constant 0 : i32
    %c0_i32_0 = arith.constant 0 : i32
    return %c0_i32, %arg1 : i32, i32
  }
  func.func @transform_3(%arg0: i32, %arg1: i32, %arg2: i32) -> (i32, i32) {
    %c0_i32 = arith.constant 0 : i32
    %c0_i32_0 = arith.constant 0 : i32
    return %c0_i32, %arg1 : i32, i32
  }
  func.func @transform_4(%arg0: i32, %arg1: i32, %arg2: i32) -> (i32, i32) {
    %c0_i32 = arith.constant 0 : i32
    return %arg0, %arg1 : i32, i32
  }
  func.func @transform_5(%arg0: i32, %arg1: i32, %arg2: i32) -> (i32, i32) {
    %c0_i32 = arith.constant 0 : i32
    return %arg0, %arg1 : i32, i32
  }
}

</mosaic_0001>

<bundles_post_ra>
// kernel: inception_a_res_forward.5
= control target key start
LH: loop header
LB: loop body
LE: loop exit
PB: predicated region body
PF: predicated region fallthrough
CT: control target
= control target key end

     0   :  { %s1994_s15 = smov 0   ;;  %s1996_s16 = smov 0   ;;  %s2536_s0 = inlined_call_operand.vmem [shape: bf16[512,384], index: 0, kind: input, shape index: {}]   ;;  %s2537_s1 = inlined_call_operand.vmem [shape: bf16[384,96], index: 1, kind: input, shape index: {}]   ;;  %s2538_s2 = inlined_call_operand.vmem [shape: f32[1,96], index: 2, kind: input, shape index: {}]   ;;  %s2539_s3 = inlined_call_operand.vmem [shape: f32[1,96], index: 3, kind: input, shape index: {}]   ;;  %s2540_s4 = inlined_call_operand.vmem [shape: f32[512,96], index: 4, kind: output, shape index: {}]  }
   0x1   :  { %s1998_s17 = smov 0  }
   0x2 LB: > { %s33_s18 = sadd.s32 1, %s1962_s16  ;;  %p1525_p0 = scmp.ge.s32.totalorder %s1966_s17, 1  ;;  %s1966_s17 = sphi %s1998_s17, %s14_s17   ;;  %s1962_s16 = sphi %s1996_s16, %s2542_s16   ;;  %s1958_s15 = sphi %s1994_s15, %s2541_s15  }
   0x3   : > { %p35_p1 = scmp.ge.s32.totalorder %s33_s18, 2  ;;  %p224_p2 = scmp.lt.s32.totalorder %s1966_s17, 3 }
   0x5   : > { %s2544_s18 = smov (%p35_p1, %s33_s18), 0  ;;  %p225_p3 = pnand %p1525_p0, %p224_p2 }
   0x6   : > { %s1526_s11 = sshll.u32 (!%p225_p3), %s1958_s15, 5 }
   0x7   : > { %228 = sbr.rel (%p225_p3) target bundleno = 381 (0x17d), region = 36  ;;  %p274_p4 = scmp.lt.s32.totalorder (!%p225_p3), %s1526_s11, 63 }
   0xc   : > { %v1875_v0 = vld [vmem:[%s2537_s1 + $0x38] sm:$0xff]  ;;  %v1874_v3 = vld [vmem:[%s2537_s1 + $0x30] sm:$0xff]  ;;  %v1873_v6 = vld [vmem:[%s2537_s1 + $0x28] sm:$0xff]  ;;  %s2546_s11 = smov (!%p274_p4, %s1526_s11), 63  ;;  %vm312_vm0 = vcmask 785408  }
   0xd   : > { %v2020_v1 = vld [vmem:[%s2537_s1 + $0x78] sm:$0xff]  ;;  %889 = vmatpush.bf16.msra.mxu0 %v1875_v0  ;;  %1892 = vmatpush.bf16.msra.mxu3 %v1875_v0  ;;  %v2035_v4 = vld [vmem:[%s2537_s1 + $0x70] sm:$0xff]  ;;  %v2050_v7 = vld [vmem:[%s2537_s1 + $0x68] sm:$0xff]  ;;  %s1916_s29 = smul.u32 12, %s2546_s11  ;;  %s1529_s5 = sshll.u32 %s2546_s11, 3 }
   0xe   : > { %v2025_v2 = vld [vmem:[%s2537_s1 + $0xb8] sm:$0xff]  ;;  %978 = vmatpush.bf16.msra.mxu1 %v2020_v1  ;;  %v2040_v5 = vld [vmem:[%s2537_s1 + $0xb0] sm:$0xff]  ;;  %v2055_v8 = vld [vmem:[%s2537_s1 + $0xa8] sm:$0xff]  ;;  %s2311_s8 = scalar_lea.vmem %s2540_s4, %s1529_s5 }
   0xf   : > { %1067 = vmatpush.bf16.msra.mxu2 %v2025_v2  ;;  %v1872_v9 = vld [vmem:[%s2537_s1 + $0x20] sm:$0xff]  ;;  %v1871_v12 = vld [vmem:[%s2537_s1 + $0x18] sm:$0xff]  ;;  %v1870_v15 = vld [vmem:[%s2537_s1 + $0x10] sm:$0xff]  ;;  %s2107_s13 = scalar_lea.vmem %s2536_s0, %s1916_s29 }
  0x10   : > { %v2064_v10 = vld [vmem:[%s2537_s1 + $0x60] sm:$0xff]  ;;  %v1879_v13 = vld [vmem:[%s2537_s1 + $0x58] sm:$0xff]  ;;  %v1878_v16 = vld [vmem:[%s2537_s1 + $0x50] sm:$0xff] }
  0x11   : > { %890 = vmatpush.bf16.msra.mxu0 %v1874_v3  ;;  %1893 = vmatpush.bf16.msra.mxu3 %v1874_v3  ;;  %v2071_v11 = vld [vmem:[%s2537_s1 + $0xa0] sm:$0xff]  ;;  %v2086_v14 = vld [vmem:[%s2537_s1 + $0x98] sm:$0xff]  ;;  %v2099_v17 = vld [vmem:[%s2537_s1 + $0x90] sm:$0xff] }
  0x12   : > { %979 = vmatpush.bf16.msra.mxu1 %v2035_v4  ;;  %v1869_v18 = vld [vmem:[%s2537_s1 + $0x8] sm:$0xff]  ;;  %v1868_v21 = vld [vmem:[%s2537_s1] sm:$0xff]  ;;  %v1534_v29 = vld [vmem:[%s2107_s13 + $0xc] sm:$0xf0] }
  0x13   : > { %1068 = vmatpush.bf16.msra.mxu2 %v2040_v5  ;;  %v1877_v19 = vld [vmem:[%s2537_s1 + $0x48] sm:$0xff]  ;;  %v1876_v22 = vld [vmem:[%s2537_s1 + $0x40] sm:$0xff]  ;;  %v1822_v31 = vld [vmem:[%s2107_s13 + $0x10] sm:$0xf0] }
  0x14   : > { %v2116_v20 = vld [vmem:[%s2537_s1 + $0x88] sm:$0xff]  ;;  %v2127_v23 = vld [vmem:[%s2537_s1 + $0x80] sm:$0xff]  ;;  %v1544_v36 = vld [vmem:[%s2107_s13 + $0x18] sm:$0xf] }
  0x15   : > { %891 = vmatpush.bf16.msra.mxu0 %v1873_v6  ;;  %1894 = vmatpush.bf16.msra.mxu3 %v1873_v6  ;;  %v1532_v24 = vld [vmem:[%s2107_s13] sm:$0xf]  ;;  %v1821_v25 = vld [vmem:[%s2107_s13 + $0x8] sm:$0xf0]  ;;  %v1820_v28 = vld [vmem:[%s2107_s13 + $0x4] sm:$0xf] }
  0x16   : > { %980 = vmatpush.bf16.msra.mxu1 %v2050_v7  ;;  %v1676_v26 = vld [vmem:[%s2107_s13 + $0x120] sm:$0xf]  ;;  %v1857_v27 = vld [vmem:[%s2107_s13 + $0x128] sm:$0xf0]  ;;  %v1540_v30 = vld [vmem:[%s2107_s13 + $0x8] sm:$0xf]  ;;  %v1533_v32 = vor.u32 %v1821_v25, %v1532_v24  ;;  %v1537_v34 = vor.u32 %v1820_v28, %v1534_v29 }
  0x17   : > { %1069 = vmatpush.bf16.msra.mxu2 %v2055_v8  ;;  %v1677_v33 = vor.u32 %v1857_v27, %v1676_v26  ;;  %v1541_v35 = vor.u32 %v1822_v31, %v1540_v30  ;;  %v1824_v37 = vld [vmem:[%s2107_s13 + $0x20] sm:$0xf0]  ;;  %v1688_v38 = vld [vmem:[%s2107_s13 + $0x138] sm:$0xf]  ;;  %v1823_v40 = vld [vmem:[%s2107_s13 + $0x1c] sm:$0xf] }
  0x18   : > { %v1860_v39 = vld [vmem:[%s2107_s13 + $0x140] sm:$0xf0]  ;;  %v1546_v41 = vld [vmem:[%s2107_s13 + $0x24] sm:$0xf0]  ;;  %v1552_v42 = vld [vmem:[%s2107_s13 + $0x20] sm:$0xf]  ;;  %v1545_v44 = vor.u32 %v1824_v37, %v1544_v36 }
  0x19   : > { %892 = vmatpush.bf16.msra.mxu0 %v1872_v9  ;;  %1895 = vmatpush.bf16.msra.mxu3 %v1872_v9  ;;  %v1825_v43 = vld [vmem:[%s2107_s13 + $0x28] sm:$0xf0]  ;;  %v1689_v45 = vor.u32 %v1860_v39, %v1688_v38  ;;  %v1549_v46 = vor.u32 %v1823_v40, %v1546_v41  ;;  %v1556_v48 = vld [vmem:[%s2107_s13 + $0x30] sm:$0xf]  ;;  %v1827_v49 = vld [vmem:[%s2107_s13 + $0x38] sm:$0xf0] }
  0x1a   : > { %981 = vmatpush.bf16.msra.mxu1 %v2064_v10  ;;  %v1553_v47 = vor.u32 %v1825_v43, %v1552_v42  ;;  %v1700_v50 = vld [vmem:[%s2107_s13 + $0x150] sm:$0xf]  ;;  %v1863_v51 = vld [vmem:[%s2107_s13 + $0x158] sm:$0xf0]  ;;  %v1826_v52 = vld [vmem:[%s2107_s13 + $0x34] sm:$0xf]  ;;  %v1557_v56 = vor.u32 %v1827_v49, %v1556_v48 }
  0x1b   : > { %1070 = vmatpush.bf16.msra.mxu2 %v2071_v11  ;;  %v1558_v53 = vld [vmem:[%s2107_s13 + $0x3c] sm:$0xf0]  ;;  %v1564_v54 = vld [vmem:[%s2107_s13 + $0x38] sm:$0xf]  ;;  %v1828_v55 = vld [vmem:[%s2107_s13 + $0x40] sm:$0xf0]  ;;  %v1701_v57 = vor.u32 %v1863_v51, %v1700_v50 }
  0x1c   : > { %v1561_v58 = vor.u32 %v1826_v52, %v1558_v53  ;;  %v1565_v59 = vor.u32 %v1828_v55, %v1564_v54  ;;  %v1568_v60 = vld [vmem:[%s2107_s13 + $0x48] sm:$0xf]  ;;  %v1830_v61 = vld [vmem:[%s2107_s13 + $0x50] sm:$0xf0]  ;;  %v1829_v0 = vld [vmem:[%s2107_s13 + $0x4c] sm:$0xf] }
  0x1d   : > { %893 = vmatpush.bf16.msra.mxu0 %v1871_v12  ;;  %1896 = vmatpush.bf16.msra.mxu3 %v1871_v12  ;;  %v1712_v62 = vld [vmem:[%s2107_s13 + $0x168] sm:$0xf]  ;;  %v1866_v63 = vld [vmem:[%s2107_s13 + $0x170] sm:$0xf0]  ;;  %v1831_v3 = vld [vmem:[%s2107_s13 + $0x58] sm:$0xf0] }
  0x1e   : > { %982 = vmatpush.bf16.msra.mxu1 %v1879_v13  ;;  %v1833_v9 = vld [vmem:[%s2107_s13 + $0x68] sm:$0xf0]  ;;  %v1678_v12 = vld [vmem:[%s2107_s13 + $0x12c] sm:$0xf0]  ;;  %v1859_v24 = vld [vmem:[%s2107_s13 + $0x13c] sm:$0xf] }
  0x1f   : > { %1071 = vmatpush.bf16.msra.mxu2 %v2086_v14  ;;  %v1690_v25 = vld [vmem:[%s2107_s13 + $0x144] sm:$0xf0]  ;;  %v1600_v26 = vld [vmem:[%s2107_s13 + $0x80] sm:$0xf]  ;;  %v1837_v27 = vld [vmem:[%s2107_s13 + $0x88] sm:$0xf0] }
  0x20   : > { %v1693_v29 = vor.u32 %v1859_v24, %v1690_v25  ;;  %v1601_v31 = vor.u32 %v1837_v27, %v1600_v26  ;;  %v1702_v36 = vld [vmem:[%s2107_s13 + $0x15c] sm:$0xf0]  ;;  %v1612_v38 = vld [vmem:[%s2107_s13 + $0x98] sm:$0xf]  ;;  %v1840_v39 = vld [vmem:[%s2107_s13 + $0xa0] sm:$0xf0] }
  0x21   : > { %894 = vmatpush.bf16.msra.mxu0 %v1870_v15  ;;  %1897 = vmatpush.bf16.msra.mxu3 %v1870_v15  ;;  %v1834_v15 = vld [vmem:[%s2107_s13 + $0x70] sm:$0xf0]  ;;  %v1606_v37 = vld [vmem:[%s2107_s13 + $0x9c] sm:$0xf0]  ;;  %v1613_v43 = vor.u32 %v1840_v39, %v1612_v38  ;;  %v1618_v48 = vld [vmem:[%s2107_s13 + $0xb4] sm:$0xf0] }
  0x22   : > { %983 = vmatpush.bf16.msra.mxu1 %v1878_v16  ;;  %v1865_v49 = vld [vmem:[%s2107_s13 + $0x16c] sm:$0xf]  ;;  %v1714_v50 = vld [vmem:[%s2107_s13 + $0x174] sm:$0xf0]  ;;  %v1624_v51 = vld [vmem:[%s2107_s13 + $0xb0] sm:$0xf] }
  0x23   : > { %1072 = vmatpush.bf16.msra.mxu2 %v2099_v17  ;;  %v1843_v52 = vld [vmem:[%s2107_s13 + $0xb8] sm:$0xf0]  ;;  %v1717_v54 = vor.u32 %v1865_v49, %v1714_v50  ;;  %v1652_v49 = vld [vmem:[%s2107_s13 + $0xf0] sm:$0xf] }
  0x25   : > { %895 = vmatpush.bf16.msra.mxu0 %v1869_v18  ;;  %1898 = vmatpush.bf16.msra.mxu3 %v1869_v18 }
  0x26   : > { %984 = vmatpush.bf16.msra.mxu1 %v1877_v19 }
  0x27   : > { %1073 = vmatpush.bf16.msra.mxu2 %v2116_v20 }
  0x29   : > { %896 = vmatpush.bf16.msra.mxu0 %v1868_v21  ;;  %1899 = vmatpush.bf16.msra.mxu3 %v1868_v21  ;;  %v1836_v21 = vld [vmem:[%s2107_s13 + $0x80] sm:$0xf0] }
  0x2a   : > { %985 = vmatpush.bf16.msra.mxu1 %v1876_v22 }
  0x2b   : > { %1074 = vmatpush.bf16.msra.mxu2 %v2127_v23 }
  0x2c   : > { %897 = vmatmul.bf16.vlgmr.msra.gmra.mxu0 %v1533_v32  ;;  %957 = vmatmul.bf16.vlgmr.msra.gmra.mxu3 %v1677_v33  ;;  %v1604_v32 = vld [vmem:[%s2107_s13 + $0x90] sm:$0xf]  ;;  %v1839_v33 = vld [vmem:[%s2107_s13 + $0x98] sm:$0xf0] }
  0x2d   : > { %1900 = vmatpush.bf16.msrb.mxu3 %v2020_v1  ;;  %986 = vmatmul.bf16.vlgmr.msra.gmra.mxu1 %v1537_v34  ;;  %v1570_v1 = vld [vmem:[%s2107_s13 + $0x54] sm:$0xf0]  ;;  %v1838_v34 = vld [vmem:[%s2107_s13 + $0x94] sm:$0xf]  ;;  %v1605_v40 = vor.u32 %v1839_v33, %v1604_v32 }
  0x2e   : > { %1075 = vmatmul.bf16.vlgmr.msra.gmra.mxu2 %v1541_v35  ;;  %v1573_v6 = vor.u32 %v1829_v0, %v1570_v1  ;;  %v1862_v35 = vld [vmem:[%s2107_s13 + $0x154] sm:$0xf]  ;;  %v1609_v42 = vor.u32 %v1838_v34, %v1606_v37 }
  0x2f   : > { %v1705_v41 = vor.u32 %v1862_v35, %v1702_v36  ;;  %v1846_v0 = vld [vmem:[%s2107_s13 + $0xd0] sm:$0xf0]  ;;  %v2300_v35 = vld [vmem:[%s2539_s3] ss:$0 sm:$0xff] }
  0x31   : > { %1901 = vmatpush.bf16.msrb.mxu3 %v2035_v4  ;;  %v1569_v4 = vor.u32 %v1830_v61, %v1568_v60  ;;  %v1630_v60 = vld [vmem:[%s2107_s13 + $0xcc] sm:$0xf0]  ;;  %v1684_v61 = vld [vmem:[%s2107_s13 + $0x128] sm:$0xf] }
  0x35   : > { %1902 = vmatpush.bf16.msrb.mxu3 %v2050_v7 }
  0x39   : > { %1903 = vmatpush.bf16.msrb.mxu3 %v2064_v10  ;;  %v1832_v10 = vld [vmem:[%s2107_s13 + $0x64] sm:$0xf] }
  0x3c   : > { %902 = vmatmul.bf16.gmra.mxu0 %v1545_v44  ;;  %962 = vmatmul.bf16.gmra.mxu3 %v1689_v45  ;;  %v1968_v44 = vmov 0.0   ;;  %v1616_v45 = vld [vmem:[%s2107_s13 + $0xa8] sm:$0xf] }
  0x3d   : > { %1904 = vmatpush.bf16.msrb.mxu3 %v1879_v13  ;;  %991 = vmatmul.bf16.gmra.mxu1 %v1549_v46  ;;  %v1582_v13 = vld [vmem:[%s2107_s13 + $0x6c] sm:$0xf0]  ;;  %313 = vst.msk [vmem:[#allocation2] sm:$0xff] %vm312_vm0, %v1968_v44  ;;  %v1842_v46 = vld [vmem:[%s2107_s13 + $0xb0] sm:$0xf0] }
  0x3e   : > { %1080 = vmatmul.bf16.gmra.mxu2 %v1553_v47  ;;  %v1585_v18 = vor.u32 %v1832_v10, %v1582_v13  ;;  %314 = vst.msk [vmem:[#allocation2 + $0x8] sm:$0xff] %vm312_vm0, %v1968_v44  ;;  %v1841_v47 = vld [vmem:[%s2107_s13 + $0xac] sm:$0xf]  ;;  %v1617_v53 = vor.u32 %v1842_v46, %v1616_v45 }
  0x3f   : > { %315 = vst.msk [vmem:[#allocation2 + $0x10] sm:$0xff] %vm312_vm0, %v1968_v44  ;;  %v1621_v55 = vor.u32 %v1841_v47, %v1618_v48 }
  0x40   : > { %316 = vst.msk [vmem:[#allocation2 + $0x18] sm:$0xff] %vm312_vm0, %v1968_v44 }
  0x41   : > { %1905 = vmatpush.bf16.msrb.mxu3 %v1878_v16  ;;  %317 = vst.msk [vmem:[#allocation2 + $0x20] sm:$0xff] %vm312_vm0, %v1968_v44 }
  0x42   : > { %318 = vst.msk [vmem:[#allocation2 + $0x28] sm:$0xff] %vm312_vm0, %v1968_v44 }
  0x43   : > { %319 = vst.msk [vmem:[#allocation2 + $0x30] sm:$0xff] %vm312_vm0, %v1968_v44 }
  0x44   : > { %320 = vst.msk [vmem:[#allocation2 + $0x38] sm:$0xff] %vm312_vm0, %v1968_v44 }
  0x45   : > { %1906 = vmatpush.bf16.msrb.mxu3 %v1877_v19  ;;  %321 = vst.msk [vmem:[#allocation2 + $0x40] sm:$0xff] %vm312_vm0, %v1968_v44 }
  0x46   : > { %322 = vst.msk [vmem:[#allocation2 + $0x48] sm:$0xff] %vm312_vm0, %v1968_v44 }
  0x47   : > { %323 = vst.msk [vmem:[#allocation2 + $0x50] sm:$0xff] %vm312_vm0, %v1968_v44 }
  0x48   : > { %324 = vst.msk [vmem:[#allocation2 + $0x58] sm:$0xff] %vm312_vm0, %v1968_v44 }
  0x49   : > { %1907 = vmatpush.bf16.msrb.mxu3 %v1876_v22  ;;  %v1835_v22 = vld [vmem:[%s2107_s13 + $0x7c] sm:$0xf]  ;;  %325 = vst.msk [vmem:[#allocation2 + $0x60] sm:$0xff] %vm312_vm0, %v1968_v44 }
  0x4a   : > { %326 = vst.msk [vmem:[#allocation2 + $0x68] sm:$0xff] %vm312_vm0, %v1968_v44 }
  0x4b   : > { %327 = vst.msk [vmem:[#allocation2 + $0x70] sm:$0xff] %vm312_vm0, %v1968_v44 }
  0x4c   : > { %907 = vmatmul.bf16.gmra.mxu0 %v1557_v56  ;;  %967 = vmatmul.bf16.gmra.mxu3 %v1701_v57  ;;  %v1625_v56 = vor.u32 %v1843_v52, %v1624_v51  ;;  %328 = vst.msk [vmem:[#allocation2 + $0x78] sm:$0xff] %vm312_vm0, %v1968_v44  ;;  %v1628_v57 = vld [vmem:[%s2107_s13 + $0xc0] sm:$0xf]  ;;  %v1851_v51 = vld [vmem:[%s2107_s13 + $0xf8] sm:$0xf0] }
  0x4d   : > { %1908 = vmatpush.bf16.msra.mxu3 %v2025_v2  ;;  %996 = vmatmul.bf16.gmra.mxu1 %v1561_v58  ;;  %v1576_v2 = vld [vmem:[%s2107_s13 + $0x50] sm:$0xf]  ;;  %329 = vst.msk [vmem:[#allocation2 + $0x80] sm:$0xff] %vm312_vm0, %v1968_v44  ;;  %v1845_v58 = vld [vmem:[%s2107_s13 + $0xc8] sm:$0xf0] }
  0x4e   : > { %1085 = vmatmul.bf16.gmra.mxu2 %v1565_v59  ;;  %v1577_v7 = vor.u32 %v1831_v3, %v1576_v2  ;;  %330 = vst.msk [vmem:[#allocation2 + $0x88] sm:$0xff] %vm312_vm0, %v1968_v44  ;;  %v1844_v59 = vld [vmem:[%s2107_s13 + $0xc4] sm:$0xf]  ;;  %v1629_v1 = vor.u32 %v1845_v58, %v1628_v57  ;;  %v1850_v52 = vld [vmem:[%s2107_s13 + $0xf4] sm:$0xf] }
  0x4f   : > { %331 = vst.msk [vmem:[#allocation2 + $0x90] sm:$0xff] %vm312_vm0, %v1968_v44  ;;  %v1660_v57 = vld [vmem:[%s2107_s13 + $0xf8] sm:$0xf]  ;;  %v1852_v58 = vld [vmem:[%s2107_s13 + $0x100] sm:$0xf0] }
  0x50   : > { %332 = vst.msk [vmem:[#allocation2 + $0x98] sm:$0xff] %vm312_vm0, %v1968_v44 }
  0x51   : > { %1909 = vmatpush.bf16.msra.mxu3 %v2040_v5  ;;  %v1713_v5 = vor.u32 %v1866_v63, %v1712_v62  ;;  %333 = vst.msk [vmem:[#allocation2 + $0xa0] sm:$0xff] %vm312_vm0, %v1968_v44  ;;  %v1858_v62 = vld [vmem:[%s2107_s13 + $0x130] sm:$0xf0]  ;;  %v1636_v63 = vld [vmem:[%s2107_s13 + $0xc8] sm:$0xf] }
  0x52   : > { %334 = vst.msk [vmem:[#allocation2 + $0xa8] sm:$0xff] %vm312_vm0, %v1968_v44  ;;  %v1685_v2 = vor.u32 %v1858_v62, %v1684_v61  ;;  %v348_v62 = vld [vmem:[#allocation2 + $0x18] sm:$0xff] }
  0x53   : > { %335 = vst.msk [vmem:[#allocation2 + $0xb0] sm:$0xff] %vm312_vm0, %v1968_v44 }
  0x54   : > { %336 = vst.msk [vmem:[#allocation2 + $0xb8] sm:$0xff] %vm312_vm0, %v1968_v44 }
  0x55   : > { %1910 = vmatpush.bf16.msra.mxu3 %v2055_v8  ;;  %v1580_v8 = vld [vmem:[%s2107_s13 + $0x60] sm:$0xf]  ;;  %337 = vst.msk [vmem:[#allocation2 + $0xc0] sm:$0xff] %vm312_vm0, %v1968_v44 }
  0x56   : > { %v1581_v16 = vor.u32 %v1833_v9, %v1580_v8  ;;  %338 = vst.msk [vmem:[#allocation2 + $0xc8] sm:$0xff] %vm312_vm0, %v1968_v44  ;;  %v345_v9 = vld [vmem:[#allocation2] sm:$0xff] }
  0x57   : > { %339 = vst.msk [vmem:[#allocation2 + $0xd0] sm:$0xff] %vm312_vm0, %v1968_v44 }
  0x58   : > { %340 = vst.msk [vmem:[#allocation2 + $0xd8] sm:$0xff] %vm312_vm0, %v1968_v44 }
  0x59   : > { %1911 = vmatpush.bf16.msra.mxu3 %v2071_v11  ;;  %v1856_v11 = vld [vmem:[%s2107_s13 + $0x124] sm:$0xf]  ;;  %341 = vst.msk [vmem:[#allocation2 + $0xe0] sm:$0xff] %vm312_vm0, %v1968_v44 }
  0x5a   : > { %342 = vst.msk [vmem:[#allocation2 + $0xe8] sm:$0xff] %vm312_vm0, %v1968_v44 }
  0x5b   : > { %343 = vst.msk [vmem:[#allocation2 + $0xf0] sm:$0xff] %vm312_vm0, %v1968_v44 }
  0x5c   : > { %912 = vmatmul.bf16.gmra.mxu0 %v1569_v4  ;;  %972 = vmatmul.bf16.gmra.mxu3 %v1713_v5  ;;  %v1633_v4 = vor.u32 %v1844_v59, %v1630_v60  ;;  %v1637_v5 = vor.u32 %v1846_v0, %v1636_v63  ;;  %344 = vst.msk [vmem:[#allocation2 + $0xf8] sm:$0xff] %vm312_vm0, %v1968_v44 }
  0x5d   : > { %1912 = vmatpush.bf16.msra.mxu3 %v2086_v14  ;;  %1001 = vmatmul.bf16.gmra.mxu1 %v1573_v6  ;;  %v1588_v14 = vld [vmem:[%s2107_s13 + $0x68] sm:$0xf]  ;;  %v1653_v0 = vor.u32 %v1851_v51, %v1652_v49 }
  0x5e   : > { %1090 = vmatmul.bf16.gmra.mxu2 %v1577_v7  ;;  %v1589_v19 = vor.u32 %v1834_v15, %v1588_v14  ;;  %v1640_v15 = vld [vmem:[%s2107_s13 + $0xd8] sm:$0xf] }
  0x61   : > { %1913 = vmatpush.bf16.msra.mxu3 %v2099_v17  ;;  %v1681_v17 = vor.u32 %v1856_v11, %v1678_v12 }
  0x65   : > { %1914 = vmatpush.bf16.msra.mxu3 %v2116_v20  ;;  %v1592_v20 = vld [vmem:[%s2107_s13 + $0x78] sm:$0xf] }
  0x66   : > { %v1593_v28 = vor.u32 %v1836_v21, %v1592_v20  ;;  %v1642_v20 = vld [vmem:[%s2107_s13 + $0xe4] sm:$0xf0]  ;;  %v1648_v21 = vld [vmem:[%s2107_s13 + $0xe0] sm:$0xf] }
  0x69   : > { %1915 = vmatpush.bf16.msra.mxu3 %v2127_v23  ;;  %v1594_v23 = vld [vmem:[%s2107_s13 + $0x84] sm:$0xf0] }
  0x6a   : > { %v1597_v30 = vor.u32 %v1835_v22, %v1594_v23  ;;  %v1849_v22 = vld [vmem:[%s2107_s13 + $0xe8] sm:$0xf0] }
  0x6b   : > { %v346_v23 = vld [vmem:[#allocation2 + $0x8] sm:$0xff]  ;;  %v1649_v33 = vor.u32 %v1849_v22, %v1648_v21 }
  0x6c   : > { %917 = vmatmul.bf16.gmra.mxu0 %v1581_v16  ;;  %1046 = vmatmul.bf16.vlgmr.msrb.gmra.mxu3 %v1681_v17  ;;  %v1848_v16 = vld [vmem:[%s2107_s13 + $0xe0] sm:$0xf0]  ;;  %v1847_v17 = vld [vmem:[%s2107_s13 + $0xdc] sm:$0xf]  ;;  %v1664_v22 = vld [vmem:[%s2107_s13 + $0x108] sm:$0xf] }
  0x6d   : > { %1006 = vmatmul.bf16.gmra.mxu1 %v1585_v18  ;;  %v1696_v18 = vld [vmem:[%s2107_s13 + $0x140] sm:$0xf]  ;;  %v1641_v27 = vor.u32 %v1848_v16, %v1640_v15  ;;  %v1645_v32 = vor.u32 %v1847_v17, %v1642_v20 }
  0x6e   : > { %1095 = vmatmul.bf16.gmra.mxu2 %v1589_v19  ;;  %v1861_v19 = vld [vmem:[%s2107_s13 + $0x148] sm:$0xf0]  ;;  %v349_v15 = vld [vmem:[#allocation2 + $0x20] sm:$0xff] }
  0x7c   : > { %922 = vmatmul.bf16.gmra.mxu0 %v1593_v28  ;;  %1051 = vmatmul.bf16.gmra.mxu3 %v1693_v29  ;;  %v1697_v28 = vor.u32 %v1861_v19, %v1696_v18  ;;  %v2295_v29 = vld [vmem:[%s2538_s2] ss:$0 sm:$0xff] }
  0x7d   : > { %1011 = vmatmul.bf16.gmra.mxu1 %v1597_v30 }
  0x7e   : > { %1100 = vmatmul.bf16.gmra.mxu2 %v1601_v31 }
  0x8c   : > { %927 = vmatmul.bf16.gmra.mxu0 %v1605_v40  ;;  %1056 = vmatmul.bf16.gmra.mxu3 %v1705_v41 }
  0x8d   : > { %1016 = vmatmul.bf16.gmra.mxu1 %v1609_v42  ;;  %v347_v42 = vld [vmem:[#allocation2 + $0x10] sm:$0xff] }
  0x8e   : > { %1105 = vmatmul.bf16.gmra.mxu2 %v1613_v43 }
  0x9c   : > { %932 = vmatmul.bf16.gmra.mxu0 %v1617_v53  ;;  %1061 = vmatmul.bf16.gmra.mxu3 %v1717_v54  ;;  %v1708_v54 = vld [vmem:[%s2107_s13 + $0x158] sm:$0xf] }
  0x9d   : > { %1021 = vmatmul.bf16.gmra.mxu1 %v1621_v55  ;;  %v1864_v55 = vld [vmem:[%s2107_s13 + $0x160] sm:$0xf0] }
  0x9e   : > { %1110 = vmatmul.bf16.gmra.mxu2 %v1625_v56  ;;  %v1654_v56 = vld [vmem:[%s2107_s13 + $0xfc] sm:$0xf0] }
  0xa9   : > { %v898_v3 = vpop.f32.mrf.mxu0 }
  0xaa   : > { %v987_v6 = vpop.f32.mrf.mxu1 }
  0xab   : > { %v988_v7 = vadd.f32 %v987_v6, %v898_v3  ;;  %v1661_v6 = vor.u32 %v1852_v58, %v1660_v57 }
  0xac   : > { %937 = vmatmul.bf16.gmra.mxu0 %v1629_v1  ;;  %1135 = vmatmul.bf16.vlgmr.msra.gmra.mxu3 %v1685_v2  ;;  %v1709_v1 = vor.u32 %v1864_v55, %v1708_v54  ;;  %v351_v55 = vld [vmem:[#allocation2 + $0x30] sm:$0xff] }
  0xad   : > { %1026 = vmatmul.bf16.gmra.mxu1 %v1633_v4 }
  0xae   : > { %1115 = vmatmul.bf16.gmra.mxu2 %v1637_v5  ;;  %v1657_v5 = vor.u32 %v1850_v52, %v1654_v56 }
  0xaf   : > { %v2279_v8 = vpop.f32.mrf.mxu3 }
  0xb1   : > { %v1076_v10 = vpop.f32.mrf.mxu2  ;;  %v900_v12 = vpop.f32.mrf.mxu0 }
  0xb2   : > { %v1077_v11 = vadd.f32 %v1076_v10, %v988_v7  ;;  %v989_v13 = vpop.f32.mrf.mxu1 }
  0xb3   : > { %v990_v24 = vadd.f32 %v989_v13, %v900_v12 }
  0xb4   : > { %v1156_v14 = vadd.f32 %v1077_v11, %v345_v9 }
  0xb6   : > { %1189 = vst.msk [vmem:[#allocation2] sm:$0xff] %vm312_vm0, %v1156_v14 }
  0xb7   : > { %v2290_v25 = vpop.f32.mrf.mxu3 }
  0xb9   : > { %v1078_v26 = vpop.f32.mrf.mxu2  ;;  %v903_v31 = vpop.f32.mrf.mxu0 }
  0xba   : > { %v1079_v30 = vadd.f32 %v1078_v26, %v990_v24  ;;  %v992_v34 = vpop.f32.mrf.mxu1  ;;  %v1853_v26 = vld [vmem:[%s2107_s13 + $0x10c] sm:$0xf] }
  0xbb   : > { %v993_v39 = vadd.f32 %v992_v34, %v903_v31  ;;  %v1666_v31 = vld [vmem:[%s2107_s13 + $0x114] sm:$0xf0] }
  0xbc   : > { %v1157_v36 = vadd.f32 %v1079_v30, %v346_v23  ;;  %942 = vmatmul.bf16.gmra.mxu0 %v1641_v27  ;;  %1140 = vmatmul.bf16.gmra.mxu3 %v1697_v28  ;;  %v1854_v23 = vld [vmem:[%s2107_s13 + $0x110] sm:$0xf0]  ;;  %v1720_v28 = vld [vmem:[%s2107_s13 + $0x170] sm:$0xf]  ;;  %v1867_v30 = vld [vmem:[%s2107_s13 + $0x178] sm:$0xf0] }
  0xbd   : > { %v1224_v37 = vld [vmem:[#allocation2] sm:$0xff]  ;;  %1031 = vmatmul.bf16.gmra.mxu1 %v1645_v32  ;;  %v1672_v32 = vld [vmem:[%s2107_s13 + $0x110] sm:$0xf] }
  0xbe   : > { %v1260_v38 = vmul.f32 %v2295_v29, %v1224_v37  ;;  %1190 = vst.msk [vmem:[#allocation2 + $0x8] sm:$0xff] %vm312_vm0, %v1157_v36  ;;  %1120 = vmatmul.bf16.gmra.mxu2 %v1649_v33  ;;  %v1855_v33 = vld [vmem:[%s2107_s13 + $0x118] sm:$0xf0] }
  0xbf   : > { %v2306_v41 = vpop.f32.mrf.mxu3 }
  0xc0   : > { %v1296_v40 = vadd.f32 %v2300_v35, %v1260_v38  ;;  %v350_v38 = vld [vmem:[#allocation2 + $0x28] sm:$0xff] }
  0xc1   : > { %v1081_v43 = vpop.f32.mrf.mxu2  ;;  %v905_v46 = vpop.f32.mrf.mxu0 }
  0xc2   : > { %v1328_v44 = vmax.f32 %v1296_v40, 0.0  ;;  %v1082_v45 = vadd.f32 %v1081_v43, %v993_v39  ;;  %v994_v47 = vpop.f32.mrf.mxu1  ;;  %v1665_v40 = vor.u32 %v1854_v23, %v1664_v22 }
  0xc3   : > { %v995_v60 = vadd.f32 %v994_v47, %v905_v46  ;;  %v1669_v46 = vor.u32 %v1853_v26, %v1666_v31  ;;  %v1673_v47 = vor.u32 %v1855_v33, %v1672_v32  ;;  %v354_v32 = vld [vmem:[#allocation2 + $0x48] sm:$0xff] }
  0xc4   : > { %1360 = vst.msk [vmem:[%s2311_s8] sm:$0xff] %vm312_vm0, %v1328_v44  ;;  %v1158_v48 = vadd.f32 %v1082_v45, %v347_v42  ;;  %v1721_v42 = vor.u32 %v1867_v30, %v1720_v28 }
  0xc5   : > { %v1225_v50 = vld [vmem:[#allocation2 + $0x8] sm:$0xff] }
  0xc6   : > { %v1261_v53 = vmul.f32 %v2295_v29, %v1225_v50  ;;  %1191 = vst.msk [vmem:[#allocation2 + $0x10] sm:$0xff] %vm312_vm0, %v1158_v48 }
  0xc7   : > { %v2326_v61 = vpop.f32.mrf.mxu3 }
  0xc8   : > { %v1297_v59 = vadd.f32 %v2300_v35, %v1261_v53 }
  0xc9   : > { %v1083_v63 = vpop.f32.mrf.mxu2  ;;  %v908_v4 = vpop.f32.mrf.mxu0 }
  0xca   : > { %v1329_v2 = vmax.f32 %v1297_v59, 0.0  ;;  %v1084_v3 = vadd.f32 %v1083_v63, %v995_v60  ;;  %v997_v7 = vpop.f32.mrf.mxu1 }
  0xcb   : > { %v998_v12 = vadd.f32 %v997_v7, %v908_v4  ;;  %v352_v4 = vld [vmem:[#allocation2 + $0x38] sm:$0xff] }
  0xcc   : > { %1361 = vst.msk [vmem:[%s2311_s8 + $0x8] sm:$0xff] %vm312_vm0, %v1329_v2  ;;  %v1159_v9 = vadd.f32 %v1084_v3, %v348_v62  ;;  %947 = vmatmul.bf16.gmra.mxu0 %v1653_v0  ;;  %1145 = vmatmul.bf16.gmra.mxu3 %v1709_v1 }
  0xcd   : > { %v1226_v10 = vld [vmem:[#allocation2 + $0x10] sm:$0xff]  ;;  %1036 = vmatmul.bf16.gmra.mxu1 %v1657_v5 }
  0xce   : > { %v1262_v11 = vmul.f32 %v2295_v29, %v1226_v10  ;;  %1192 = vst.msk [vmem:[#allocation2 + $0x18] sm:$0xff] %vm312_vm0, %v1159_v9  ;;  %1125 = vmatmul.bf16.gmra.mxu2 %v1661_v6 }
  0xcf   : > { %v2333_v14 = vpop.f32.mrf.mxu3 }
  0xd0   : > { %v1298_v13 = vadd.f32 %v2300_v35, %v1262_v11 }
  0xd1   : > { %v1086_v16 = vpop.f32.mrf.mxu2  ;;  %v910_v19 = vpop.f32.mrf.mxu0 }
  0xd2   : > { %v1330_v17 = vmax.f32 %v1298_v13, 0.0  ;;  %v1087_v18 = vadd.f32 %v1086_v16, %v998_v12  ;;  %v999_v20 = vpop.f32.mrf.mxu1 }
  0xd3   : > { %v1000_v36 = vadd.f32 %v999_v20, %v910_v19 }
  0xd4   : > { %1362 = vst.msk [vmem:[%s2311_s8 + $0x10] sm:$0xff] %vm312_vm0, %v1330_v17  ;;  %v1160_v21 = vadd.f32 %v1087_v18, %v349_v15  ;;  %v353_v18 = vld [vmem:[#allocation2 + $0x40] sm:$0xff] }
  0xd5   : > { %v1227_v24 = vld [vmem:[#allocation2 + $0x18] sm:$0xff] }
  0xd6   : > { %v1263_v27 = vmul.f32 %v2295_v29, %v1227_v24  ;;  %1193 = vst.msk [vmem:[#allocation2 + $0x20] sm:$0xff] %vm312_vm0, %v1160_v21 }
  0xd7   : > { %v2348_v37 = vpop.f32.mrf.mxu3 }
  0xd8   : > { %v1299_v34 = vadd.f32 %v2300_v35, %v1263_v27 }
  0xd9   : > { %v1088_v39 = vpop.f32.mrf.mxu2  ;;  %v913_v45 = vpop.f32.mrf.mxu0 }
  0xda   : > { %v1331_v43 = vmax.f32 %v1299_v34, 0.0  ;;  %v1089_v44 = vadd.f32 %v1088_v39, %v1000_v36  ;;  %v1002_v48 = vpop.f32.mrf.mxu1 }
  0xdb   : > { %v1003_v52 = vadd.f32 %v1002_v48, %v913_v45 }
  0xdc   : > { %1363 = vst.msk [vmem:[%s2311_s8 + $0x18] sm:$0xff] %vm312_vm0, %v1331_v43  ;;  %v1161_v49 = vadd.f32 %v1089_v44, %v350_v38  ;;  %952 = vmatmul.bf16.gmra.mxu0 %v1665_v40  ;;  %1150 = vmatmul.bf16.gmra.mxu3 %v1721_v42 }
  0xdd   : > { %v1228_v50 = vld [vmem:[#allocation2 + $0x20] sm:$0xff]  ;;  %1041 = vmatmul.bf16.gmra.mxu1 %v1669_v46 }
  0xde   : > { %v1264_v51 = vmul.f32 %v2295_v29, %v1228_v50  ;;  %1194 = vst.msk [vmem:[#allocation2 + $0x28] sm:$0xff] %vm312_vm0, %v1161_v49  ;;  %1130 = vmatmul.bf16.gmra.mxu2 %v1673_v47  ;;  %v355_v47 = vld [vmem:[#allocation2 + $0x50] sm:$0xff] }
  0xdf   : > { %v2355_v54 = vpop.f32.mrf.mxu3 }
  0xe0   : > { %v1300_v53 = vadd.f32 %v2300_v35, %v1264_v51 }
  0xe1   : > { %v1091_v56 = vpop.f32.mrf.mxu2  ;;  %v915_v59 = vpop.f32.mrf.mxu0 }
  0xe2   : > { %v1332_v57 = vmax.f32 %v1300_v53, 0.0  ;;  %v1092_v58 = vadd.f32 %v1091_v56, %v1003_v52  ;;  %v1004_v60 = vpop.f32.mrf.mxu1 }
  0xe3   : > { %v1005_v2 = vadd.f32 %v1004_v60, %v915_v59  ;;  %v356_v60 = vld [vmem:[#allocation2 + $0x58] sm:$0xff] }
  0xe4   : > { %1364 = vst.msk [vmem:[%s2311_s8 + $0x20] sm:$0xff] %vm312_vm0, %v1332_v57  ;;  %v1162_v62 = vadd.f32 %v1092_v58, %v351_v55 }
  0xe5   : > { %v1229_v63 = vld [vmem:[#allocation2 + $0x28] sm:$0xff] }
  0xe6   : > { %v1265_v0 = vmul.f32 %v2295_v29, %v1229_v63  ;;  %1195 = vst.msk [vmem:[#allocation2 + $0x30] sm:$0xff] %vm312_vm0, %v1162_v62 }
  0xe7   : > { %v2362_v3 = vpop.f32.mrf.mxu3 }
  0xe8   : > { %v1301_v1 = vadd.f32 %v2300_v35, %v1265_v0 }
  0xe9   : > { %v1093_v5 = vpop.f32.mrf.mxu2  ;;  %v918_v9 = vpop.f32.mrf.mxu0 }
  0xea   : > { %v1333_v6 = vmax.f32 %v1301_v1, 0.0  ;;  %v1094_v7 = vadd.f32 %v1093_v5, %v1005_v2  ;;  %v1007_v10 = vpop.f32.mrf.mxu1 }
  0xeb   : > { %v1008_v15 = vadd.f32 %v1007_v10, %v918_v9 }
  0xec   : > { %1365 = vst.msk [vmem:[%s2311_s8 + $0x28] sm:$0xff] %vm312_vm0, %v1333_v6  ;;  %v1163_v11 = vadd.f32 %v1094_v7, %v352_v4 }
  0xed   : > { %v1230_v12 = vld [vmem:[#allocation2 + $0x30] sm:$0xff] }
  0xee   : > { %v1266_v13 = vmul.f32 %v2295_v29, %v1230_v12  ;;  %1196 = vst.msk [vmem:[#allocation2 + $0x38] sm:$0xff] %vm312_vm0, %v1163_v11  ;;  %v357_v11 = vld [vmem:[#allocation2 + $0x60] sm:$0xff] }
  0xef   : > { %v2369_v17 = vpop.f32.mrf.mxu3 }
  0xf0   : > { %v1302_v16 = vadd.f32 %v2300_v35, %v1266_v13 }
  0xf1   : > { %v1096_v19 = vpop.f32.mrf.mxu2  ;;  %v920_v22 = vpop.f32.mrf.mxu0 }
  0xf2   : > { %v1334_v20 = vmax.f32 %v1302_v16, 0.0  ;;  %v1097_v21 = vadd.f32 %v1096_v19, %v1008_v15  ;;  %v1009_v24 = vpop.f32.mrf.mxu1 }
  0xf3   : > { %v1010_v30 = vadd.f32 %v1009_v24, %v920_v22 }
  0xf4   : > { %1366 = vst.msk [vmem:[%s2311_s8 + $0x30] sm:$0xff] %vm312_vm0, %v1334_v20  ;;  %v1164_v23 = vadd.f32 %v1097_v21, %v353_v18 }
  0xf5   : > { %v1231_v26 = vld [vmem:[#allocation2 + $0x38] sm:$0xff] }
  0xf6   : > { %v1267_v27 = vmul.f32 %v2295_v29, %v1231_v26  ;;  %1197 = vst.msk [vmem:[#allocation2 + $0x40] sm:$0xff] %vm312_vm0, %v1164_v23  ;;  %v358_v26 = vld [vmem:[#allocation2 + $0x68] sm:$0xff] }
  0xf7   : > { %v2376_v31 = vpop.f32.mrf.mxu3 }
  0xf8   : > { %v1303_v28 = vadd.f32 %v2300_v35, %v1267_v27 }
  0xf9   : > { %v1098_v33 = vpop.f32.mrf.mxu2  ;;  %v923_v38 = vpop.f32.mrf.mxu0 }
  0xfa   : > { %v1335_v34 = vmax.f32 %v1303_v28, 0.0  ;;  %v1099_v36 = vadd.f32 %v1098_v33, %v1010_v30  ;;  %v1012_v39 = vpop.f32.mrf.mxu1 }
  0xfb   : > { %v1013_v44 = vadd.f32 %v1012_v39, %v923_v38 }
  0xfc   : > { %1367 = vst.msk [vmem:[%s2311_s8 + $0x38] sm:$0xff] %vm312_vm0, %v1335_v34  ;;  %v1165_v40 = vadd.f32 %v1099_v36, %v354_v32 }
  0xfd   : > { %v1232_v42 = vld [vmem:[#allocation2 + $0x40] sm:$0xff] }
  0xfe   : > { %v1268_v43 = vmul.f32 %v2295_v29, %v1232_v42  ;;  %1198 = vst.msk [vmem:[#allocation2 + $0x48] sm:$0xff] %vm312_vm0, %v1165_v40 }
  0xff   : > { %v2383_v46 = vpop.f32.mrf.mxu3 }
 0x100   : > { %v1304_v45 = vadd.f32 %v2300_v35, %v1268_v43  ;;  %v359_v43 = vld [vmem:[#allocation2 + $0x70] sm:$0xff] }
 0x101   : > { %v1101_v48 = vpop.f32.mrf.mxu2  ;;  %v925_v51 = vpop.f32.mrf.mxu0 }
 0x102   : > { %v1336_v49 = vmax.f32 %v1304_v45, 0.0  ;;  %v1102_v50 = vadd.f32 %v1101_v48, %v1013_v44  ;;  %v1014_v52 = vpop.f32.mrf.mxu1 }
 0x103   : > { %v1015_v58 = vadd.f32 %v1014_v52, %v925_v51 }
 0x104   : > { %1368 = vst.msk [vmem:[%s2311_s8 + $0x40] sm:$0xff] %vm312_vm0, %v1336_v49  ;;  %v1166_v53 = vadd.f32 %v1102_v50, %v355_v47 }
 0x105   : > { %v1233_v55 = vld [vmem:[#allocation2 + $0x48] sm:$0xff] }
 0x106   : > { %v1269_v56 = vmul.f32 %v2295_v29, %v1233_v55  ;;  %1199 = vst.msk [vmem:[#allocation2 + $0x50] sm:$0xff] %vm312_vm0, %v1166_v53 }
 0x107   : > { %v2390_v59 = vpop.f32.mrf.mxu3 }
 0x108   : > { %v1305_v57 = vadd.f32 %v2300_v35, %v1269_v56 }
 0x109   : > { %v1103_v62 = vpop.f32.mrf.mxu2  ;;  %v928_v1 = vpop.f32.mrf.mxu0 }
 0x10a   : > { %v1337_v63 = vmax.f32 %v1305_v57, 0.0  ;;  %v1104_v0 = vadd.f32 %v1103_v62, %v1015_v58  ;;  %v1017_v2 = vpop.f32.mrf.mxu1  ;;  %v360_v57 = vld [vmem:[#allocation2 + $0x78] sm:$0xff] }
 0x10b   : > { %v1018_v7 = vadd.f32 %v1017_v2, %v928_v1 }
 0x10c   : > { %1369 = vst.msk [vmem:[%s2311_s8 + $0x48] sm:$0xff] %vm312_vm0, %v1337_v63  ;;  %v1167_v4 = vadd.f32 %v1104_v0, %v356_v60 }
 0x10d   : > { %v1234_v5 = vld [vmem:[#allocation2 + $0x50] sm:$0xff] }
 0x10e   : > { %v1270_v6 = vmul.f32 %v2295_v29, %v1234_v5  ;;  %1200 = vst.msk [vmem:[#allocation2 + $0x58] sm:$0xff] %vm312_vm0, %v1167_v4 }
 0x10f   : > { %v2397_v10 = vpop.f32.mrf.mxu3 }
 0x110   : > { %v1306_v9 = vadd.f32 %v2300_v35, %v1270_v6  ;;  %v1048_v6 = vadd.f32 %v2369_v17, %v2279_v8  ;;  %v1050_v17 = vadd.f32 %v2376_v31, %v2290_v25 }
 0x111   : > { %v1106_v12 = vpop.f32.mrf.mxu2  ;;  %v930_v16 = vpop.f32.mrf.mxu0 }
 0x112   : > { %v1338_v13 = vmax.f32 %v1306_v9, 0.0  ;;  %v1107_v15 = vadd.f32 %v1106_v12, %v1018_v7  ;;  %v1019_v18 = vpop.f32.mrf.mxu1  ;;  %v369_v9 = vld [vmem:[#allocation2 + $0xc0] sm:$0xff] }
 0x113   : > { %v1020_v24 = vadd.f32 %v1019_v18, %v930_v16  ;;  %v361_v12 = vld [vmem:[#allocation2 + $0x80] sm:$0xff] }
 0x114   : > { %1370 = vst.msk [vmem:[%s2311_s8 + $0x50] sm:$0xff] %vm312_vm0, %v1338_v13  ;;  %v1168_v19 = vadd.f32 %v1107_v15, %v357_v11 }
 0x115   : > { %v1235_v20 = vld [vmem:[#allocation2 + $0x58] sm:$0xff] }
 0x116   : > { %v1271_v21 = vmul.f32 %v2295_v29, %v1235_v20  ;;  %1201 = vst.msk [vmem:[#allocation2 + $0x60] sm:$0xff] %vm312_vm0, %v1168_v19 }
 0x117   : > { %v2404_v23 = vpop.f32.mrf.mxu3 }
 0x118   : > { %v1307_v22 = vadd.f32 %v2300_v35, %v1271_v21 }
 0x119   : > { %v1108_v27 = vpop.f32.mrf.mxu2  ;;  %v933_v32 = vpop.f32.mrf.mxu0 }
 0x11a   : > { %v1339_v28 = vmax.f32 %v1307_v22, 0.0  ;;  %v1109_v30 = vadd.f32 %v1108_v27, %v1020_v24  ;;  %v1022_v33 = vpop.f32.mrf.mxu1 }
 0x11b   : > { %v1023_v39 = vadd.f32 %v1022_v33, %v933_v32  ;;  %v362_v32 = vld [vmem:[#allocation2 + $0x88] sm:$0xff] }
 0x11c   : > { %1371 = vst.msk [vmem:[%s2311_s8 + $0x58] sm:$0xff] %vm312_vm0, %v1339_v28  ;;  %v1169_v34 = vadd.f32 %v1109_v30, %v358_v26  ;;  %v370_v28 = vld [vmem:[#allocation2 + $0xc8] sm:$0xff] }
 0x11d   : > { %v1236_v36 = vld [vmem:[#allocation2 + $0x60] sm:$0xff] }
 0x11e   : > { %v1272_v38 = vmul.f32 %v2295_v29, %v1236_v36  ;;  %1202 = vst.msk [vmem:[#allocation2 + $0x68] sm:$0xff] %vm312_vm0, %v1169_v34 }
 0x11f   : > { %v2411_v42 = vpop.f32.mrf.mxu3 }
 0x120   : > { %v1308_v40 = vadd.f32 %v2300_v35, %v1272_v38 }
 0x121   : > { %v1111_v44 = vpop.f32.mrf.mxu2  ;;  %v935_v48 = vpop.f32.mrf.mxu0 }
 0x122   : > { %v1340_v45 = vmax.f32 %v1308_v40, 0.0  ;;  %v1112_v47 = vadd.f32 %v1111_v44, %v1023_v39  ;;  %v1024_v49 = vpop.f32.mrf.mxu1 }
 0x123   : > { %v1025_v55 = vadd.f32 %v1024_v49, %v935_v48  ;;  %v1053_v49 = vadd.f32 %v2383_v46, %v2306_v41 }
 0x124   : > { %1372 = vst.msk [vmem:[%s2311_s8 + $0x60] sm:$0xff] %vm312_vm0, %v1340_v45  ;;  %v1170_v50 = vadd.f32 %v1112_v47, %v359_v43 }
 0x125   : > { %v1237_v51 = vld [vmem:[#allocation2 + $0x68] sm:$0xff] }
 0x126   : > { %v1273_v52 = vmul.f32 %v2295_v29, %v1237_v51  ;;  %1203 = vst.msk [vmem:[#allocation2 + $0x70] sm:$0xff] %vm312_vm0, %v1170_v50 }
 0x127   : > { %v2418_v56 = vpop.f32.mrf.mxu3 }
 0x128   : > { %v1309_v53 = vadd.f32 %v2300_v35, %v1273_v52  ;;  %v371_v52 = vld [vmem:[#allocation2 + $0xd0] sm:$0xff] }
 0x129   : > { %v1113_v58 = vpop.f32.mrf.mxu2  ;;  %v938_v63 = vpop.f32.mrf.mxu0 }
 0x12a   : > { %v1341_v60 = vmax.f32 %v1309_v53, 0.0  ;;  %v1114_v62 = vadd.f32 %v1113_v58, %v1025_v55  ;;  %v1027_v0 = vpop.f32.mrf.mxu1 }
 0x12b   : > { %v1028_v5 = vadd.f32 %v1027_v0, %v938_v63 }
 0x12c   : > { %1373 = vst.msk [vmem:[%s2311_s8 + $0x68] sm:$0xff] %vm312_vm0, %v1341_v60  ;;  %v1171_v1 = vadd.f32 %v1114_v62, %v360_v57  ;;  %v363_v57 = vld [vmem:[#allocation2 + $0x90] sm:$0xff] }
 0x12d   : > { %v1238_v2 = vld [vmem:[#allocation2 + $0x70] sm:$0xff] }
 0x12e   : > { %v1274_v4 = vmul.f32 %v2295_v29, %v1238_v2  ;;  %1204 = vst.msk [vmem:[#allocation2 + $0x78] sm:$0xff] %vm312_vm0, %v1171_v1 }
 0x12f   : > { %v1136_v11 = vpop.f32.mrf.mxu3 }
 0x130   : > { %v1310_v7 = vadd.f32 %v2300_v35, %v1274_v4  ;;  %v1137_v15 = vadd.f32 %v1136_v11, %v1048_v6 }
 0x131   : > { %v1116_v13 = vpop.f32.mrf.mxu2  ;;  %v940_v19 = vpop.f32.mrf.mxu0 }
 0x132   : > { %v1342_v16 = vmax.f32 %v1310_v7, 0.0  ;;  %v1117_v18 = vadd.f32 %v1116_v13, %v1028_v5  ;;  %v1180_v20 = vadd.f32 %v1137_v15, %v369_v9  ;;  %v1029_v21 = vpop.f32.mrf.mxu1  ;;  %v1055_v7 = vadd.f32 %v2390_v59, %v2326_v61  ;;  %v372_v13 = vld [vmem:[#allocation2 + $0xd8] sm:$0xff] }
 0x133   : > { %v1030_v27 = vadd.f32 %v1029_v21, %v940_v19 }
 0x134   : > { %1374 = vst.msk [vmem:[%s2311_s8 + $0x70] sm:$0xff] %vm312_vm0, %v1342_v16  ;;  %v1172_v22 = vadd.f32 %v1117_v18, %v361_v12  ;;  %v364_v18 = vld [vmem:[#allocation2 + $0x98] sm:$0xff] }
 0x135   : > { %v1239_v24 = vld [vmem:[#allocation2 + $0x78] sm:$0xff]  ;;  %1213 = vst.msk [vmem:[#allocation2 + $0xc0] sm:$0xff] %vm312_vm0, %v1180_v20 }
 0x136   : > { %v1275_v8 = vmul.f32 %v2295_v29, %v1239_v24  ;;  %1205 = vst.msk [vmem:[#allocation2 + $0x80] sm:$0xff] %vm312_vm0, %v1172_v22 }
 0x137   : > { %v1138_v30 = vpop.f32.mrf.mxu3 }
 0x138   : > { %v1311_v26 = vadd.f32 %v2300_v35, %v1275_v8  ;;  %v1139_v34 = vadd.f32 %v1138_v30, %v1050_v17 }
 0x139   : > { %v1118_v33 = vpop.f32.mrf.mxu2  ;;  %v943_v39 = vpop.f32.mrf.mxu0 }
 0x13a   : > { %v1343_v36 = vmax.f32 %v1311_v26, 0.0  ;;  %v1119_v38 = vadd.f32 %v1118_v33, %v1030_v27  ;;  %v1181_v40 = vadd.f32 %v1139_v34, %v370_v28  ;;  %v1032_v43 = vpop.f32.mrf.mxu1 }
 0x13b   : > { %v1033_v48 = vadd.f32 %v1032_v43, %v943_v39 }
 0x13c   : > { %1375 = vst.msk [vmem:[%s2311_s8 + $0x78] sm:$0xff] %vm312_vm0, %v1343_v36  ;;  %v1248_v44 = vld [vmem:[#allocation2 + $0xc0] sm:$0xff]  ;;  %v1173_v45 = vadd.f32 %v1119_v38, %v362_v32  ;;  %v1058_v32 = vadd.f32 %v2397_v10, %v2333_v14 }
 0x13d   : > { %v1240_v47 = vld [vmem:[#allocation2 + $0x80] sm:$0xff]  ;;  %v1284_v25 = vmul.f32 %v2295_v29, %v1248_v44  ;;  %1214 = vst.msk [vmem:[#allocation2 + $0xc8] sm:$0xff] %vm312_vm0, %v1181_v40 }
 0x13e   : > { %v1276_v31 = vmul.f32 %v2295_v29, %v1240_v47  ;;  %1206 = vst.msk [vmem:[#allocation2 + $0x88] sm:$0xff] %vm312_vm0, %v1173_v45  ;;  %v373_v36 = vld [vmem:[#allocation2 + $0xe0] sm:$0xff] }
 0x13f   : > { %v1320_v50 = vadd.f32 %v2300_v35, %v1284_v25  ;;  %v1141_v53 = vpop.f32.mrf.mxu3  ;;  %v365_v40 = vld [vmem:[#allocation2 + $0xa0] sm:$0xff] }
 0x140   : > { %v1312_v51 = vadd.f32 %v2300_v35, %v1276_v31  ;;  %v1142_v60 = vadd.f32 %v1141_v53, %v1053_v49 }
 0x141   : > { %v1352_v55 = vmax.f32 %v1320_v50, 0.0  ;;  %v1121_v58 = vpop.f32.mrf.mxu2  ;;  %v945_v0 = vpop.f32.mrf.mxu0 }
 0x142   : > { %v1344_v62 = vmax.f32 %v1312_v51, 0.0  ;;  %v1122_v63 = vadd.f32 %v1121_v58, %v1033_v48  ;;  %v1182_v1 = vadd.f32 %v1142_v60, %v371_v52  ;;  %v1034_v2 = vpop.f32.mrf.mxu1  ;;  %v1060_v52 = vadd.f32 %v2404_v23, %v2348_v37  ;;  %v374_v58 = vld [vmem:[#allocation2 + $0xe8] sm:$0xff] }
 0x143   : > { %1384 = vst.msk [vmem:[%s2311_s8 + $0xc0] sm:$0xff] %vm312_vm0, %v1352_v55  ;;  %v1035_v12 = vadd.f32 %v1034_v2, %v945_v0 }
 0x144   : > { %1376 = vst.msk [vmem:[%s2311_s8 + $0x80] sm:$0xff] %vm312_vm0, %v1344_v62  ;;  %v1249_v41 = vld [vmem:[#allocation2 + $0xc8] sm:$0xff]  ;;  %v1174_v46 = vadd.f32 %v1122_v63, %v363_v57 }
 0x145   : > { %v1241_v4 = vld [vmem:[#allocation2 + $0x88] sm:$0xff]  ;;  %v1285_v5 = vmul.f32 %v2295_v29, %v1249_v41  ;;  %1215 = vst.msk [vmem:[#allocation2 + $0xd0] sm:$0xff] %vm312_vm0, %v1182_v1 }
 0x146   : > { %v1277_v6 = vmul.f32 %v2295_v29, %v1241_v4  ;;  %1207 = vst.msk [vmem:[#allocation2 + $0x90] sm:$0xff] %vm312_vm0, %v1174_v46  ;;  %v366_v63 = vld [vmem:[#allocation2 + $0xa8] sm:$0xff] }
 0x147   : > { %v1321_v9 = vadd.f32 %v2300_v35, %v1285_v5  ;;  %v1143_v15 = vpop.f32.mrf.mxu3 }
 0x148   : > { %v1313_v11 = vadd.f32 %v2300_v35, %v1277_v6  ;;  %v1144_v20 = vadd.f32 %v1143_v15, %v1055_v7 }
 0x149   : > { %v1353_v16 = vmax.f32 %v1321_v9, 0.0  ;;  %v1123_v19 = vpop.f32.mrf.mxu2  ;;  %v948_v24 = vpop.f32.mrf.mxu0 }
 0x14a   : > { %v1345_v21 = vmax.f32 %v1313_v11, 0.0  ;;  %v1124_v22 = vadd.f32 %v1123_v19, %v1035_v12  ;;  %v1183_v8 = vadd.f32 %v1144_v20, %v372_v13  ;;  %v1037_v17 = vpop.f32.mrf.mxu1  ;;  %v1063_v12 = vadd.f32 %v2411_v42, %v2355_v54  ;;  %v367_v20 = vld [vmem:[#allocation2 + $0xb0] sm:$0xff] }
 0x14b   : > { %1385 = vst.msk [vmem:[%s2311_s8 + $0xc8] sm:$0xff] %vm312_vm0, %v1353_v16  ;;  %v1038_v30 = vadd.f32 %v1037_v17, %v948_v24  ;;  %v375_v16 = vld [vmem:[#allocation2 + $0xf0] sm:$0xff] }
 0x14c   : > { %1377 = vst.msk [vmem:[%s2311_s8 + $0x88] sm:$0xff] %vm312_vm0, %v1345_v21  ;;  %v1250_v61 = vld [vmem:[#allocation2 + $0xd0] sm:$0xff]  ;;  %v1175_v59 = vadd.f32 %v1124_v22, %v364_v18 }
 0x14d   : > { %v1242_v26 = vld [vmem:[#allocation2 + $0x90] sm:$0xff]  ;;  %v1286_v27 = vmul.f32 %v2295_v29, %v1250_v61  ;;  %1216 = vst.msk [vmem:[#allocation2 + $0xd8] sm:$0xff] %vm312_vm0, %v1183_v8 }
 0x14e   : > { %v1278_v28 = vmul.f32 %v2295_v29, %v1242_v26  ;;  %1208 = vst.msk [vmem:[#allocation2 + $0x98] sm:$0xff] %vm312_vm0, %v1175_v59 }
 0x14f   : > { %v1322_v33 = vadd.f32 %v2300_v35, %v1286_v27  ;;  %v1146_v38 = vpop.f32.mrf.mxu3 }
 0x150   : > { %v1314_v34 = vadd.f32 %v2300_v35, %v1278_v28  ;;  %v1147_v44 = vadd.f32 %v1146_v38, %v1058_v32 }
 0x151   : > { %v1354_v39 = vmax.f32 %v1322_v33, 0.0  ;;  %v1126_v43 = vpop.f32.mrf.mxu2  ;;  %v950_v25 = vpop.f32.mrf.mxu0 }
 0x152   : > { %v1346_v45 = vmax.f32 %v1314_v34, 0.0  ;;  %v1127_v47 = vadd.f32 %v1126_v43, %v1038_v30  ;;  %v1184_v31 = vadd.f32 %v1147_v44, %v373_v36  ;;  %v1039_v48 = vpop.f32.mrf.mxu1  ;;  %v1065_v30 = vadd.f32 %v2418_v56, %v2362_v3  ;;  %v376_v36 = vld [vmem:[#allocation2 + $0xf8] sm:$0xff] }
 0x153   : > { %1386 = vst.msk [vmem:[%s2311_s8 + $0xd0] sm:$0xff] %vm312_vm0, %v1354_v39  ;;  %v1040_v57 = vadd.f32 %v1039_v48, %v950_v25 }
 0x154   : > { %1378 = vst.msk [vmem:[%s2311_s8 + $0x90] sm:$0xff] %vm312_vm0, %v1346_v45  ;;  %v1251_v14 = vld [vmem:[#allocation2 + $0xd8] sm:$0xff]  ;;  %v1176_v10 = vadd.f32 %v1127_v47, %v365_v40 }
 0x155   : > { %v1243_v49 = vld [vmem:[#allocation2 + $0x98] sm:$0xff]  ;;  %v1287_v50 = vmul.f32 %v2295_v29, %v1251_v14  ;;  %1217 = vst.msk [vmem:[#allocation2 + $0xe0] sm:$0xff] %vm312_vm0, %v1184_v31 }
 0x156   : > { %v1279_v51 = vmul.f32 %v2295_v29, %v1243_v49  ;;  %1209 = vst.msk [vmem:[#allocation2 + $0xa0] sm:$0xff] %vm312_vm0, %v1176_v10  ;;  %v368_v40 = vld [vmem:[#allocation2 + $0xb8] sm:$0xff] }
 0x157   : > { %v1323_v53 = vadd.f32 %v2300_v35, %v1287_v50  ;;  %v1148_v60 = vpop.f32.mrf.mxu3 }
 0x158   : > { %v1315_v55 = vadd.f32 %v2300_v35, %v1279_v51  ;;  %v1149_v1 = vadd.f32 %v1148_v60, %v1060_v52 }
 0x159   : > { %v1355_v62 = vmax.f32 %v1323_v53, 0.0  ;;  %v1128_v0 = vpop.f32.mrf.mxu2  ;;  %v953_v4 = vpop.f32.mrf.mxu0 }
 0x15a   : > { %v1347_v2 = vmax.f32 %v1315_v55, 0.0  ;;  %v1129_v41 = vadd.f32 %v1128_v0, %v1040_v57  ;;  %v1185_v46 = vadd.f32 %v1149_v1, %v374_v58  ;;  %v1042_v5 = vpop.f32.mrf.mxu1 }
 0x15b   : > { %1387 = vst.msk [vmem:[%s2311_s8 + $0xd8] sm:$0xff] %vm312_vm0, %v1355_v62  ;;  %v1043_v11 = vadd.f32 %v1042_v5, %v953_v4 }
 0x15c   : > { %1379 = vst.msk [vmem:[%s2311_s8 + $0x98] sm:$0xff] %vm312_vm0, %v1347_v2  ;;  %v1252_v37 = vld [vmem:[#allocation2 + $0xe0] sm:$0xff]  ;;  %v1177_v23 = vadd.f32 %v1129_v41, %v366_v63 }
 0x15d   : > { %v1244_v6 = vld [vmem:[#allocation2 + $0xa0] sm:$0xff]  ;;  %v1288_v7 = vmul.f32 %v2295_v29, %v1252_v37  ;;  %1218 = vst.msk [vmem:[#allocation2 + $0xe8] sm:$0xff] %vm312_vm0, %v1185_v46 }
 0x15e   : > { %v1280_v9 = vmul.f32 %v2295_v29, %v1244_v6  ;;  %1210 = vst.msk [vmem:[#allocation2 + $0xa8] sm:$0xff] %vm312_vm0, %v1177_v23 }
 0x15f   : > { %v1324_v13 = vadd.f32 %v2300_v35, %v1288_v7  ;;  %v1151_v18 = vpop.f32.mrf.mxu3 }
 0x160   : > { %v1316_v15 = vadd.f32 %v2300_v35, %v1280_v9  ;;  %v1152_v22 = vadd.f32 %v1151_v18, %v1063_v12 }
 0x161   : > { %v1356_v19 = vmax.f32 %v1324_v13, 0.0  ;;  %v1131_v21 = vpop.f32.mrf.mxu2  ;;  %v955_v26 = vpop.f32.mrf.mxu0 }
 0x162   : > { %v1348_v24 = vmax.f32 %v1316_v15, 0.0  ;;  %v1132_v8 = vadd.f32 %v1131_v21, %v1043_v11  ;;  %v1186_v17 = vadd.f32 %v1152_v22, %v375_v16  ;;  %v1044_v27 = vpop.f32.mrf.mxu1 }
 0x163   : > { %1388 = vst.msk [vmem:[%s2311_s8 + $0xe0] sm:$0xff] %vm312_vm0, %v1356_v19  ;;  %v1045_v34 = vadd.f32 %v1044_v27, %v955_v26 }
 0x164   : > { %1380 = vst.msk [vmem:[%s2311_s8 + $0xa0] sm:$0xff] %vm312_vm0, %v1348_v24  ;;  %v1253_v61 = vld [vmem:[#allocation2 + $0xe8] sm:$0xff]  ;;  %v1178_v59 = vadd.f32 %v1132_v8, %v367_v20 }
 0x165   : > { %v1245_v54 = vld [vmem:[#allocation2 + $0xa8] sm:$0xff]  ;;  %v1289_v42 = vmul.f32 %v2295_v29, %v1253_v61  ;;  %1219 = vst.msk [vmem:[#allocation2 + $0xf0] sm:$0xff] %vm312_vm0, %v1186_v17 }
 0x166   : > { %v1281_v28 = vmul.f32 %v2295_v29, %v1245_v54  ;;  %1211 = vst.msk [vmem:[#allocation2 + $0xb0] sm:$0xff] %vm312_vm0, %v1178_v59 }
 0x167   : > { %v1325_v32 = vadd.f32 %v2300_v35, %v1289_v42  ;;  %v1153_v38 = vpop.f32.mrf.mxu3 }
 0x168   : > { %v1317_v33 = vadd.f32 %v2300_v35, %v1281_v28  ;;  %v1154_v44 = vadd.f32 %v1153_v38, %v1065_v30 }
 0x169   : > { %v1357_v39 = vmax.f32 %v1325_v32, 0.0  ;;  %v1133_v43 = vpop.f32.mrf.mxu2 }
 0x16a   : > { %v1349_v45 = vmax.f32 %v1317_v33, 0.0  ;;  %v1134_v47 = vadd.f32 %v1133_v43, %v1045_v34  ;;  %v1187_v25 = vadd.f32 %v1154_v44, %v376_v36 }
 0x16b   : > { %1389 = vst.msk [vmem:[%s2311_s8 + $0xe8] sm:$0xff] %vm312_vm0, %v1357_v39 }
 0x16c   : > { %1381 = vst.msk [vmem:[%s2311_s8 + $0xa8] sm:$0xff] %vm312_vm0, %v1349_v45  ;;  %v1254_v3 = vld [vmem:[#allocation2 + $0xf0] sm:$0xff]  ;;  %v1179_v56 = vadd.f32 %v1134_v47, %v368_v40 }
 0x16d   : > { %v1246_v31 = vld [vmem:[#allocation2 + $0xb0] sm:$0xff]  ;;  %v1290_v48 = vmul.f32 %v2295_v29, %v1254_v3  ;;  %1220 = vst.msk [vmem:[#allocation2 + $0xf8] sm:$0xff] %vm312_vm0, %v1187_v25 }
 0x16e   : > { %v1282_v14 = vmul.f32 %v2295_v29, %v1246_v31  ;;  %1212 = vst.msk [vmem:[#allocation2 + $0xb8] sm:$0xff] %vm312_vm0, %v1179_v56 }
 0x16f   : > { %v1326_v10 = vadd.f32 %v2300_v35, %v1290_v48 }
 0x170   : > { %v1318_v49 = vadd.f32 %v2300_v35, %v1282_v14 }
 0x171   : > { %v1358_v50 = vmax.f32 %v1326_v10, 0.0 }
 0x172   : > { %v1350_v51 = vmax.f32 %v1318_v49, 0.0 }
 0x173   : > { %1390 = vst.msk [vmem:[%s2311_s8 + $0xf0] sm:$0xff] %vm312_vm0, %v1358_v50 }
 0x174   : > { %1382 = vst.msk [vmem:[%s2311_s8 + $0xb0] sm:$0xff] %vm312_vm0, %v1350_v51  ;;  %v1255_v52 = vld [vmem:[#allocation2 + $0xf8] sm:$0xff] }
 0x175   : > { %v1247_v53 = vld [vmem:[#allocation2 + $0xb8] sm:$0xff]  ;;  %v1291_v55 = vmul.f32 %v2295_v29, %v1255_v52 }
 0x176   : > { %v1283_v57 = vmul.f32 %v2295_v29, %v1247_v53 }
 0x177   : > { %v1327_v58 = vadd.f32 %v2300_v35, %v1291_v55 }
 0x178   : > { %v1319_v60 = vadd.f32 %v2300_v35, %v1283_v57 }
 0x179   : > { %v1359_v62 = vmax.f32 %v1327_v58, 0.0 }
 0x17a   : > { %v1351_v63 = vmax.f32 %v1319_v60, 0.0 }
 0x17b   : > { %1391 = vst.msk [vmem:[%s2311_s8 + $0xf8] sm:$0xff] %vm312_vm0, %v1359_v62 }
 0x17c   : > { %1383 = vst.msk [vmem:[%s2311_s8 + $0xb8] sm:$0xff] %vm312_vm0, %v1351_v63 }
 0x17d PF: > { %s14_s17 = sadd.s32 1, %s1966_s17   ;;  %s2541_s15 = smov %s1962_s16 }
 0x17e   : > { %p11_p5 = scmp.ge.s32.totalorder %s14_s17, 4   ;;  %s2542_s16 = smov %s2544_s18 }
 0x180   :  { %13 = sbr.rel (!%p11_p5) target bundleno = 2 (0x2), region = 83 }

// kernel: inception_a_res_forward.7
= control target key start
LH: loop header
LB: loop body
LE: loop exit
PB: predicated region body
PF: predicated region fallthrough
CT: control target
= control target key end

     0   :  { %s2473_s15 = smov 0   ;;  %s3620_s0 = inlined_call_operand.vmem [shape: f32[2,18,18,32], index: 0, kind: input, shape index: {}]   ;;  %s3621_s1 = inlined_call_operand.vmem [shape: bf16[9,32,32], index: 1, kind: input, shape index: {}]   ;;  %s3622_s2 = inlined_call_operand.vmem [shape: f32[1,32], index: 2, kind: input, shape index: {}]   ;;  %s3623_s3 = inlined_call_operand.vmem [shape: f32[1,32], index: 3, kind: input, shape index: {}]   ;;  %s3624_s4 = inlined_call_operand.vmem [shape: f32[2,16,16,32], index: 4, kind: output, shape index: {}]  }
   0x1 LB: > { %s2146_s16 = sadd.s32 4294967295, %s2446_s15   ;;  %p2150_p0 = scmp.ge.s32.totalorder %s2446_s15, 1  ;;  %s2446_s15 = sphi %s2473_s15, %s14_s15  }
   0x2   : > { %p162_p1 = scmp.lt.s32.totalorder %s2446_s15, 3 }
   0x4   : > { %p163_p2 = pnand %p2150_p0, %p162_p1 }
   0x6   : > { %166 = sbr.rel (%p163_p2) target bundleno = 738 (0x2e2), region = 36 }
   0xb   : > { %v2408_v0 = vld [vmem:[%s3621_s1 + $0x18] sm:$0xff]  ;;  %p188_p3 = scmp.lt.s32.totalorder %s2146_s16, 1  ;;  %v2407_v1 = vld [vmem:[%s3621_s1 + $0x10] sm:$0xff]  ;;  %v2410_v2 = vld [vmem:[%s3621_s1 + $0x28] sm:$0xff]  ;;  %vm321_vm0 = vcmask 1046528   ;;  %vm467_vm1 = vcmask 261120  }
   0xc   : > { %2423 = vmatpush.bf16.msra.mxu1 %v2408_v0  ;;  %2424 = vmatpush.bf16.msra.mxu2 %v2408_v0  ;;  %v2412_v3 = vld [vmem:[%s3621_s1 + $0x38] sm:$0xff]  ;;  %v2406_v4 = vld [vmem:[%s3621_s1 + $0x8] sm:$0xff]  ;;  %v2409_v56 = vld [vmem:[%s3621_s1 + $0x20] sm:$0xff]  ;;  %vm754_vm2 = vcmask 1045504  }
   0xd   : > { %s3766_s16 = smov (!%p188_p3, %s2146_s16), 1  ;;  %2425 = vmatpush.bf16.msra.mxu3 %v2408_v0  ;;  %522 = vmatpush.bf16.msra.mxu0 %v2408_v0  ;;  %v2414_v5 = vld [vmem:[%s3621_s1 + $0x48] sm:$0xff]  ;;  %v2411_v61 = vld [vmem:[%s3621_s1 + $0x30] sm:$0xff] }
   0xe   : > { %s2429_s21 = smul.u32 432, %s3766_s16  ;;  %s2404_s12 = sshll.u32 %s3766_s16, 8 }
   0xf   : > { %s3392_s17 = scalar_lea.vmem %s3624_s4, %s2404_s12 }
  0x10   : > { %2426 = vmatpush.bf16.msra.mxu1 %v2407_v1  ;;  %2427 = vmatpush.bf16.msra.mxu2 %v2407_v1  ;;  %s2505_s6 = scalar_lea.vmem %s3620_s0, %s2429_s21 }
  0x11   : > { %2428 = vmatpush.bf16.msra.mxu3 %v2407_v1  ;;  %523 = vmatpush.bf16.msra.mxu0 %v2407_v1  ;;  %v2508_v6 = vld [vmem:[%s2505_s6 + $0x60] sm:$0xff]  ;;  %v2511_v7 = vld [vmem:[%s2505_s6 + $0x68] sm:$0xff]  ;;  %v2514_v8 = vld [vmem:[%s2505_s6 + $0x70] sm:$0x3] }
  0x12   : > { %v342_v9 = vrot.slane %v2508_v6, 1  ;;  %v343_v10 = vrot.slane %v2511_v7, 1  ;;  %v345_v11 = vrot.slane %v2514_v8, 1  ;;  %v2520_v12 = vld [vmem:[%s2505_s6 + $0xc0] sm:$0xff]  ;;  %v2523_v13 = vld [vmem:[%s2505_s6 + $0xc8] sm:$0xff]  ;;  %v2574_v41 = vld [vmem:[%s2505_s6 + $0x78] sm:$0xff] }
  0x13   : > { %v2526_v14 = vld [vmem:[%s2505_s6 + $0x120] sm:$0xff]  ;;  %v2529_v15 = vld [vmem:[%s2505_s6 + $0xd0] sm:$0x3]  ;;  %v362_v16 = vrot.slane %v2520_v12, 1  ;;  %v363_v17 = vrot.slane %v2523_v13, 1  ;;  %v2534_v18 = vld [vmem:[%s2505_s6 + $0x128] sm:$0xff] }
  0x14   : > { %3671 = vst [vmem:[#allocation2_spill] sm:$0xff] %v2526_v14  ;;  %954 = vmatpush.bf16.msrb.mxu2 %v2410_v2  ;;  %v382_v19 = vrot.slane %v2526_v14, 1  ;;  %671 = vmatpush.bf16.msrb.mxu1 %v2406_v4  ;;  %v344_v20 = vsel %vm321_vm0, %v342_v9, %v343_v10  ;;  %v346_v21 = vsel %vm321_vm0, %v343_v10, %v345_v11  ;;  %v365_v22 = vrot.slane %v2529_v15, 1  ;;  %v2541_v23 = vld [vmem:[%s2505_s6 + $0x130] sm:$0x3]  ;;  %v2544_v24 = vld [vmem:[%s2505_s6] sm:$0xff] }
  0x15   : > { %1096 = vmatpush.bf16.msrb.mxu3 %v2412_v3  ;;  %3672 = vst [vmem:[#allocation3_spill] sm:$0xff] %v2534_v18  ;;  %1248 = vmatpush.bf16.msrb.mxu0 %v2414_v5  ;;  %v2547_v25 = vld [vmem:[%s2505_s6 + $0x8] sm:$0xff]  ;;  %v2549_v26 = vpack.c.bf16 %v346_v21, %v344_v20  ;;  %v364_v27 = vsel %vm321_vm0, %v362_v16, %v363_v17  ;;  %v383_v28 = vrot.slane %v2534_v18, 1  ;;  %v385_v29 = vrot.slane %v2541_v23, 1  ;;  %v2555_v30 = vld [vmem:[%s2505_s6 + $0x10] sm:$0x3] }
  0x16   : > { %3673 = vst [vmem:[#allocation4_spill] sm:$0xff] %v2541_v23  ;;  %v366_v31 = vsel %vm321_vm0, %v363_v17, %v365_v22  ;;  %v322_v32 = vrot.slane %v2544_v24, 1  ;;  %v323_v33 = vrot.slane %v2547_v25, 1  ;;  %v325_v37 = vrot.slane %v2555_v30, 1  ;;  %v2577_v42 = vld [vmem:[%s2505_s6 + $0x80] sm:$0xff]  ;;  %v2585_v45 = vld [vmem:[%s2505_s6 + $0xd8] sm:$0xff] }
  0x17   : > { %2170 = vmatmul.msk.bf16.vlgmr.msra.gmra.mxu1 %vm467_vm1, %v2549_v26  ;;  %v2562_v34 = vpack.c.bf16 %v366_v31, %v364_v27  ;;  %v384_v35 = vsel %vm321_vm0, %v382_v19, %v383_v28  ;;  %v386_v36 = vsel %vm321_vm0, %v383_v28, %v385_v29  ;;  %v2580_v43 = vld [vmem:[%s2505_s6 + $0x88] sm:$0x3]  ;;  %v2588_v46 = vld [vmem:[%s2505_s6 + $0xe0] sm:$0xff]  ;;  %v2594_v48 = vld [vmem:[%s2505_s6 + $0x138] sm:$0xff]  ;;  %v347_v49 = vrot.slane %v2574_v41, 1 }
  0x18   : > { %v2567_v38 = vpack.c.bf16 %v386_v36, %v384_v35  ;;  %v324_v39 = vsel %vm321_vm0, %v322_v32, %v323_v33  ;;  %v326_v40 = vsel %vm321_vm0, %v323_v33, %v325_v37  ;;  %v2591_v47 = vld [vmem:[%s2505_s6 + $0xe8] sm:$0x3]  ;;  %3676 = vst [vmem:[#allocation7_spill] sm:$0xff] %v2594_v48  ;;  %v348_v50 = vrot.slane %v2577_v42, 1  ;;  %v2601_v52 = vld [vmem:[%s2505_s6 + $0x140] sm:$0xff]  ;;  %v2608_v55 = vld [vmem:[%s2505_s6 + $0x18] sm:$0xff]  ;;  %955 = vmatpush.bf16.msrb.mxu2 %v2409_v56 }
  0x19   : > { %3674 = vst [vmem:[#allocation5_spill] sm:$0xff] %v2562_v34  ;;  %2174 = vmatmul.msk.bf16.vlgmr.msra.gmra.mxu2 %vm467_vm1, %v2562_v34  ;;  %v434_v44 = vpack.c.bf16 %v326_v40, %v324_v39  ;;  %v350_v51 = vrot.slane %v2580_v43, 1  ;;  %v2604_v53 = vld [vmem:[%s2505_s6 + $0x148] sm:$0x3]  ;;  %v367_v54 = vrot.slane %v2585_v45, 1  ;;  %v368_v57 = vrot.slane %v2588_v46, 1  ;;  %1097 = vmatpush.bf16.msrb.mxu3 %v2411_v61 }
  0x1a   : > { %3675 = vst [vmem:[#allocation6_spill] sm:$0xff] %v2567_v38  ;;  %2178 = vmatmul.msk.bf16.vlgmr.msra.gmra.mxu3 %vm467_vm1, %v2567_v38  ;;  %v370_v58 = vrot.slane %v2591_v47, 1  ;;  %v2616_v59 = vld [vmem:[%s2505_s6 + $0x20] sm:$0xff]  ;;  %v2619_v60 = vld [vmem:[%s2505_s6 + $0x28] sm:$0x3]  ;;  %v387_v62 = vrot.slane %v2594_v48, 1  ;;  %v349_v3 = vsel %vm321_vm0, %v347_v49, %v348_v50 }
  0x1b   : > { %2166 = vmatmul.msk.bf16.vlgmr.msra.gmra.mxu0 %vm467_vm1, %v434_v44  ;;  %3677 = vst [vmem:[#allocation8_spill] sm:$0xff] %v2601_v52  ;;  %v388_v63 = vrot.slane %v2601_v52, 1  ;;  %v390_v0 = vrot.slane %v2604_v53, 1  ;;  %v2405_v1 = vld [vmem:[%s3621_s1] sm:$0xff]  ;;  %v351_v4 = vsel %vm321_vm0, %v348_v50, %v350_v51  ;;  %v327_v5 = vrot.slane %v2608_v55, 1  ;;  %v2657_v31 = vld [vmem:[%s2505_s6 + $0x90] sm:$0xff] }
  0x1c   : > { %3678 = vst [vmem:[#allocation9_spill] sm:$0xff] %v2604_v53  ;;  %v2413_v2 = vld [vmem:[%s3621_s1 + $0x40] sm:$0xff]  ;;  %v328_v9 = vrot.slane %v2616_v59, 1  ;;  %v330_v10 = vrot.slane %v2619_v60, 1  ;;  %672 = vmatpush.bf16.msrb.mxu1 %v2405_v1  ;;  %v369_v11 = vsel %vm321_vm0, %v367_v54, %v368_v57  ;;  %v371_v16 = vsel %vm321_vm0, %v368_v57, %v370_v58  ;;  %v2660_v32 = vld [vmem:[%s2505_s6 + $0x98] sm:$0xff]  ;;  %v2668_v35 = vld [vmem:[%s2505_s6 + $0xf0] sm:$0xff] }
  0x1d   : > { %1249 = vmatpush.bf16.msrb.mxu0 %v2413_v2  ;;  %v2640_v17 = vpack.c.bf16 %v351_v4, %v349_v3  ;;  %v389_v19 = vsel %vm321_vm0, %v387_v62, %v388_v63  ;;  %v391_v20 = vsel %vm321_vm0, %v388_v63, %v390_v0  ;;  %v2644_v21 = vpack.c.bf16 %v371_v16, %v369_v11  ;;  %v2663_v33 = vld [vmem:[%s2505_s6 + $0xa0] sm:$0x3]  ;;  %v2671_v36 = vld [vmem:[%s2505_s6 + $0xf8] sm:$0xff]  ;;  %v2677_v39 = vld [vmem:[%s2505_s6 + $0x150] sm:$0xff] }
  0x1e   : > { %v329_v22 = vsel %vm321_vm0, %v327_v5, %v328_v9  ;;  %v331_v27 = vsel %vm321_vm0, %v328_v9, %v330_v10  ;;  %v2648_v28 = vpack.c.bf16 %v391_v20, %v389_v19  ;;  %v2674_v37 = vld [vmem:[%s2505_s6 + $0x100] sm:$0x3]  ;;  %3681 = vst [vmem:[#allocation12_spill] sm:$0xff] %v2677_v39  ;;  %v352_v40 = vrot.slane %v2657_v31, 1  ;;  %v2685_v50 = vld [vmem:[%s2505_s6 + $0x158] sm:$0xff]  ;;  %v2691_v54 = vld [vmem:[%s2505_s6 + $0x30] sm:$0xff] }
  0x1f   : > { %3679 = vst [vmem:[#allocation10_spill] sm:$0xff] %v2644_v21  ;;  %v2652_v29 = vpack.c.bf16 %v331_v27, %v329_v22  ;;  %v353_v44 = vrot.slane %v2660_v32, 1  ;;  %v355_v49 = vrot.slane %v2663_v33, 1  ;;  %v2688_v51 = vld [vmem:[%s2505_s6 + $0x160] sm:$0x3]  ;;  %v372_v56 = vrot.slane %v2668_v35, 1 }
  0x20   : > { %3680 = vst [vmem:[#allocation11_spill] sm:$0xff] %v2648_v28  ;;  %v373_v57 = vrot.slane %v2671_v36, 1  ;;  %v375_v58 = vrot.slane %v2674_v37, 1  ;;  %v2697_v61 = vld [vmem:[%s2505_s6 + $0x38] sm:$0xff]  ;;  %v2700_v62 = vld [vmem:[%s2505_s6 + $0x40] sm:$0x3] }
  0x21   : > { %3682 = vst [vmem:[#allocation13_spill] sm:$0xff] %v2685_v50  ;;  %v392_v63 = vrot.slane %v2677_v39, 1  ;;  %v393_v0 = vrot.slane %v2685_v50, 1  ;;  %v395_v1 = vrot.slane %v2688_v51, 1  ;;  %v354_v2 = vsel %vm321_vm0, %v352_v40, %v353_v44  ;;  %v2778_v50 = vld [vmem:[%s2505_s6 + $0x48] sm:$0xff] }
  0x22   : > { %3683 = vst [vmem:[#allocation14_spill] sm:$0xff] %v2688_v51  ;;  %v356_v3 = vsel %vm321_vm0, %v353_v44, %v355_v49  ;;  %v332_v4 = vrot.slane %v2691_v54, 1  ;;  %v333_v5 = vrot.slane %v2697_v61, 1  ;;  %v335_v9 = vrot.slane %v2700_v62, 1  ;;  %v2784_v39 = vld [vmem:[%s2505_s6 + $0x58] sm:$0x3] }
  0x23   : > { %v374_v10 = vsel %vm321_vm0, %v372_v56, %v373_v57  ;;  %v376_v11 = vsel %vm321_vm0, %v373_v57, %v375_v58  ;;  %v2712_v16 = vpack.c.bf16 %v356_v3, %v354_v2  ;;  %v394_v19 = vsel %vm321_vm0, %v392_v63, %v393_v0  ;;  %v2727_v56 = vld [vmem:[%s2505_s6 + $0xa8] sm:$0xff]  ;;  %v2732_v57 = vld [vmem:[%s2505_s6 + $0xb0] sm:$0xff]  ;;  %v2735_v58 = vld [vmem:[%s2505_s6 + $0xb8] sm:$0x3] }
  0x24   : > { %v396_v20 = vsel %vm321_vm0, %v393_v0, %v395_v1  ;;  %v2716_v22 = vpack.c.bf16 %v376_v11, %v374_v10  ;;  %v334_v27 = vsel %vm321_vm0, %v332_v4, %v333_v5  ;;  %v336_v40 = vsel %vm321_vm0, %v333_v5, %v335_v9  ;;  %v2738_v63 = vld [vmem:[%s2505_s6 + $0x108] sm:$0xff]  ;;  %v2743_v0 = vld [vmem:[%s2505_s6 + $0x110] sm:$0xff]  ;;  %v2746_v1 = vld [vmem:[%s2505_s6 + $0x118] sm:$0x3] }
  0x25   : > { %3684 = vst [vmem:[#allocation15_spill] sm:$0xff] %v2712_v16  ;;  %v2720_v44 = vpack.c.bf16 %v396_v20, %v394_v19  ;;  %v2724_v49 = vpack.c.bf16 %v336_v40, %v334_v27  ;;  %v2418_v2 = vld [vmem:[%s3621_s1 + $0x68] sm:$0xff]  ;;  %v2755_v4 = vld [vmem:[%s2505_s6 + $0x170] sm:$0xff]  ;;  %v2758_v5 = vld [vmem:[%s2505_s6 + $0x178] sm:$0x3]  ;;  %v357_v9 = vrot.slane %v2727_v56, 1 }
  0x26   : > { %v2752_v3 = vld [vmem:[%s2505_s6 + $0x168] sm:$0xff]  ;;  %3687 = vst [vmem:[#allocation18_spill] sm:$0xff] %v2755_v4  ;;  %v358_v10 = vrot.slane %v2732_v57, 1  ;;  %v360_v11 = vrot.slane %v2735_v58, 1  ;;  %1539 = vmatpush.bf16.msra.mxu2 %v2418_v2  ;;  %v2420_v19 = vld [vmem:[%s3621_s1 + $0x78] sm:$0xff]  ;;  %v377_v40 = vrot.slane %v2738_v63, 1 }
  0x27   : > { %2171 = vmatmul.msk.bf16.gmra.mxu1 %vm467_vm1, %v2640_v17  ;;  %3685 = vst [vmem:[#allocation16_spill] sm:$0xff] %v2720_v44  ;;  %v2416_v20 = vld [vmem:[%s3621_s1 + $0x58] sm:$0xff]  ;;  %v2422_v27 = vld [vmem:[%s3621_s1 + $0x88] sm:$0xff]  ;;  %v378_v51 = vrot.slane %v2743_v0, 1  ;;  %v2781_v2 = vld [vmem:[%s2505_s6 + $0x50] sm:$0xff]  ;;  %1691 = vmatpush.bf16.msra.mxu3 %v2420_v19  ;;  %v397_v53 = vrot.slane %v2752_v3, 1 }
  0x28   : > { %3686 = vst [vmem:[#allocation17_spill] sm:$0xff] %v2752_v3  ;;  %1397 = vmatpush.bf16.msra.mxu1 %v2416_v20  ;;  %v400_v52 = vrot.slane %v2758_v5, 1  ;;  %1840 = vmatpush.bf16.msra.mxu0 %v2422_v27  ;;  %v359_v48 = vsel %vm321_vm0, %v357_v9, %v358_v10  ;;  %v361_v23 = vsel %vm321_vm0, %v358_v10, %v360_v11  ;;  %v337_v38 = vrot.slane %v2778_v50, 1 }
  0x29   : > { %2175 = vmatmul.msk.bf16.gmra.mxu2 %vm467_vm1, %v2644_v21  ;;  %3688 = vst [vmem:[#allocation19_spill] sm:$0xff] %v2758_v5  ;;  %v338_v18 = vrot.slane %v2781_v2, 1  ;;  %v340_v14 = vrot.slane %v2784_v39, 1  ;;  %v379_v19 = vsel %vm321_vm0, %v377_v40, %v378_v51  ;;  %v2796_v3 = vpack.c.bf16 %v361_v23, %v359_v48 }
  0x2a   : > { %2179 = vmatmul.msk.bf16.gmra.mxu3 %vm467_vm1, %v2648_v28  ;;  %v398_v28 = vrot.slane %v2755_v4, 1  ;;  %v758_v23 = vrot.slane %v2555_v30, 2  ;;  %v760_v30 = vrot.slane %v2608_v55, 2 }
  0x2b   : > { %2167 = vmatmul.msk.bf16.gmra.mxu0 %vm467_vm1, %v2652_v29  ;;  %3689 = vst [vmem:[#allocation20_spill] sm:$0xff] %v2796_v3  ;;  %v339_v9 = vsel %vm321_vm0, %v337_v38, %v338_v18  ;;  %v341_v10 = vsel %vm321_vm0, %v338_v18, %v340_v14  ;;  %v755_v14 = vrot.slane %v2544_v24, 2  ;;  %v756_v18 = vrot.slane %v2547_v25, 2 }
  0x2c   : > { %v399_v4 = vsel %vm321_vm0, %v397_v53, %v398_v28  ;;  %v401_v27 = vsel %vm321_vm0, %v398_v28, %v400_v52  ;;  %v2808_v40 = vpack.c.bf16 %v341_v10, %v339_v9  ;;  %v253_v52 = vpack.c.bf16 %v2547_v25, %v2544_v24 }
  0x2d   : > { %v2804_v11 = vpack.c.bf16 %v401_v27, %v399_v4  ;;  %v757_v38 = vsel %vm754_vm2, %v755_v14, %v756_v18  ;;  %v759_v48 = vsel %vm754_vm2, %v756_v18, %v758_v23  ;;  %v254_v28 = vpack.c.bf16 %v2616_v59, %v2608_v55 }
  0x2e   : > { %v867_v53 = vpack.c.bf16 %v759_v48, %v757_v38  ;;  %v765_v55 = vrot.slane %v2691_v54, 2  ;;  %v2857_v9 = vpack.c.bf16 %v2781_v2, %v2778_v50  ;;  %v2876_v18 = vpack.c.bf16 %v2511_v7, %v2508_v6 }
  0x2f   : > { %3690 = vst [vmem:[#allocation21_spill] sm:$0xff] %v2804_v11 }
  0x37   : > { %2172 = vmatmul.msk.bf16.gmra.mxu1 %vm467_vm1, %v2712_v16 }
  0x39   : > { %2176 = vmatmul.msk.bf16.gmra.mxu2 %vm467_vm1, %v2716_v22 }
  0x3a   : > { %2180 = vmatmul.msk.bf16.gmra.mxu3 %vm467_vm1, %v2720_v44  ;;  %v380_v44 = vrot.slane %v2746_v1, 1 }
  0x3b   : > { %2168 = vmatmul.msk.bf16.gmra.mxu0 %vm467_vm1, %v2724_v49 }
  0x3c   : > { %v381_v20 = vsel %vm321_vm0, %v378_v51, %v380_v44  ;;  %v761_v51 = vrot.slane %v2616_v59, 2  ;;  %v763_v44 = vrot.slane %v2619_v60, 2  ;;  %v766_v59 = vrot.slane %v2697_v61, 2 }
  0x3d   : > { %v2800_v5 = vpack.c.bf16 %v381_v20, %v379_v19  ;;  %v2839_v19 = vpack.c.bf16 %v2697_v61, %v2691_v54  ;;  %v768_v60 = vrot.slane %v2700_v62, 2  ;;  %v770_v54 = vrot.slane %v2778_v50, 2 }
  0x3e   : > { %v762_v24 = vsel %vm754_vm2, %v760_v30, %v761_v51  ;;  %v764_v25 = vsel %vm754_vm2, %v761_v51, %v763_v44  ;;  %v771_v61 = vrot.slane %v2781_v2, 2  ;;  %v773_v62 = vrot.slane %v2784_v39, 2 }
  0x3f   : > { %v2835_v4 = vpack.c.bf16 %v764_v25, %v762_v24  ;;  %v769_v20 = vsel %vm754_vm2, %v766_v59, %v768_v60  ;;  %v775_v39 = vrot.slane %v2508_v6, 2  ;;  %v776_v50 = vrot.slane %v2511_v7, 2 }
  0x40   : > { %v772_v10 = vsel %vm754_vm2, %v770_v54, %v771_v61  ;;  %v774_v23 = vsel %vm754_vm2, %v771_v61, %v773_v62  ;;  %v778_v2 = vrot.slane %v2514_v8, 2  ;;  %v780_v51 = vrot.slane %v2574_v41, 2 }
  0x41   : > { %v2872_v14 = vpack.c.bf16 %v774_v23, %v772_v10  ;;  %v777_v38 = vsel %vm754_vm2, %v775_v39, %v776_v50  ;;  %v781_v44 = vrot.slane %v2577_v42, 2  ;;  %v783_v24 = vrot.slane %v2580_v43, 2 }
  0x42   : > { %v779_v48 = vsel %vm754_vm2, %v776_v50, %v778_v2  ;;  %v785_v10 = vrot.slane %v2657_v31, 2  ;;  %v786_v23 = vrot.slane %v2660_v32, 2  ;;  %v788_v39 = vrot.slane %v2663_v33, 2  ;;  %v2417_v33 = vld [vmem:[%s3621_s1 + $0x60] sm:$0xff] }
  0x43   : > { %1540 = vmatpush.bf16.msra.mxu2 %v2417_v33  ;;  %v2421_v33 = vld [vmem:[%s3621_s1 + $0x80] sm:$0xff] }
  0x44   : > { %v787_v2 = vsel %vm754_vm2, %v785_v10, %v786_v23  ;;  %v2419_v10 = vld [vmem:[%s3621_s1 + $0x70] sm:$0xff]  ;;  %1841 = vmatpush.bf16.msra.mxu0 %v2421_v33  ;;  %v795_v33 = vrot.slane %v2520_v12, 2 }
  0x45   : > { %1692 = vmatpush.bf16.msra.mxu3 %v2419_v10 }
  0x47   : > { %2173 = vmatmul.msk.bf16.gmra.mxu1 %vm467_vm1, %v2796_v3 }
  0x49   : > { %2177 = vmatmul.msk.bf16.gmra.mxu2 %vm467_vm1, %v2800_v5 }
  0x4a   : > { %2181 = vmatmul.msk.bf16.gmra.mxu3 %vm467_vm1, %v2804_v11 }
  0x4b   : > { %2169 = vmatmul.msk.bf16.gmra.mxu0 %vm467_vm1, %v2808_v40 }
  0x57   : > { %2190 = vmatmul.msk.bf16.vlgmr.msrb.gmra.mxu1 %vm467_vm1, %v253_v52 }
  0x59   : > { %2218 = vmatmul.msk.bf16.vlgmr.msrb.gmra.mxu2 %vm467_vm1, %v867_v53  ;;  %v2893_v53 = vpack.c.bf16 %v779_v48, %v777_v38  ;;  %v789_v38 = vsel %vm754_vm2, %v786_v23, %v788_v39  ;;  %v790_v39 = vrot.slane %v2727_v56, 2 }
  0x5a   : > { %2246 = vmatmul.msk.bf16.vlgmr.msrb.gmra.mxu3 %vm467_vm1, %v254_v28 }
  0x5b   : > { %2274 = vmatmul.msk.bf16.vlgmr.msrb.gmra.mxu0 %vm467_vm1, %v2652_v29  ;;  %v767_v29 = vsel %vm754_vm2, %v765_v55, %v766_v59  ;;  %v782_v55 = vsel %vm754_vm2, %v780_v51, %v781_v44  ;;  %v784_v59 = vsel %vm754_vm2, %v781_v44, %v783_v24  ;;  %v2963_v24 = vpack.c.bf16 %v789_v38, %v787_v2 }
  0x5c   : > { %v2853_v27 = vpack.c.bf16 %v769_v20, %v767_v29  ;;  %v2928_v54 = vpack.c.bf16 %v784_v59, %v782_v55  ;;  %v791_v2 = vrot.slane %v2732_v57, 2  ;;  %v793_v38 = vrot.slane %v2735_v58, 2 }
  0x5d   : > { %3697 = vst [vmem:[#allocation28_spill] sm:$0xff] %v2963_v24 }
  0x5e   : > { %3693 = vst [vmem:[#allocation24_spill] sm:$0xff] %v2928_v54 }
  0x67   : > { %2191 = vmatmul.msk.bf16.gmra.mxu1 %vm467_vm1, %v254_v28  ;;  %v2897_v28 = vpack.c.bf16 %v2577_v42, %v2574_v41  ;;  %v2932_v41 = vpack.c.bf16 %v2660_v32, %v2657_v31  ;;  %v2967_v31 = vpack.c.bf16 %v2732_v57, %v2727_v56  ;;  %v794_v56 = vsel %vm754_vm2, %v791_v2, %v793_v38 }
  0x68   : > { %v798_v38 = vrot.slane %v2529_v15, 2 }
  0x69   : > { %2219 = vmatmul.msk.bf16.gmra.mxu2 %vm467_vm1, %v2835_v4  ;;  %3694 = vst [vmem:[#allocation25_spill] sm:$0xff] %v2932_v41 }
  0x6a   : > { %2247 = vmatmul.msk.bf16.gmra.mxu3 %vm467_vm1, %v2839_v19  ;;  %3698 = vst [vmem:[#allocation29_spill] sm:$0xff] %v2967_v31 }
  0x6b   : > { %2275 = vmatmul.msk.bf16.gmra.mxu0 %vm467_vm1, %v2724_v49 }
  0x77   : > { %2192 = vmatmul.msk.bf16.gmra.mxu1 %vm467_vm1, %v2839_v19 }
  0x79   : > { %2220 = vmatmul.msk.bf16.gmra.mxu2 %vm467_vm1, %v2853_v27 }
  0x7a   : > { %2248 = vmatmul.msk.bf16.gmra.mxu3 %vm467_vm1, %v2857_v9 }
  0x7b   : > { %2276 = vmatmul.msk.bf16.gmra.mxu0 %vm467_vm1, %v2808_v40 }
  0x87   : > { %2193 = vmatmul.msk.bf16.gmra.mxu1 %vm467_vm1, %v2857_v9 }
  0x89   : > { %2221 = vmatmul.msk.bf16.gmra.mxu2 %vm467_vm1, %v2872_v14 }
  0x8a   : > { %2249 = vmatmul.msk.bf16.gmra.mxu3 %vm467_vm1, %v2876_v18 }
  0x8b   : > { %2277 = vmatmul.msk.bf16.gmra.mxu0 %vm467_vm1, %v2549_v26 }
  0x94   : > { %v2891_v52 = vpop.f32.mrf.mxu1 }
  0x97   : > { %2194 = vmatmul.msk.bf16.gmra.mxu1 %vm467_vm1, %v2876_v18 }
  0x98   : > { %v2901_v6 = vpop.f32.mrf.mxu0 }
  0x99   : > { %2222 = vmatmul.msk.bf16.gmra.mxu2 %vm467_vm1, %v2893_v53 }
  0x9a   : > { %2250 = vmatmul.msk.bf16.gmra.mxu3 %vm467_vm1, %v2897_v28 }
  0x9b   : > { %2278 = vmatmul.msk.bf16.gmra.mxu0 %vm467_vm1, %v2640_v17 }
  0x9c   : > { %v2909_v7 = vpop.f32.mrf.mxu2  ;;  %v2911_v8 = vpop.f32.mrf.mxu1 }
  0x9d   : > { %v2913_v30 = vpop.f32.mrf.mxu3 }
  0x9e   : > { %3691 = vst [vmem:[#allocation22_spill] sm:$0xff] %v2913_v30 }
  0xa0   : > { %v2918_v25 = vpop.f32.mrf.mxu0 }
  0xa4   : > { %v2922_v60 = vpop.f32.mrf.mxu2  ;;  %v2924_v29 = vpop.f32.mrf.mxu1 }
  0xa5   : > { %v2926_v20 = vpop.f32.mrf.mxu3 }
  0xa6   : > { %3692 = vst [vmem:[#allocation23_spill] sm:$0xff] %v2926_v20 }
  0xa7   : > { %2195 = vmatmul.msk.bf16.gmra.mxu1 %vm467_vm1, %v2897_v28 }
  0xa8   : > { %v2936_v42 = vpop.f32.mrf.mxu0 }
  0xa9   : > { %2223 = vmatmul.msk.bf16.gmra.mxu2 %vm467_vm1, %v2928_v54 }
  0xaa   : > { %2251 = vmatmul.msk.bf16.gmra.mxu3 %vm467_vm1, %v2932_v41 }
  0xab   : > { %2279 = vmatmul.msk.bf16.gmra.mxu0 %vm467_vm1, %v2712_v16 }
  0xac   : > { %v2944_v43 = vpop.f32.mrf.mxu2  ;;  %v2946_v61 = vpop.f32.mrf.mxu1 }
  0xad   : > { %v2948_v62 = vpop.f32.mrf.mxu3 }
  0xae   : > { %3695 = vst [vmem:[#allocation26_spill] sm:$0xff] %v2948_v62 }
  0xb0   : > { %v2953_v50 = vpop.f32.mrf.mxu0 }
  0xb4   : > { %v2957_v48 = vpop.f32.mrf.mxu2  ;;  %v2959_v51 = vpop.f32.mrf.mxu1 }
  0xb5   : > { %v2961_v44 = vpop.f32.mrf.mxu3 }
  0xb6   : > { %3696 = vst [vmem:[#allocation27_spill] sm:$0xff] %v2961_v44  ;;  %v2415_v44 = vld [vmem:[%s3621_s1 + $0x50] sm:$0xff] }
  0xb7   : > { %2196 = vmatmul.msk.bf16.gmra.mxu1 %vm467_vm1, %v2932_v41 }
  0xb8   : > { %v2971_v32 = vpop.f32.mrf.mxu0  ;;  %1398 = vmatpush.bf16.msra.mxu1 %v2415_v44  ;;  %v3014_v44 = vpack.c.bf16 %v2523_v13, %v2520_v12  ;;  %v3048_v12 = vpack.c.bf16 %v2588_v46, %v2585_v45 }
  0xb9   : > { %2224 = vmatmul.msk.bf16.gmra.mxu2 %vm467_vm1, %v2963_v24 }
  0xba   : > { %2252 = vmatmul.msk.bf16.gmra.mxu3 %vm467_vm1, %v2967_v31  ;;  %3702 = vst [vmem:[#allocation33_spill] sm:$0xff] %v3014_v44 }
  0xbb   : > { %2280 = vmatmul.msk.bf16.gmra.mxu0 %vm467_vm1, %v2796_v3 }
  0xbc   : > { %v2982_v55 = vpop.f32.mrf.mxu2  ;;  %v2984_v59 = vpop.f32.mrf.mxu1 }
  0xbd   : > { %v2989_v23 = vpop.f32.mrf.mxu3 }
  0xbe   : > { %3699 = vst [vmem:[#allocation30_spill] sm:$0xff] %v2989_v23  ;;  %v792_v23 = vsel %vm754_vm2, %v790_v39, %v791_v2 }
  0xbf   : > { %v3010_v3 = vpack.c.bf16 %v794_v56, %v792_v23  ;;  %v796_v56 = vrot.slane %v2523_v13, 2 }
  0xc0   : > { %v2997_v62 = vpop.f32.mrf.mxu0 }
  0xc1   : > { %3701 = vst [vmem:[#allocation32_spill] sm:$0xff] %v3010_v3 }
  0xc4   : > { %v3004_v57 = vpop.f32.mrf.mxu2  ;;  %v3006_v58 = vpop.f32.mrf.mxu1 }
  0xc5   : > { %v3008_v10 = vpop.f32.mrf.mxu3 }
  0xc6   : > { %3700 = vst [vmem:[#allocation31_spill] sm:$0xff] %v3008_v10 }
  0xc7   : > { %2197 = vmatmul.msk.bf16.gmra.mxu1 %vm467_vm1, %v2967_v31  ;;  %v799_v31 = vsel %vm754_vm2, %v796_v56, %v798_v38  ;;  %v803_v38 = vrot.slane %v2591_v47, 2 }
  0xc8   : > { %v3018_v20 = vpop.f32.mrf.mxu0 }
  0xc9   : > { %2225 = vmatmul.msk.bf16.gmra.mxu2 %vm467_vm1, %v3010_v3  ;;  %v797_v3 = vsel %vm754_vm2, %v795_v33, %v796_v56  ;;  %v800_v33 = vrot.slane %v2585_v45, 2  ;;  %v801_v56 = vrot.slane %v2588_v46, 2  ;;  %v3071_v45 = vpack.c.bf16 %v2671_v36, %v2668_v35 }
  0xca   : > { %2253 = vmatmul.msk.bf16.gmra.mxu3 %vm467_vm1, %v3014_v44 }
  0xcb   : > { %2281 = vmatmul.msk.bf16.gmra.mxu0 %vm467_vm1, %v2562_v34  ;;  %v802_v41 = vsel %vm754_vm2, %v800_v33, %v801_v56 }
  0xcc   : > { %v3026_v23 = vpop.f32.mrf.mxu2  ;;  %v3028_v39 = vpop.f32.mrf.mxu1 }
  0xcd   : > { %v3030_v2 = vpop.f32.mrf.mxu3 }
  0xce   : > { %3703 = vst [vmem:[#allocation34_spill] sm:$0xff] %v3030_v2  ;;  %v3044_v2 = vpack.c.bf16 %v799_v31, %v797_v3 }
  0xd0   : > { %v3035_v10 = vpop.f32.mrf.mxu0  ;;  %3706 = vst [vmem:[#allocation37_spill] sm:$0xff] %v3044_v2 }
  0xd4   : > { %v3039_v24 = vpop.f32.mrf.mxu2  ;;  %v674_v34 = vpop.f32.mrf.mxu1 }
  0xd5   : > { %3704 = vst [vmem:[#allocation35_spill] sm:$0xff] %v3039_v24  ;;  %v3041_v30 = vpop.f32.mrf.mxu3  ;;  %v675_v16 = vadd.f32 %v674_v34, %v2901_v6 }
  0xd6   : > { %3705 = vst [vmem:[#allocation36_spill] sm:$0xff] %v3041_v30 }
  0xd7   : > { %2198 = vmatmul.msk.bf16.gmra.mxu1 %vm467_vm1, %v3014_v44 }
  0xd8   : > { %v1251_v13 = vpop.f32.mrf.mxu0 }
  0xd9   : > { %2226 = vmatmul.msk.bf16.gmra.mxu2 %vm467_vm1, %v3044_v2 }
  0xda   : > { %2254 = vmatmul.msk.bf16.gmra.mxu3 %vm467_vm1, %v3048_v12 }
  0xdb   : > { %2282 = vmatmul.msk.bf16.gmra.mxu0 %vm467_vm1, %v2644_v21  ;;  %v804_v21 = vsel %vm754_vm2, %v801_v56, %v803_v38 }
  0xdc   : > { %v957_v15 = vpop.f32.mrf.mxu2  ;;  %v676_v34 = vpop.f32.mrf.mxu1 }
  0xdd   : > { %v1037_v3 = vadd.f32 %v957_v15, %v675_v16  ;;  %v1099_v6 = vpop.f32.mrf.mxu3  ;;  %v677_v31 = vadd.f32 %v676_v34, %v2918_v25  ;;  %v3067_v34 = vpack.c.bf16 %v804_v21, %v802_v41 }
  0xdf   : > { %v1179_v30 = vadd.f32 %v1099_v6, %v1037_v3  ;;  %v805_v3 = vrot.slane %v2668_v35, 2  ;;  %v806_v6 = vrot.slane %v2671_v36, 2  ;;  %v3096_v35 = vpack.c.bf16 %v2743_v0, %v2738_v63 }
  0xe0   : > { %v1253_v2 = vpop.f32.mrf.mxu0 }
  0xe1   : > { %v3062_v44 = vadd.f32 %v1251_v13, %v1179_v30  ;;  %v808_v13 = vrot.slane %v2674_v37, 2  ;;  %v807_v33 = vsel %vm754_vm2, %v805_v3, %v806_v6  ;;  %v810_v3 = vrot.slane %v2738_v63, 2  ;;  %v3709_v63 = vld [vmem:[#allocation3_spill] sm:$0xff] }
  0xe3   : > { %v809_v56 = vsel %vm754_vm2, %v806_v6, %v808_v13  ;;  %v813_v13 = vrot.slane %v2746_v1, 2  ;;  %v811_v6 = vrot.slane %v2743_v0, 2  ;;  %v3708_v1 = vld [vmem:[#allocation2_spill] sm:$0xff] }
  0xe4   : > { %v959_v24 = vpop.f32.mrf.mxu2  ;;  %v679_v54 = vpop.f32.mrf.mxu1 }
  0xe5   : > { %v1038_v16 = vadd.f32 %v959_v24, %v677_v31  ;;  %v1101_v15 = vpop.f32.mrf.mxu3  ;;  %v680_v25 = vadd.f32 %v679_v54, %v2936_v42 }
  0xe7   : > { %v1180_v46 = vadd.f32 %v1101_v15, %v1038_v16  ;;  %2199 = vmatmul.msk.bf16.gmra.mxu1 %vm467_vm1, %v3048_v12 }
  0xe8   : > { %v1256_v47 = vpop.f32.mrf.mxu0 }
  0xe9   : > { %2227 = vmatmul.msk.bf16.gmra.mxu2 %vm467_vm1, %v3067_v34  ;;  %v3077_v30 = vadd.f32 %v1253_v2, %v1180_v46 }
  0xea   : > { %2255 = vmatmul.msk.bf16.gmra.mxu3 %vm467_vm1, %v3071_v45 }
  0xeb   : > { %2283 = vmatmul.msk.bf16.gmra.mxu0 %vm467_vm1, %v2716_v22 }
  0xec   : > { %v962_v21 = vpop.f32.mrf.mxu2  ;;  %v681_v54 = vpop.f32.mrf.mxu1 }
  0xed   : > { %v1039_v41 = vadd.f32 %v962_v21, %v680_v25  ;;  %v1104_v42 = vpop.f32.mrf.mxu3  ;;  %v682_v24 = vadd.f32 %v681_v54, %v2953_v50  ;;  %v3092_v21 = vpack.c.bf16 %v809_v56, %v807_v33  ;;  %v812_v56 = vsel %vm754_vm2, %v810_v3, %v811_v6 }
  0xef   : > { %v1181_v2 = vadd.f32 %v1104_v42, %v1039_v41 }
  0xf0   : > { %v1258_v31 = vpop.f32.mrf.mxu0 }
  0xf1   : > { %v3087_v38 = vadd.f32 %v1256_v47, %v1181_v2 }
  0xf4   : > { %v964_v16 = vpop.f32.mrf.mxu2  ;;  %v684_v15 = vpop.f32.mrf.mxu1 }
  0xf5   : > { %v1040_v25 = vadd.f32 %v964_v16, %v682_v24  ;;  %v1106_v46 = vpop.f32.mrf.mxu3  ;;  %v685_v50 = vadd.f32 %v684_v15, %v2971_v32  ;;  %v814_v16 = vsel %vm754_vm2, %v811_v6, %v813_v13  ;;  %v3712_v6 = vld [vmem:[#allocation4_spill] sm:$0xff] }
  0xf7   : > { %v1182_v36 = vadd.f32 %v1106_v46, %v1040_v25  ;;  %2200 = vmatmul.msk.bf16.gmra.mxu1 %vm467_vm1, %v3071_v45 }
  0xf8   : > { %v1261_v37 = vpop.f32.mrf.mxu0 }
  0xf9   : > { %2228 = vmatmul.msk.bf16.gmra.mxu2 %vm467_vm1, %v3092_v21  ;;  %v3102_v47 = vadd.f32 %v1258_v31, %v1182_v36  ;;  %v3117_v36 = vpack.c.bf16 %v814_v16, %v812_v56  ;;  %v815_v56 = vrot.slane %v3708_v1, 2  ;;  %v816_v16 = vrot.slane %v3709_v63, 2 }
  0xfa   : > { %2256 = vmatmul.msk.bf16.gmra.mxu3 %vm467_vm1, %v3096_v35 }
  0xfb   : > { %2284 = vmatmul.msk.bf16.gmra.mxu0 %vm467_vm1, %v2800_v5 }
  0xfc   : > { %v967_v32 = vpop.f32.mrf.mxu2  ;;  %v686_v54 = vpop.f32.mrf.mxu1 }
  0xfd   : > { %v1041_v41 = vadd.f32 %v967_v32, %v685_v50  ;;  %v1109_v42 = vpop.f32.mrf.mxu3  ;;  %v687_v24 = vadd.f32 %v686_v54, %v2997_v62  ;;  %v3121_v32 = vpack.c.bf16 %v3709_v63, %v3708_v1 }
  0xff   : > { %v1183_v2 = vadd.f32 %v1109_v42, %v1041_v41 }
 0x100   : > { %v1263_v31 = vpop.f32.mrf.mxu0 }
 0x101   : > { %v3112_v33 = vadd.f32 %v1261_v37, %v1183_v2  ;;  %v818_v2 = vrot.slane %v3712_v6, 2 }
 0x103   : > { %3707 = vst [vmem:[#allocation38_spill] sm:$0xff] %v3112_v33 }
 0x104   : > { %v969_v15 = vpop.f32.mrf.mxu2  ;;  %v689_v25 = vpop.f32.mrf.mxu1 }
 0x105   : > { %v1042_v46 = vadd.f32 %v969_v15, %v687_v24  ;;  %v1111_v50 = vpop.f32.mrf.mxu3  ;;  %v690_v62 = vadd.f32 %v689_v25, %v3018_v20  ;;  %v3711_v20 = vld [vmem:[#allocation6_spill] sm:$0xff] }
 0x107   : > { %v1184_v0 = vadd.f32 %v1111_v50, %v1042_v46  ;;  %2201 = vmatmul.msk.bf16.gmra.mxu1 %vm467_vm1, %v3096_v35  ;;  %v817_v46 = vsel %vm754_vm2, %v815_v56, %v816_v16  ;;  %v819_v50 = vsel %vm754_vm2, %v816_v16, %v818_v2 }
 0x108   : > { %v1266_v37 = vpop.f32.mrf.mxu0  ;;  %v3141_v33 = vpack.c.bf16 %v819_v50, %v817_v46 }
 0x109   : > { %2229 = vmatmul.msk.bf16.gmra.mxu2 %vm467_vm1, %v3117_v36  ;;  %v3127_v54 = vadd.f32 %v1263_v31, %v1184_v0 }
 0x10a   : > { %2257 = vmatmul.msk.bf16.gmra.mxu3 %vm467_vm1, %v3121_v32  ;;  %3714 = vst [vmem:[#allocation6_spill] sm:$0xff] %v3141_v33 }
 0x10b   : > { %3710 = vst [vmem:[#allocation2_spill] sm:$0xff] %v3127_v54  ;;  %2285 = vmatmul.msk.bf16.gmra.mxu0 %vm467_vm1, %v3711_v20 }
 0x10c   : > { %v972_v41 = vpop.f32.mrf.mxu2  ;;  %v691_v42 = vpop.f32.mrf.mxu1 }
 0x10d   : > { %v1043_v24 = vadd.f32 %v972_v41, %v690_v62  ;;  %v1114_v13 = vpop.f32.mrf.mxu3  ;;  %v692_v3 = vadd.f32 %v691_v42, %v3035_v10  ;;  %v3715_v10 = vld [vmem:[#allocation7_spill] sm:$0xff]  ;;  %v3716_v42 = vld [vmem:[#allocation8_spill] sm:$0xff] }
 0x10e   : > { %v3145_v6 = vpack.c.bf16 %v3716_v42, %v3715_v10  ;;  %v820_v50 = vrot.slane %v3715_v10, 2  ;;  %v3722_v10 = vld [vmem:[#allocation13_spill] sm:$0xff] }
 0x10f   : > { %v1185_v31 = vadd.f32 %v1114_v13, %v1043_v24  ;;  %v3718_v13 = vld [vmem:[#allocation11_spill] sm:$0xff] }
 0x110   : > { %v1268_v15 = vpop.f32.mrf.mxu0 }
 0x111   : > { %v3137_v25 = vadd.f32 %v1266_v37, %v1185_v31  ;;  %v3719_v31 = vld [vmem:[#allocation9_spill] sm:$0xff] }
 0x112   : > { %v823_v46 = vrot.slane %v3719_v31, 2  ;;  %v3721_v31 = vld [vmem:[#allocation12_spill] sm:$0xff] }
 0x113   : > { %3713 = vst [vmem:[#allocation3_spill] sm:$0xff] %v3137_v25 }
 0x114   : > { %v974_v0 = vpop.f32.mrf.mxu2  ;;  %v694_v54 = vpop.f32.mrf.mxu1 }
 0x115   : > { %v1044_v62 = vadd.f32 %v974_v0, %v692_v3  ;;  %v1116_v41 = vpop.f32.mrf.mxu3  ;;  %v695_v24 = vadd.f32 %v694_v54, %v2891_v52  ;;  %v821_v0 = vrot.slane %v3716_v42, 2 }
 0x117   : > { %v1186_v1 = vadd.f32 %v1116_v41, %v1044_v62  ;;  %2202 = vmatmul.msk.bf16.gmra.mxu1 %vm467_vm1, %v3121_v32  ;;  %v824_v52 = vsel %vm754_vm2, %v821_v0, %v823_v46 }
 0x118   : > { %v1271_v63 = vpop.f32.mrf.mxu0 }
 0x119   : > { %2230 = vmatmul.msk.bf16.gmra.mxu2 %vm467_vm1, %v3141_v33  ;;  %v3151_v37 = vadd.f32 %v1268_v15, %v1186_v1  ;;  %v822_v1 = vsel %vm754_vm2, %v820_v50, %v821_v0  ;;  %v3170_v33 = vpack.c.bf16 %v3722_v10, %v3721_v31  ;;  %v3725_v0 = vld [vmem:[#allocation14_spill] sm:$0xff] }
 0x11a   : > { %2258 = vmatmul.msk.bf16.gmra.mxu3 %vm467_vm1, %v3145_v6 }
 0x11b   : > { %3717 = vst [vmem:[#allocation4_spill] sm:$0xff] %v3151_v37  ;;  %2286 = vmatmul.msk.bf16.gmra.mxu0 %vm467_vm1, %v3718_v13  ;;  %v3166_v13 = vpack.c.bf16 %v824_v52, %v822_v1  ;;  %v825_v1 = vrot.slane %v3721_v31, 2  ;;  %v826_v52 = vrot.slane %v3722_v10, 2  ;;  %v3729_v31 = vld [vmem:[#allocation18_spill] sm:$0xff] }
 0x11c   : > { %v977_v3 = vpop.f32.mrf.mxu2  ;;  %v696_v2 = vpop.f32.mrf.mxu1 }
 0x11d   : > { %v1045_v56 = vadd.f32 %v977_v3, %v695_v24  ;;  %v1119_v16 = vpop.f32.mrf.mxu3  ;;  %v697_v54 = vadd.f32 %v696_v2, %v2911_v8 }
 0x11f   : > { %v1187_v15 = vadd.f32 %v1119_v16, %v1045_v56 }
 0x120   : > { %v1273_v62 = vpop.f32.mrf.mxu0 }
 0x121   : > { %v3161_v41 = vadd.f32 %v1271_v63, %v1187_v15  ;;  %v828_v15 = vrot.slane %v3725_v0, 2  ;;  %v3728_v0 = vld [vmem:[#allocation17_spill] sm:$0xff] }
 0x123   : > { %3720 = vst [vmem:[#allocation7_spill] sm:$0xff] %v3161_v41 }
 0x124   : > { %v979_v37 = vpop.f32.mrf.mxu2  ;;  %v699_v25 = vpop.f32.mrf.mxu1 }
 0x125   : > { %v1046_v24 = vadd.f32 %v979_v37, %v697_v54  ;;  %v1121_v3 = vpop.f32.mrf.mxu3  ;;  %v700_v8 = vadd.f32 %v699_v25, %v2924_v29  ;;  %v3724_v37 = vld [vmem:[#allocation16_spill] sm:$0xff]  ;;  %v829_v29 = vsel %vm754_vm2, %v826_v52, %v828_v15  ;;  %v3731_v15 = vld [vmem:[#allocation19_spill] sm:$0xff] }
 0x127   : > { %v1188_v42 = vadd.f32 %v1121_v3, %v1046_v24  ;;  %2203 = vmatmul.msk.bf16.gmra.mxu1 %vm467_vm1, %v3145_v6  ;;  %v827_v3 = vsel %vm754_vm2, %v825_v1, %v826_v52  ;;  %v833_v1 = vrot.slane %v3731_v15, 2 }
 0x128   : > { %v1276_v63 = vpop.f32.mrf.mxu0  ;;  %v3191_v41 = vpack.c.bf16 %v829_v29, %v827_v3  ;;  %v830_v3 = vrot.slane %v3728_v0, 2  ;;  %v831_v29 = vrot.slane %v3729_v31, 2 }
 0x129   : > { %2231 = vmatmul.msk.bf16.gmra.mxu2 %vm467_vm1, %v3166_v13  ;;  %v3176_v56 = vadd.f32 %v1273_v62, %v1188_v42 }
 0x12a   : > { %2259 = vmatmul.msk.bf16.gmra.mxu3 %vm467_vm1, %v3170_v33  ;;  %3727 = vst [vmem:[#allocation12_spill] sm:$0xff] %v3191_v41 }
 0x12b   : > { %3723 = vst [vmem:[#allocation8_spill] sm:$0xff] %v3176_v56  ;;  %2287 = vmatmul.msk.bf16.gmra.mxu0 %vm467_vm1, %v3724_v37  ;;  %v3195_v37 = vpack.c.bf16 %v3729_v31, %v3728_v0  ;;  %v832_v0 = vsel %vm754_vm2, %v830_v3, %v831_v29  ;;  %v834_v31 = vsel %vm754_vm2, %v831_v29, %v833_v1 }
 0x12c   : > { %v982_v2 = vpop.f32.mrf.mxu2  ;;  %v701_v16 = vpop.f32.mrf.mxu1 }
 0x12d   : > { %v1047_v46 = vadd.f32 %v982_v2, %v700_v8  ;;  %v1124_v50 = vpop.f32.mrf.mxu3  ;;  %v702_v25 = vadd.f32 %v701_v16, %v2946_v61 }
 0x12f   : > { %v1189_v62 = vadd.f32 %v1124_v50, %v1047_v46 }
 0x130   : > { %v1278_v54 = vpop.f32.mrf.mxu0 }
 0x131   : > { %v3186_v24 = vadd.f32 %v1276_v63, %v1189_v62 }
 0x133   : > { %3726 = vst [vmem:[#allocation9_spill] sm:$0xff] %v3186_v24 }
 0x134   : > { %v984_v42 = vpop.f32.mrf.mxu2  ;;  %v704_v56 = vpop.f32.mrf.mxu1 }
 0x135   : > { %v1048_v8 = vadd.f32 %v984_v42, %v702_v25  ;;  %v1126_v2 = vpop.f32.mrf.mxu3  ;;  %v705_v16 = vadd.f32 %v704_v56, %v2959_v51  ;;  %v3215_v25 = vld [vmem:[%s2505_s6 + $0x188] sm:$0xff]  ;;  %v3218_v42 = vld [vmem:[%s2505_s6 + $0x190] sm:$0x3] }
 0x137   : > { %v1190_v10 = vadd.f32 %v1126_v2, %v1048_v8  ;;  %2204 = vmatmul.msk.bf16.gmra.mxu1 %vm467_vm1, %v3170_v33  ;;  %v1215_v2 = vrot.slane %v3215_v25, 1 }
 0x138   : > { %v1281_v63 = vpop.f32.mrf.mxu0 }
 0x139   : > { %2232 = vmatmul.msk.bf16.gmra.mxu2 %vm467_vm1, %v3191_v41  ;;  %v3201_v61 = vadd.f32 %v1278_v54, %v1190_v10  ;;  %v3212_v54 = vld [vmem:[%s2505_s6 + $0x180] sm:$0xff]  ;;  %v1217_v10 = vrot.slane %v3218_v42, 1 }
 0x13a   : > { %2260 = vmatmul.msk.bf16.gmra.mxu3 %vm467_vm1, %v3195_v37  ;;  %v1214_v8 = vrot.slane %v3212_v54, 1 }
 0x13b   : > { %3730 = vst [vmem:[#allocation13_spill] sm:$0xff] %v3201_v61  ;;  %2288 = vmatmul.msk.bf16.gmra.mxu0 %vm467_vm1, %v2804_v11  ;;  %v1218_v41 = vsel %vm321_vm0, %v1215_v2, %v1217_v10 }
 0x13c   : > { %v987_v46 = vpop.f32.mrf.mxu2  ;;  %v706_v50 = vpop.f32.mrf.mxu1 }
 0x13d   : > { %v1049_v52 = vadd.f32 %v987_v46, %v705_v16  ;;  %v1129_v62 = vpop.f32.mrf.mxu3  ;;  %v707_v46 = vadd.f32 %v706_v50, %v2984_v59 }
 0x13f   : > { %v1191_v51 = vadd.f32 %v1129_v62, %v1049_v52  ;;  %v3228_v52 = vpack.c.bf16 %v834_v31, %v832_v0  ;;  %v1216_v62 = vsel %vm321_vm0, %v1214_v8, %v1215_v2 }
 0x140   : > { %v1283_v56 = vpop.f32.mrf.mxu0  ;;  %v3238_v1 = vpack.c.bf16 %v1218_v41, %v1216_v62 }
 0x141   : > { %v3223_v16 = vadd.f32 %v1281_v63, %v1191_v51  ;;  %v3234_v63 = vpack.c.bf16 %v3215_v25, %v3212_v54 }
 0x144   : > { %v989_v15 = vpop.f32.mrf.mxu2  ;;  %v709_v61 = vpop.f32.mrf.mxu1 }
 0x145   : > { %v1050_v24 = vadd.f32 %v989_v15, %v707_v46  ;;  %v1131_v11 = vpop.f32.mrf.mxu3  ;;  %v710_v3 = vadd.f32 %v709_v61, %v3006_v58 }
 0x147   : > { %v1192_v51 = vadd.f32 %v1131_v11, %v1050_v24  ;;  %2205 = vmatmul.msk.bf16.gmra.mxu1 %vm467_vm1, %v3195_v37 }
 0x148   : > { %v1286_v59 = vpop.f32.mrf.mxu0 }
 0x149   : > { %2233 = vmatmul.msk.bf16.gmra.mxu2 %vm467_vm1, %v3228_v52  ;;  %v3242_v50 = vadd.f32 %v1283_v56, %v1192_v51 }
 0x14a   : > { %2261 = vmatmul.msk.bf16.gmra.mxu3 %vm467_vm1, %v3234_v63 }
 0x14b   : > { %2289 = vmatmul.msk.bf16.gmra.mxu0 %vm467_vm1, %v3238_v1 }
 0x14c   : > { %v992_v11 = vpop.f32.mrf.mxu2  ;;  %v711_v24 = vpop.f32.mrf.mxu1 }
 0x14d   : > { %v1051_v29 = vadd.f32 %v992_v11, %v710_v3  ;;  %v1134_v8 = vpop.f32.mrf.mxu3  ;;  %v712_v0 = vadd.f32 %v711_v24, %v3028_v39 }
 0x14f   : > { %v1193_v41 = vadd.f32 %v1134_v8, %v1051_v29 }
 0x150   : > { %v1288_v2 = vpop.f32.mrf.mxu0 }
 0x151   : > { %v3249_v10 = vadd.f32 %v1286_v59, %v1193_v41 }
 0x154   : > { %v994_v56 = vpop.f32.mrf.mxu2  ;;  %v714_v31 = vpop.f32.mrf.mxu1 }
 0x155   : > { %v1052_v46 = vadd.f32 %v994_v56, %v712_v0  ;;  %v1136_v15 = vpop.f32.mrf.mxu3  ;;  %v715_v51 = vadd.f32 %v714_v31, %v2909_v7 }
 0x157   : > { %v1194_v62 = vadd.f32 %v1136_v15, %v1052_v46  ;;  %2302 = vmatmul.msk.bf16.vlgmr.msra.gmra.mxu1 %vm467_vm1, %v2835_v4 }
 0x158   : > { %v1291_v58 = vpop.f32.mrf.mxu0 }
 0x159   : > { %2330 = vmatmul.msk.bf16.vlgmr.msra.gmra.mxu2 %vm467_vm1, %v2839_v19  ;;  %v3256_v61 = vadd.f32 %v1288_v2, %v1194_v62 }
 0x15a   : > { %2358 = vmatmul.msk.bf16.vlgmr.msra.gmra.mxu3 %vm467_vm1, %v2724_v49 }
 0x15b   : > { %2386 = vmatmul.msk.bf16.vlgmr.msra.gmra.mxu0 %vm467_vm1, %v2853_v27 }
 0x15c   : > { %v997_v39 = vpop.f32.mrf.mxu2  ;;  %v716_v59 = vpop.f32.mrf.mxu1 }
 0x15d   : > { %v1053_v3 = vadd.f32 %v997_v39, %v715_v51  ;;  %v1139_v11 = vpop.f32.mrf.mxu3  ;;  %v717_v19 = vadd.f32 %v716_v59, %v2922_v60 }
 0x15f   : > { %v1195_v24 = vadd.f32 %v1139_v11, %v1053_v3 }
 0x160   : > { %v1293_v4 = vpop.f32.mrf.mxu0 }
 0x161   : > { %v3263_v29 = vadd.f32 %v1291_v58, %v1195_v24 }
 0x164   : > { %v999_v8 = vpop.f32.mrf.mxu2  ;;  %v719_v41 = vpop.f32.mrf.mxu1 }
 0x165   : > { %v1054_v2 = vadd.f32 %v999_v8, %v717_v19  ;;  %v1141_v0 = vpop.f32.mrf.mxu3  ;;  %v720_v31 = vadd.f32 %v719_v41, %v2944_v43 }
 0x167   : > { %v1196_v49 = vadd.f32 %v1141_v0, %v1054_v2  ;;  %2303 = vmatmul.msk.bf16.gmra.mxu1 %vm467_vm1, %v2853_v27 }
 0x168   : > { %v1296_v7 = vpop.f32.mrf.mxu0 }
 0x169   : > { %2331 = vmatmul.msk.bf16.gmra.mxu2 %vm467_vm1, %v2857_v9  ;;  %v3270_v56 = vadd.f32 %v1293_v4, %v1196_v49 }
 0x16a   : > { %2359 = vmatmul.msk.bf16.gmra.mxu3 %vm467_vm1, %v2808_v40 }
 0x16b   : > { %2387 = vmatmul.msk.bf16.gmra.mxu0 %vm467_vm1, %v2872_v14 }
 0x16c   : > { %v1002_v60 = vpop.f32.mrf.mxu2  ;;  %v721_v46 = vpop.f32.mrf.mxu1 }
 0x16d   : > { %v1055_v15 = vadd.f32 %v1002_v60, %v720_v31  ;;  %v1144_v62 = vpop.f32.mrf.mxu3  ;;  %v722_v9 = vadd.f32 %v721_v46, %v2957_v48 }
 0x16f   : > { %v1197_v58 = vadd.f32 %v1144_v62, %v1055_v15 }
 0x170   : > { %v1298_v27 = vpop.f32.mrf.mxu0 }
 0x171   : > { %v3277_v51 = vadd.f32 %v1296_v7, %v1197_v58 }
 0x174   : > { %v1004_v39 = vpop.f32.mrf.mxu2  ;;  %v724_v59 = vpop.f32.mrf.mxu1 }
 0x175   : > { %v1056_v3 = vadd.f32 %v1004_v39, %v722_v9  ;;  %v1146_v11 = vpop.f32.mrf.mxu3  ;;  %v725_v4 = vadd.f32 %v724_v59, %v2982_v55 }
 0x177   : > { %v1198_v40 = vadd.f32 %v1146_v11, %v1056_v3  ;;  %2304 = vmatmul.msk.bf16.gmra.mxu1 %vm467_vm1, %v2872_v14  ;;  %v3733_v3 = vld [vmem:[#allocation35_spill] sm:$0xff] }
 0x178   : > { %v1301_v43 = vpop.f32.mrf.mxu0 }
 0x179   : > { %2332 = vmatmul.msk.bf16.gmra.mxu2 %vm467_vm1, %v2876_v18  ;;  %v3284_v24 = vadd.f32 %v1298_v27, %v1198_v40 }
 0x17a   : > { %2360 = vmatmul.msk.bf16.gmra.mxu3 %vm467_vm1, %v2549_v26 }
 0x17b   : > { %2388 = vmatmul.msk.bf16.gmra.mxu0 %vm467_vm1, %v2893_v53 }
 0x17c   : > { %v1007_v48 = vpop.f32.mrf.mxu2  ;;  %v726_v19 = vpop.f32.mrf.mxu1 }
 0x17d   : > { %v1057_v8 = vadd.f32 %v1007_v48, %v725_v4  ;;  %v1149_v41 = vpop.f32.mrf.mxu3  ;;  %v727_v18 = vadd.f32 %v726_v19, %v3004_v57  ;;  %v3732_v57 = vld [vmem:[#allocation24_spill] sm:$0xff]  ;;  %v3734_v48 = vld [vmem:[#allocation25_spill] sm:$0xff] }
 0x17f   : > { %v1199_v2 = vadd.f32 %v1149_v41, %v1057_v8  ;;  %v3735_v8 = vld [vmem:[#allocation15_spill] sm:$0xff]  ;;  %v3736_v41 = vld [vmem:[#allocation22_spill] sm:$0xff] }
 0x180   : > { %v1303_v14 = vpop.f32.mrf.mxu0 }
 0x181   : > { %v3291_v0 = vadd.f32 %v1301_v43, %v1199_v2 }
 0x184   : > { %v1009_v49 = vpop.f32.mrf.mxu2  ;;  %v729_v7 = vpop.f32.mrf.mxu1 }
 0x185   : > { %v1058_v31 = vadd.f32 %v1009_v49, %v727_v18  ;;  %v1151_v60 = vpop.f32.mrf.mxu3  ;;  %v730_v15 = vadd.f32 %v729_v7, %v3026_v23 }
 0x187   : > { %v1200_v26 = vadd.f32 %v1151_v60, %v1058_v31  ;;  %2305 = vmatmul.msk.bf16.gmra.mxu1 %vm467_vm1, %v2893_v53 }
 0x188   : > { %v1306_v55 = vpop.f32.mrf.mxu0 }
 0x189   : > { %2333 = vmatmul.msk.bf16.gmra.mxu2 %vm467_vm1, %v2897_v28  ;;  %v3298_v46 = vadd.f32 %v1303_v14, %v1200_v26  ;;  %v3737_v14 = vld [vmem:[#allocation28_spill] sm:$0xff] }
 0x18a   : > { %2361 = vmatmul.msk.bf16.gmra.mxu3 %vm467_vm1, %v2640_v17 }
 0x18b   : > { %2389 = vmatmul.msk.bf16.gmra.mxu0 %vm467_vm1, %v3732_v57 }
 0x18c   : > { %v1012_v62 = vpop.f32.mrf.mxu2  ;;  %v731_v58 = vpop.f32.mrf.mxu1 }
 0x18d   : > { %v1059_v27 = vadd.f32 %v1012_v62, %v730_v15  ;;  %v1154_v9 = vpop.f32.mrf.mxu3  ;;  %v732_v28 = vadd.f32 %v731_v58, %v3733_v3  ;;  %v3738_v15 = vld [vmem:[#allocation23_spill] sm:$0xff]  ;;  %v3739_v3 = vld [vmem:[#allocation29_spill] sm:$0xff] }
 0x18f   : > { %v1201_v39 = vadd.f32 %v1154_v9, %v1059_v27 }
 0x190   : > { %v1308_v53 = vpop.f32.mrf.mxu0 }
 0x191   : > { %v3305_v59 = vadd.f32 %v1306_v55, %v1201_v39 }
 0x194   : > { %v1014_v11 = vpop.f32.mrf.mxu2  ;;  %v734_v40 = vpop.f32.mrf.mxu1 }
 0x195   : > { %v1060_v43 = vadd.f32 %v1014_v11, %v732_v28  ;;  %v1156_v4 = vpop.f32.mrf.mxu3  ;;  %v735_v2 = vadd.f32 %v734_v40, %v3736_v41  ;;  %v3740_v11 = vld [vmem:[#allocation20_spill] sm:$0xff]  ;;  %v3741_v40 = vld [vmem:[#allocation26_spill] sm:$0xff] }
 0x197   : > { %v1202_v17 = vadd.f32 %v1156_v4, %v1060_v43  ;;  %2306 = vmatmul.msk.bf16.gmra.mxu1 %vm467_vm1, %v3732_v57  ;;  %v3742_v4 = vld [vmem:[#allocation32_spill] sm:$0xff] }
 0x198   : > { %v1311_v23 = vpop.f32.mrf.mxu0 }
 0x199   : > { %2334 = vmatmul.msk.bf16.gmra.mxu2 %vm467_vm1, %v3734_v48  ;;  %v3312_v19 = vadd.f32 %v1308_v53, %v1202_v17 }
 0x19a   : > { %2362 = vmatmul.msk.bf16.gmra.mxu3 %vm467_vm1, %v3735_v8 }
 0x19b   : > { %2390 = vmatmul.msk.bf16.gmra.mxu0 %vm467_vm1, %v3737_v14 }
 0x19c   : > { %v1017_v18 = vpop.f32.mrf.mxu2  ;;  %v736_v49 = vpop.f32.mrf.mxu1 }
 0x19d   : > { %v1061_v7 = vadd.f32 %v1017_v18, %v735_v2  ;;  %v1159_v31 = vpop.f32.mrf.mxu3  ;;  %v737_v57 = vadd.f32 %v736_v49, %v3738_v15  ;;  %v3743_v18 = vld [vmem:[#allocation27_spill] sm:$0xff] }
 0x19f   : > { %v1203_v60 = vadd.f32 %v1159_v31, %v1061_v7 }
 0x1a0   : > { %v1313_v26 = vpop.f32.mrf.mxu0 }
 0x1a1   : > { %v3319_v55 = vadd.f32 %v1311_v23, %v1203_v60 }
 0x1a4   : > { %v1019_v62 = vpop.f32.mrf.mxu2  ;;  %v739_v58 = vpop.f32.mrf.mxu1 }
 0x1a5   : > { %v1062_v27 = vadd.f32 %v1019_v62, %v737_v57  ;;  %v1161_v9 = vpop.f32.mrf.mxu3  ;;  %v740_v43 = vadd.f32 %v739_v58, %v3741_v40  ;;  %v3744_v62 = vld [vmem:[#allocation33_spill] sm:$0xff] }
 0x1a7   : > { %v1204_v39 = vadd.f32 %v1161_v9, %v1062_v27  ;;  %2307 = vmatmul.msk.bf16.gmra.mxu1 %vm467_vm1, %v3737_v14  ;;  %v3745_v27 = vld [vmem:[#allocation5_spill] sm:$0xff]  ;;  %v3746_v9 = vld [vmem:[#allocation30_spill] sm:$0xff] }
 0x1a8   : > { %v1316_v53 = vpop.f32.mrf.mxu0 }
 0x1a9   : > { %2335 = vmatmul.msk.bf16.gmra.mxu2 %vm467_vm1, %v3739_v3  ;;  %v3326_v28 = vadd.f32 %v1313_v26, %v1204_v39 }
 0x1aa   : > { %2363 = vmatmul.msk.bf16.gmra.mxu3 %vm467_vm1, %v3740_v11 }
 0x1ab   : > { %2391 = vmatmul.msk.bf16.gmra.mxu0 %vm467_vm1, %v3742_v4 }
 0x1ac   : > { %v1022_v17 = vpop.f32.mrf.mxu2  ;;  %v741_v23 = vpop.f32.mrf.mxu1 }
 0x1ad   : > { %v1063_v48 = vadd.f32 %v1022_v17, %v740_v43  ;;  %v1164_v8 = vpop.f32.mrf.mxu3  ;;  %v742_v49 = vadd.f32 %v741_v23, %v3743_v18 }
 0x1af   : > { %v1205_v41 = vadd.f32 %v1164_v8, %v1063_v48  ;;  %v3748_v48 = vld [vmem:[#allocation31_spill] sm:$0xff] }
 0x1b0   : > { %v1318_v2 = vpop.f32.mrf.mxu0 }
 0x1b1   : > { %v3333_v14 = vadd.f32 %v1316_v53, %v1205_v41  ;;  %v3747_v53 = vld [vmem:[#allocation37_spill] sm:$0xff] }
 0x1b4   : > { %v1024_v7 = vpop.f32.mrf.mxu2  ;;  %v744_v31 = vpop.f32.mrf.mxu1 }
 0x1b5   : > { %v1064_v60 = vadd.f32 %v1024_v7, %v742_v49  ;;  %v1166_v26 = vpop.f32.mrf.mxu3  ;;  %v745_v39 = vadd.f32 %v744_v31, %v3746_v9 }
 0x1b7   : > { %v1206_v15 = vadd.f32 %v1166_v26, %v1064_v60  ;;  %2308 = vmatmul.msk.bf16.gmra.mxu1 %vm467_vm1, %v3742_v4  ;;  %v3749_v26 = vld [vmem:[#allocation10_spill] sm:$0xff] }
 0x1b8   : > { %v1321_v57 = vpop.f32.mrf.mxu0 }
 0x1b9   : > { %2336 = vmatmul.msk.bf16.gmra.mxu2 %vm467_vm1, %v3744_v62  ;;  %v3340_v58 = vadd.f32 %v1318_v2, %v1206_v15  ;;  %v3750_v15 = vld [vmem:[#allocation34_spill] sm:$0xff] }
 0x1ba   : > { %2364 = vmatmul.msk.bf16.gmra.mxu3 %vm467_vm1, %v3745_v27 }
 0x1bb   : > { %2392 = vmatmul.msk.bf16.gmra.mxu0 %vm467_vm1, %v3747_v53 }
 0x1bc   : > { %v1027_v3 = vpop.f32.mrf.mxu2  ;;  %v746_v11 = vpop.f32.mrf.mxu1 }
 0x1bd   : > { %v1065_v40 = vadd.f32 %v1027_v3, %v745_v39  ;;  %v1169_v43 = vpop.f32.mrf.mxu3  ;;  %v747_v8 = vadd.f32 %v746_v11, %v3748_v48 }
 0x1bf   : > { %v1207_v17 = vadd.f32 %v1169_v43, %v1065_v40  ;;  %v3751_v40 = vld [vmem:[#allocation36_spill] sm:$0xff] }
 0x1c0   : > { %v1323_v4 = vpop.f32.mrf.mxu0 }
 0x1c1   : > { %v3347_v23 = vadd.f32 %v1321_v57, %v1207_v17 }
 0x1c4   : > { %v1029_v41 = vpop.f32.mrf.mxu2  ;;  %v749_v2 = vpop.f32.mrf.mxu1 }
 0x1c5   : > { %v1066_v18 = vadd.f32 %v1029_v41, %v747_v8  ;;  %v1171_v49 = vpop.f32.mrf.mxu3  ;;  %v750_v57 = vadd.f32 %v749_v2, %v3750_v15  ;;  %v3378_v15 = vld [vmem:[%s3622_s2] ss:$0 sm:$0xff] }
 0x1c7   : > { %v1208_v7 = vadd.f32 %v1171_v49, %v1066_v18  ;;  %2309 = vmatmul.msk.bf16.gmra.mxu1 %vm467_vm1, %v3747_v53 }
 0x1c8   : > { %v1326_v31 = vpop.f32.mrf.mxu0 }
 0x1c9   : > { %2337 = vmatmul.msk.bf16.gmra.mxu2 %vm467_vm1, %v3048_v12  ;;  %v3354_v60 = vadd.f32 %v1323_v4, %v1208_v7 }
 0x1ca   : > { %2365 = vmatmul.msk.bf16.gmra.mxu3 %vm467_vm1, %v3749_v26 }
 0x1cb   : > { %2393 = vmatmul.msk.bf16.gmra.mxu0 %vm467_vm1, %v3067_v34 }
 0x1cc   : > { %v1032_v62 = vpop.f32.mrf.mxu2  ;;  %v751_v27 = vpop.f32.mrf.mxu1 }
 0x1cd   : > { %v1067_v9 = vadd.f32 %v1032_v62, %v750_v57  ;;  %v1174_v39 = vpop.f32.mrf.mxu3  ;;  %v752_v12 = vadd.f32 %v751_v27, %v3751_v40 }
 0x1cf   : > { %v1209_v3 = vadd.f32 %v1174_v39, %v1067_v9 }
 0x1d0   : > { %v1328_v53 = vpop.f32.mrf.mxu0 }
 0x1d1   : > { %v3361_v11 = vadd.f32 %v1326_v31, %v1209_v3 }
 0x1d4   : > { %v1034_v43 = vpop.f32.mrf.mxu2  ;;  %v1400_v17 = vpop.f32.mrf.mxu1 }
 0x1d5   : > { %v1068_v4 = vadd.f32 %v1034_v43, %v752_v12  ;;  %v1176_v48 = vpop.f32.mrf.mxu3  ;;  %v1480_v18 = vadd.f32 %v1400_v17, %v3062_v44 }
 0x1d7   : > { %v1210_v8 = vadd.f32 %v1176_v48, %v1068_v4  ;;  %2310 = vmatmul.msk.bf16.gmra.mxu1 %vm467_vm1, %v3067_v34 }
 0x1d8   : > { %v1843_v41 = vpop.f32.mrf.mxu0 }
 0x1d9   : > { %2338 = vmatmul.msk.bf16.gmra.mxu2 %vm467_vm1, %v3071_v45  ;;  %v3368_v2 = vadd.f32 %v1328_v53, %v1210_v8 }
 0x1da   : > { %2366 = vmatmul.msk.bf16.gmra.mxu3 %vm467_vm1, %v2716_v22  ;;  %v3383_v22 = vld [vmem:[%s3623_s3] ss:$0 sm:$0xff] }
 0x1db   : > { %2394 = vmatmul.msk.bf16.gmra.mxu0 %vm467_vm1, %v3092_v21 }
 0x1dc   : > { %v1542_v49 = vpop.f32.mrf.mxu2  ;;  %v1402_v7 = vpop.f32.mrf.mxu1 }
 0x1dd   : > { %v1622_v31 = vadd.f32 %v1542_v49, %v1480_v18  ;;  %v1694_v26 = vpop.f32.mrf.mxu3  ;;  %v1481_v62 = vadd.f32 %v1402_v7, %v3077_v30 }
 0x1df   : > { %v1774_v34 = vadd.f32 %v1694_v26, %v1622_v31 }
 0x1e0   : > { %v1845_v44 = vpop.f32.mrf.mxu0 }
 0x1e1   : > { %v1923_v45 = vadd.f32 %v1843_v41, %v1774_v34 }
 0x1e3   : > { %v1959_v57 = vmul.f32 %v3378_v15, %v1923_v45 }
 0x1e4   : > { %v1544_v27 = vpop.f32.mrf.mxu2  ;;  %v1405_v9 = vpop.f32.mrf.mxu1 }
 0x1e5   : > { %v1995_v39 = vadd.f32 %v3383_v22, %v1959_v57  ;;  %v1623_v3 = vadd.f32 %v1544_v27, %v1481_v62  ;;  %v1696_v53 = vpop.f32.mrf.mxu3  ;;  %v1482_v4 = vadd.f32 %v1405_v9, %v3087_v38 }
 0x1e7   : > { %v2027_v40 = vmax.f32 %v1995_v39, 0.0  ;;  %v1775_v12 = vadd.f32 %v1696_v53, %v1623_v3  ;;  %2311 = vmatmul.msk.bf16.gmra.mxu1 %vm467_vm1, %v3092_v21  ;;  %v3752_v3 = vld [vmem:[#allocation38_spill] sm:$0xff] }
 0x1e8   : > { %v1848_v43 = vpop.f32.mrf.mxu0 }
 0x1e9   : > { %2059 = vst.msk [vmem:[%s3392_s17] sm:$0xff] %vm467_vm1, %v2027_v40  ;;  %v1924_v30 = vadd.f32 %v1845_v44, %v1775_v12  ;;  %2339 = vmatmul.msk.bf16.gmra.mxu2 %vm467_vm1, %v3096_v35  ;;  %v3753_v40 = vld [vmem:[#allocation6_spill] sm:$0xff] }
 0x1ea   : > { %2367 = vmatmul.msk.bf16.gmra.mxu3 %vm467_vm1, %v2800_v5 }
 0x1eb   : > { %v1960_v17 = vmul.f32 %v3378_v15, %v1924_v30  ;;  %2395 = vmatmul.msk.bf16.gmra.mxu0 %vm467_vm1, %v3117_v36 }
 0x1ec   : > { %v1547_v48 = vpop.f32.mrf.mxu2  ;;  %v1407_v21 = vpop.f32.mrf.mxu1 }
 0x1ed   : > { %v1996_v8 = vadd.f32 %v3383_v22, %v1960_v17  ;;  %v1624_v41 = vadd.f32 %v1547_v48, %v1482_v4  ;;  %v1699_v18 = vpop.f32.mrf.mxu3  ;;  %v1483_v38 = vadd.f32 %v1407_v21, %v3102_v47 }
 0x1ef   : > { %v2028_v49 = vmax.f32 %v1996_v8, 0.0  ;;  %v1776_v7 = vadd.f32 %v1699_v18, %v1624_v41  ;;  %v3754_v8 = vld [vmem:[#allocation2_spill] sm:$0xff] }
 0x1f0   : > { %v1850_v5 = vpop.f32.mrf.mxu0 }
 0x1f1   : > { %2060 = vst.msk [vmem:[%s3392_s17 + $0x8] sm:$0xff] %vm467_vm1, %v2028_v49  ;;  %v1925_v35 = vadd.f32 %v1848_v43, %v1776_v7 }
 0x1f3   : > { %v1961_v31 = vmul.f32 %v3378_v15, %v1925_v35 }
 0x1f4   : > { %v1549_v26 = vpop.f32.mrf.mxu2  ;;  %v1410_v34 = vpop.f32.mrf.mxu1 }
 0x1f5   : > { %v1997_v45 = vadd.f32 %v3383_v22, %v1961_v31  ;;  %v1625_v44 = vadd.f32 %v1549_v26, %v1483_v38  ;;  %v1701_v57 = vpop.f32.mrf.mxu3  ;;  %v1484_v53 = vadd.f32 %v1410_v34, %v3752_v3 }
 0x1f7   : > { %v2029_v62 = vmax.f32 %v1997_v45, 0.0  ;;  %v1777_v27 = vadd.f32 %v1701_v57, %v1625_v44  ;;  %2312 = vmatmul.msk.bf16.gmra.mxu1 %vm467_vm1, %v3117_v36  ;;  %v3755_v45 = vld [vmem:[#allocation11_spill] sm:$0xff] }
 0x1f8   : > { %v1853_v39 = vpop.f32.mrf.mxu0  ;;  %v3756_v57 = vld [vmem:[#allocation3_spill] sm:$0xff] }
 0x1f9   : > { %2061 = vst.msk [vmem:[%s3392_s17 + $0x10] sm:$0xff] %vm467_vm1, %v2029_v62  ;;  %v1926_v9 = vadd.f32 %v1850_v5, %v1777_v27  ;;  %2340 = vmatmul.msk.bf16.gmra.mxu2 %vm467_vm1, %v3121_v32 }
 0x1fa   : > { %2368 = vmatmul.msk.bf16.gmra.mxu3 %vm467_vm1, %v3711_v20 }
 0x1fb   : > { %v1962_v47 = vmul.f32 %v3378_v15, %v1926_v9  ;;  %2396 = vmatmul.msk.bf16.gmra.mxu0 %vm467_vm1, %v3753_v40 }
 0x1fc   : > { %v1552_v12 = vpop.f32.mrf.mxu2  ;;  %v1412_v36 = vpop.f32.mrf.mxu1 }
 0x1fd   : > { %v1998_v30 = vadd.f32 %v3383_v22, %v1962_v47  ;;  %v1626_v43 = vadd.f32 %v1552_v12, %v1484_v53  ;;  %v1704_v17 = vpop.f32.mrf.mxu3  ;;  %v1485_v41 = vadd.f32 %v1412_v36, %v3754_v8 }
 0x1ff   : > { %v2030_v4 = vmax.f32 %v1998_v30, 0.0  ;;  %v1778_v48 = vadd.f32 %v1704_v17, %v1626_v43  ;;  %v3757_v30 = vld [vmem:[#allocation4_spill] sm:$0xff] }
 0x200   : > { %v1855_v20 = vpop.f32.mrf.mxu0 }
 0x201   : > { %2062 = vst.msk [vmem:[%s3392_s17 + $0x18] sm:$0xff] %vm467_vm1, %v2030_v4  ;;  %v1927_v32 = vadd.f32 %v1853_v39, %v1778_v48  ;;  %v1363_v48 = vrot.slane %v3212_v54, 2 }
 0x203   : > { %v1963_v21 = vmul.f32 %v3378_v15, %v1927_v32  ;;  %v1364_v32 = vrot.slane %v3215_v25, 2 }
 0x204   : > { %v1554_v18 = vpop.f32.mrf.mxu2  ;;  %v1415_v49 = vpop.f32.mrf.mxu1 }
 0x205   : > { %v1999_v7 = vadd.f32 %v3383_v22, %v1963_v21  ;;  %v1627_v35 = vadd.f32 %v1554_v18, %v1485_v41  ;;  %v1706_v5 = vpop.f32.mrf.mxu3  ;;  %v1486_v62 = vadd.f32 %v1415_v49, %v3756_v57  ;;  %v1366_v49 = vrot.slane %v3218_v42, 2  ;;  %v3759_v42 = vld [vmem:[#allocation7_spill] sm:$0xff] }
 0x206   : > { %v1365_v54 = vsel %vm754_vm2, %v1363_v48, %v1364_v32 }
 0x207   : > { %v2031_v31 = vmax.f32 %v1999_v7, 0.0  ;;  %v1779_v38 = vadd.f32 %v1706_v5, %v1627_v35  ;;  %2313 = vmatmul.msk.bf16.gmra.mxu1 %vm467_vm1, %v3753_v40  ;;  %v1367_v25 = vsel %vm754_vm2, %v1364_v32, %v1366_v49  ;;  %v3758_v5 = vld [vmem:[#allocation16_spill] sm:$0xff]  ;;  %v3762_v32 = vld [vmem:[#allocation21_spill] sm:$0xff] }
 0x208   : > { %v1858_v34 = vpop.f32.mrf.mxu0 }
 0x209   : > { %2063 = vst.msk [vmem:[%s3392_s17 + $0x20] sm:$0xff] %vm467_vm1, %v2031_v31  ;;  %v1928_v26 = vadd.f32 %v1855_v20, %v1779_v38  ;;  %2341 = vmatmul.msk.bf16.gmra.mxu2 %vm467_vm1, %v3145_v6  ;;  %v3461_v31 = vpack.c.bf16 %v1367_v25, %v1365_v54 }
 0x20a   : > { %2369 = vmatmul.msk.bf16.gmra.mxu3 %vm467_vm1, %v3755_v45 }
 0x20b   : > { %v1964_v44 = vmul.f32 %v3378_v15, %v1928_v26  ;;  %2397 = vmatmul.msk.bf16.gmra.mxu0 %vm467_vm1, %v3166_v13  ;;  %v3760_v26 = vld [vmem:[#allocation12_spill] sm:$0xff] }
 0x20c   : > { %v1557_v27 = vpop.f32.mrf.mxu2  ;;  %v1417_v9 = vpop.f32.mrf.mxu1 }
 0x20d   : > { %v2000_v39 = vadd.f32 %v3383_v22, %v1964_v44  ;;  %v1628_v47 = vadd.f32 %v1557_v27, %v1486_v62  ;;  %v1709_v3 = vpop.f32.mrf.mxu3  ;;  %v1487_v43 = vadd.f32 %v1417_v9, %v3757_v30 }
 0x20f   : > { %v2032_v53 = vmax.f32 %v2000_v39, 0.0  ;;  %v1780_v40 = vadd.f32 %v1709_v3, %v1628_v47  ;;  %v3761_v3 = vld [vmem:[#allocation8_spill] sm:$0xff] }
 0x210   : > { %v1860_v12 = vpop.f32.mrf.mxu0 }
 0x211   : > { %2064 = vst.msk [vmem:[%s3392_s17 + $0x28] sm:$0xff] %vm467_vm1, %v2032_v53  ;;  %v1929_v6 = vadd.f32 %v1858_v34, %v1780_v40 }
 0x213   : > { %v1965_v36 = vmul.f32 %v3378_v15, %v1929_v6 }
 0x214   : > { %v1559_v17 = vpop.f32.mrf.mxu2  ;;  %v1420_v4 = vpop.f32.mrf.mxu1 }
 0x215   : > { %v2001_v20 = vadd.f32 %v3383_v22, %v1965_v36  ;;  %v1629_v21 = vadd.f32 %v1559_v17, %v1487_v43  ;;  %v1711_v8 = vpop.f32.mrf.mxu3  ;;  %v1488_v38 = vadd.f32 %v1420_v4, %v3759_v42  ;;  %v3764_v42 = vld [vmem:[#allocation13_spill] sm:$0xff] }
 0x217   : > { %v2033_v41 = vmax.f32 %v2001_v20, 0.0  ;;  %v1781_v18 = vadd.f32 %v1711_v8, %v1629_v21  ;;  %2314 = vmatmul.msk.bf16.gmra.mxu1 %vm467_vm1, %v3166_v13  ;;  %v3763_v21 = vld [vmem:[#allocation9_spill] sm:$0xff] }
 0x218   : > { %v1863_v35 = vpop.f32.mrf.mxu0 }
 0x219   : > { %2065 = vst.msk [vmem:[%s3392_s17 + $0x30] sm:$0xff] %vm467_vm1, %v2033_v41  ;;  %v1930_v7 = vadd.f32 %v1860_v12, %v1781_v18  ;;  %2342 = vmatmul.msk.bf16.gmra.mxu2 %vm467_vm1, %v3170_v33 }
 0x21a   : > { %2370 = vmatmul.msk.bf16.gmra.mxu3 %vm467_vm1, %v3758_v5 }
 0x21b   : > { %v1966_v13 = vmul.f32 %v3378_v15, %v1930_v7  ;;  %2398 = vmatmul.msk.bf16.gmra.mxu0 %vm467_vm1, %v3760_v26 }
 0x21c   : > { %v1562_v34 = vpop.f32.mrf.mxu2  ;;  %v1422_v45 = vpop.f32.mrf.mxu1 }
 0x21d   : > { %v2002_v33 = vadd.f32 %v3383_v22, %v1966_v13  ;;  %v1630_v44 = vadd.f32 %v1562_v34, %v1488_v38  ;;  %v1714_v57 = vpop.f32.mrf.mxu3  ;;  %v1489_v53 = vadd.f32 %v1422_v45, %v3761_v3  ;;  %v250_v3 = vld [vmem:[%s2505_s6 + $0x198] sm:$0xff] }
 0x21f   : > { %v2034_v62 = vmax.f32 %v2002_v33, 0.0  ;;  %v1782_v27 = vadd.f32 %v1714_v57, %v1630_v44 }
 0x220   : > { %v1865_v39 = vpop.f32.mrf.mxu0 }
 0x221   : > { %2066 = vst.msk [vmem:[%s3392_s17 + $0x38] sm:$0xff] %vm467_vm1, %v2034_v62  ;;  %v1931_v9 = vadd.f32 %v1863_v35, %v1782_v27 }
 0x223   : > { %v1967_v47 = vmul.f32 %v3378_v15, %v1931_v9 }
 0x224   : > { %v1564_v40 = vpop.f32.mrf.mxu2  ;;  %v1425_v6 = vpop.f32.mrf.mxu1 }
 0x225   : > { %v2003_v12 = vadd.f32 %v3383_v22, %v1967_v47  ;;  %v1631_v36 = vadd.f32 %v1564_v40, %v1489_v53  ;;  %v1716_v30 = vpop.f32.mrf.mxu3  ;;  %v1490_v8 = vadd.f32 %v1425_v6, %v3763_v21  ;;  %v251_v40 = vld [vmem:[%s2505_s6 + $0x1a0] sm:$0xff]  ;;  %v252_v6 = vld [vmem:[%s2505_s6 + $0x1a8] sm:$0x3] }
 0x226   : > { %v1809_v21 = vrot.slane %v252_v6, 2 }
 0x227   : > { %v2035_v43 = vmax.f32 %v2003_v12, 0.0  ;;  %v1783_v17 = vadd.f32 %v1716_v30, %v1631_v36  ;;  %2315 = vmatmul.msk.bf16.gmra.mxu1 %vm467_vm1, %v3760_v26  ;;  %v1657_v30 = vrot.slane %v250_v3, 1 }
 0x228   : > { %v1868_v48 = vpop.f32.mrf.mxu0 }
 0x229   : > { %2067 = vst.msk [vmem:[%s3392_s17 + $0x40] sm:$0xff] %vm467_vm1, %v2035_v43  ;;  %v1932_v4 = vadd.f32 %v1865_v39, %v1783_v17  ;;  %2343 = vmatmul.msk.bf16.gmra.mxu2 %vm467_vm1, %v3195_v37  ;;  %v1658_v17 = vrot.slane %v251_v40, 1 }
 0x22a   : > { %2371 = vmatmul.msk.bf16.gmra.mxu3 %vm467_vm1, %v3762_v32  ;;  %v1806_v32 = vrot.slane %v250_v3, 2 }
 0x22b   : > { %v1968_v20 = vmul.f32 %v3378_v15, %v1932_v4  ;;  %2399 = vmatmul.msk.bf16.gmra.mxu0 %vm467_vm1, %v3228_v52  ;;  %v1660_v4 = vrot.slane %v252_v6, 1 }
 0x22c   : > { %v1567_v41 = vpop.f32.mrf.mxu2  ;;  %v1427_v18 = vpop.f32.mrf.mxu1 }
 0x22d   : > { %v2004_v49 = vadd.f32 %v3383_v22, %v1968_v20  ;;  %v1632_v7 = vadd.f32 %v1567_v41, %v1490_v8  ;;  %v1719_v35 = vpop.f32.mrf.mxu3  ;;  %v1491_v38 = vadd.f32 %v1427_v18, %v3764_v42  ;;  %v1807_v20 = vrot.slane %v251_v40, 2 }
 0x22e   : > { %v1659_v18 = vsel %vm321_vm0, %v1657_v30, %v1658_v17 }
 0x22f   : > { %v2036_v54 = vmax.f32 %v2004_v49, 0.0  ;;  %v1784_v25 = vadd.f32 %v1719_v35, %v1632_v7  ;;  %v1661_v49 = vsel %vm321_vm0, %v1658_v17, %v1660_v4  ;;  %v1810_v42 = vsel %vm754_vm2, %v1807_v20, %v1809_v21 }
 0x230   : > { %v1870_v5 = vpop.f32.mrf.mxu0 }
 0x231   : > { %2068 = vst.msk [vmem:[%s3392_s17 + $0x48] sm:$0xff] %vm467_vm1, %v2036_v54  ;;  %v1933_v37 = vadd.f32 %v1868_v48, %v1784_v25  ;;  %v1512_v54 = vpack.c.bf16 %v251_v40, %v250_v3 }
 0x233   : > { %v1969_v13 = vmul.f32 %v3378_v15, %v1933_v37 }
 0x234   : > { %v1569_v26 = vpop.f32.mrf.mxu2  ;;  %v1430_v34 = vpop.f32.mrf.mxu1 }
 0x235   : > { %v2005_v45 = vadd.f32 %v3383_v22, %v1969_v13  ;;  %v1633_v33 = vadd.f32 %v1569_v26, %v1491_v38  ;;  %v1721_v44 = vpop.f32.mrf.mxu3  ;;  %v1492_v47 = vadd.f32 %v1430_v34, %v3223_v16  ;;  %v1808_v13 = vsel %vm754_vm2, %v1806_v32, %v1807_v20 }
 0x236   : > { %v1664_v38 = vpack.c.bf16 %v1661_v49, %v1659_v18 }
 0x237   : > { %v2037_v57 = vmax.f32 %v2005_v45, 0.0  ;;  %v1785_v62 = vadd.f32 %v1721_v44, %v1633_v33  ;;  %2316 = vmatmul.msk.bf16.gmra.mxu1 %vm467_vm1, %v3228_v52 }
 0x238   : > { %v1873_v9 = vpop.f32.mrf.mxu0 }
 0x239   : > { %2069 = vst.msk [vmem:[%s3392_s17 + $0x50] sm:$0xff] %vm467_vm1, %v2037_v57  ;;  %v1934_v27 = vadd.f32 %v1870_v5, %v1785_v62  ;;  %2344 = vmatmul.msk.bf16.gmra.mxu2 %vm467_vm1, %v3234_v63 }
 0x23a   : > { %2372 = vmatmul.msk.bf16.gmra.mxu3 %vm467_vm1, %v3238_v1 }
 0x23b   : > { %v1970_v39 = vmul.f32 %v3378_v15, %v1934_v27  ;;  %2400 = vmatmul.msk.bf16.gmra.mxu0 %vm467_vm1, %v3461_v31 }
 0x23c   : > { %v1572_v52 = vpop.f32.mrf.mxu2  ;;  %v1432_v53 = vpop.f32.mrf.mxu1 }
 0x23d   : > { %v2006_v12 = vadd.f32 %v3383_v22, %v1970_v39  ;;  %v1634_v36 = vadd.f32 %v1572_v52, %v1492_v47  ;;  %v1724_v63 = vpop.f32.mrf.mxu3  ;;  %v1493_v41 = vadd.f32 %v1432_v53, %v3242_v50  ;;  %v1813_v50 = vpack.c.bf16 %v1810_v42, %v1808_v13 }
 0x23f   : > { %v2038_v43 = vmax.f32 %v2006_v12, 0.0  ;;  %v1786_v1 = vadd.f32 %v1724_v63, %v1634_v36 }
 0x240   : > { %v1875_v48 = vpop.f32.mrf.mxu0 }
 0x241   : > { %2070 = vst.msk [vmem:[%s3392_s17 + $0x58] sm:$0xff] %vm467_vm1, %v2038_v43  ;;  %v1935_v16 = vadd.f32 %v1873_v9, %v1786_v1 }
 0x243   : > { %v1971_v8 = vmul.f32 %v3378_v15, %v1935_v16 }
 0x244   : > { %v1574_v7 = vpop.f32.mrf.mxu2  ;;  %v1435_v35 = vpop.f32.mrf.mxu1 }
 0x245   : > { %v2007_v25 = vadd.f32 %v3383_v22, %v1971_v8  ;;  %v1635_v37 = vadd.f32 %v1574_v7, %v1493_v41  ;;  %v1726_v5 = vpop.f32.mrf.mxu3  ;;  %v1494_v57 = vadd.f32 %v1435_v35, %v3249_v10 }
 0x247   : > { %v2039_v26 = vmax.f32 %v2007_v25, 0.0  ;;  %v1787_v34 = vadd.f32 %v1726_v5, %v1635_v37  ;;  %2317 = vmatmul.msk.bf16.gmra.mxu1 %vm467_vm1, %v3461_v31 }
 0x248   : > { %v1878_v33 = vpop.f32.mrf.mxu0 }
 0x249   : > { %2071 = vst.msk [vmem:[%s3392_s17 + $0x60] sm:$0xff] %vm467_vm1, %v2039_v26  ;;  %v1936_v45 = vadd.f32 %v1875_v48, %v1787_v34  ;;  %2345 = vmatmul.msk.bf16.gmra.mxu2 %vm467_vm1, %v1512_v54 }
 0x24a   : > { %2373 = vmatmul.msk.bf16.gmra.mxu3 %vm467_vm1, %v1664_v38 }
 0x24b   : > { %v1972_v44 = vmul.f32 %v3378_v15, %v1936_v45  ;;  %2401 = vmatmul.msk.bf16.gmra.mxu0 %vm467_vm1, %v1813_v50 }
 0x24c   : > { %v1577_v62 = vpop.f32.mrf.mxu2  ;;  %v1437_v27 = vpop.f32.mrf.mxu1 }
 0x24d   : > { %v2008_v31 = vadd.f32 %v3383_v22, %v1972_v44  ;;  %v1636_v9 = vadd.f32 %v1577_v62, %v1494_v57  ;;  %v1729_v39 = vpop.f32.mrf.mxu3  ;;  %v1495_v6 = vadd.f32 %v1437_v27, %v3256_v61 }
 0x24f   : > { %v2040_v47 = vmax.f32 %v2008_v31, 0.0  ;;  %v1788_v3 = vadd.f32 %v1729_v39, %v1636_v9 }
 0x250   : > { %v1880_v53 = vpop.f32.mrf.mxu0 }
 0x251   : > { %2072 = vst.msk [vmem:[%s3392_s17 + $0x68] sm:$0xff] %vm467_vm1, %v2040_v47  ;;  %v1937_v52 = vadd.f32 %v1878_v33, %v1788_v3 }
 0x253   : > { %v1973_v40 = vmul.f32 %v3378_v15, %v1937_v52 }
 0x254   : > { %v1579_v10 = vpop.f32.mrf.mxu2  ;;  %v1440_v12 = vpop.f32.mrf.mxu1 }
 0x255   : > { %v2009_v36 = vadd.f32 %v3383_v22, %v1973_v40  ;;  %v1637_v63 = vadd.f32 %v1579_v10, %v1495_v6  ;;  %v1731_v30 = vpop.f32.mrf.mxu3  ;;  %v1496_v48 = vadd.f32 %v1440_v12, %v3263_v29 }
 0x257   : > { %v2041_v43 = vmax.f32 %v2009_v36, 0.0  ;;  %v1789_v1 = vadd.f32 %v1731_v30, %v1637_v63 }
 0x258   : > { %v1883_v4 = vpop.f32.mrf.mxu0 }
 0x259   : > { %2073 = vst.msk [vmem:[%s3392_s17 + $0x70] sm:$0xff] %vm467_vm1, %v2041_v43  ;;  %v1938_v17 = vadd.f32 %v1880_v53, %v1789_v1 }
 0x25b   : > { %v1974_v16 = vmul.f32 %v3378_v15, %v1938_v17 }
 0x25c   : > { %v1582_v32 = vpop.f32.mrf.mxu2  ;;  %v1442_v20 = vpop.f32.mrf.mxu1 }
 0x25d   : > { %v2010_v61 = vadd.f32 %v3383_v22, %v1974_v16  ;;  %v1638_v21 = vadd.f32 %v1582_v32, %v1496_v48  ;;  %v1734_v8 = vpop.f32.mrf.mxu3  ;;  %v1497_v54 = vadd.f32 %v1442_v20, %v3270_v56 }
 0x25f   : > { %v2042_v41 = vmax.f32 %v2010_v61, 0.0  ;;  %v1790_v18 = vadd.f32 %v1734_v8, %v1638_v21 }
 0x260   : > { %v1885_v7 = vpop.f32.mrf.mxu0 }
 0x261   : > { %2074 = vst.msk [vmem:[%s3392_s17 + $0x78] sm:$0xff] %vm467_vm1, %v2042_v41  ;;  %v1939_v49 = vadd.f32 %v1883_v4, %v1790_v18 }
 0x263   : > { %v1975_v35 = vmul.f32 %v3378_v15, %v1939_v49 }
 0x264   : > { %v1584_v25 = vpop.f32.mrf.mxu2  ;;  %v1445_v37 = vpop.f32.mrf.mxu1 }
 0x265   : > { %v2011_v29 = vadd.f32 %v3383_v22, %v1975_v35  ;;  %v1639_v5 = vadd.f32 %v1584_v25, %v1497_v54  ;;  %v1736_v13 = vpop.f32.mrf.mxu3  ;;  %v1498_v45 = vadd.f32 %v1445_v37, %v3277_v51 }
 0x267   : > { %v2043_v42 = vmax.f32 %v2011_v29, 0.0  ;;  %v1791_v38 = vadd.f32 %v1736_v13, %v1639_v5 }
 0x268   : > { %v1888_v34 = vpop.f32.mrf.mxu0 }
 0x269   : > { %2075 = vst.msk [vmem:[%s3392_s17 + $0x80] sm:$0xff] %vm467_vm1, %v2043_v42  ;;  %v1940_v26 = vadd.f32 %v1885_v7, %v1791_v38 }
 0x26b   : > { %v1976_v50 = vmul.f32 %v3378_v15, %v1940_v26 }
 0x26c   : > { %v1587_v33 = vpop.f32.mrf.mxu2  ;;  %v1447_v44 = vpop.f32.mrf.mxu1 }
 0x26d   : > { %v2012_v56 = vadd.f32 %v3383_v22, %v1976_v50  ;;  %v1640_v57 = vadd.f32 %v1587_v33, %v1498_v45  ;;  %v1739_v62 = vpop.f32.mrf.mxu3  ;;  %v1499_v3 = vadd.f32 %v1447_v44, %v3284_v24 }
 0x26f   : > { %v2044_v27 = vmax.f32 %v2012_v56, 0.0  ;;  %v1792_v31 = vadd.f32 %v1739_v62, %v1640_v57 }
 0x270   : > { %v1890_v39 = vpop.f32.mrf.mxu0 }
 0x271   : > { %2076 = vst.msk [vmem:[%s3392_s17 + $0x88] sm:$0xff] %vm467_vm1, %v2044_v27  ;;  %v1941_v9 = vadd.f32 %v1888_v34, %v1792_v31 }
 0x273   : > { %v1977_v47 = vmul.f32 %v3378_v15, %v1941_v9 }
 0x274   : > { %v1589_v52 = vpop.f32.mrf.mxu2  ;;  %v1450_v53 = vpop.f32.mrf.mxu1 }
 0x275   : > { %v2013_v51 = vadd.f32 %v3383_v22, %v1977_v47  ;;  %v1641_v40 = vadd.f32 %v1589_v52, %v1499_v3  ;;  %v1741_v6 = vpop.f32.mrf.mxu3  ;;  %v1500_v43 = vadd.f32 %v1450_v53, %v3291_v0 }
 0x277   : > { %v2045_v10 = vmax.f32 %v2013_v51, 0.0  ;;  %v1793_v12 = vadd.f32 %v1741_v6, %v1641_v40 }
 0x278   : > { %v1893_v63 = vpop.f32.mrf.mxu0 }
 0x279   : > { %2077 = vst.msk [vmem:[%s3392_s17 + $0x90] sm:$0xff] %vm467_vm1, %v2045_v10  ;;  %v1942_v36 = vadd.f32 %v1890_v39, %v1793_v12 }
 0x27b   : > { %v1978_v30 = vmul.f32 %v3378_v15, %v1942_v36 }
 0x27c   : > { %v1592_v1 = vpop.f32.mrf.mxu2  ;;  %v1452_v17 = vpop.f32.mrf.mxu1 }
 0x27d   : > { %v2014_v24 = vadd.f32 %v3383_v22, %v1978_v30  ;;  %v1642_v4 = vadd.f32 %v1592_v1, %v1500_v43  ;;  %v1744_v16 = vpop.f32.mrf.mxu3  ;;  %v1501_v8 = vadd.f32 %v1452_v17, %v3298_v46 }
 0x27f   : > { %v2046_v48 = vmax.f32 %v2014_v24, 0.0  ;;  %v1794_v32 = vadd.f32 %v1744_v16, %v1642_v4 }
 0x280   : > { %v1895_v61 = vpop.f32.mrf.mxu0 }
 0x281   : > { %2078 = vst.msk [vmem:[%s3392_s17 + $0x98] sm:$0xff] %vm467_vm1, %v2046_v48  ;;  %v1943_v20 = vadd.f32 %v1893_v63, %v1794_v32 }
 0x283   : > { %v1979_v21 = vmul.f32 %v3378_v15, %v1943_v20 }
 0x284   : > { %v1594_v41 = vpop.f32.mrf.mxu2  ;;  %v1455_v18 = vpop.f32.mrf.mxu1 }
 0x285   : > { %v2015_v0 = vadd.f32 %v3383_v22, %v1979_v21  ;;  %v1643_v49 = vadd.f32 %v1594_v41, %v1501_v8  ;;  %v1746_v7 = vpop.f32.mrf.mxu3  ;;  %v1502_v5 = vadd.f32 %v1455_v18, %v3305_v59 }
 0x287   : > { %v2047_v35 = vmax.f32 %v2015_v0, 0.0  ;;  %v1795_v54 = vadd.f32 %v1746_v7, %v1643_v49 }
 0x288   : > { %v1898_v37 = vpop.f32.mrf.mxu0 }
 0x289   : > { %2079 = vst.msk [vmem:[%s3392_s17 + $0xa0] sm:$0xff] %vm467_vm1, %v2047_v35  ;;  %v1944_v25 = vadd.f32 %v1895_v61, %v1795_v54 }
 0x28b   : > { %v1980_v29 = vmul.f32 %v3378_v15, %v1944_v25 }
 0x28c   : > { %v1597_v13 = vpop.f32.mrf.mxu2  ;;  %v1457_v42 = vpop.f32.mrf.mxu1 }
 0x28d   : > { %v2016_v46 = vadd.f32 %v3383_v22, %v1980_v29  ;;  %v1644_v38 = vadd.f32 %v1597_v13, %v1502_v5  ;;  %v1749_v26 = vpop.f32.mrf.mxu3  ;;  %v1503_v56 = vadd.f32 %v1457_v42, %v3312_v19 }
 0x28f   : > { %v2048_v34 = vmax.f32 %v2016_v46, 0.0  ;;  %v1796_v50 = vadd.f32 %v1749_v26, %v1644_v38 }
 0x290   : > { %v1900_v33 = vpop.f32.mrf.mxu0 }
 0x291   : > { %2080 = vst.msk [vmem:[%s3392_s17 + $0xa8] sm:$0xff] %vm467_vm1, %v2048_v34  ;;  %v1945_v45 = vadd.f32 %v1898_v37, %v1796_v50 }
 0x293   : > { %v1981_v44 = vmul.f32 %v3378_v15, %v1945_v45 }
 0x294   : > { %v1599_v57 = vpop.f32.mrf.mxu2  ;;  %v1460_v62 = vpop.f32.mrf.mxu1 }
 0x295   : > { %v2017_v59 = vadd.f32 %v3383_v22, %v1981_v44  ;;  %v1645_v27 = vadd.f32 %v1599_v57, %v1503_v56  ;;  %v1751_v31 = vpop.f32.mrf.mxu3  ;;  %v1504_v53 = vadd.f32 %v1460_v62, %v3319_v55 }
 0x297   : > { %v2049_v9 = vmax.f32 %v2017_v59, 0.0  ;;  %v1797_v39 = vadd.f32 %v1751_v31, %v1645_v27 }
 0x298   : > { %v1903_v3 = vpop.f32.mrf.mxu0 }
 0x299   : > { %2081 = vst.msk [vmem:[%s3392_s17 + $0xb0] sm:$0xff] %vm467_vm1, %v2049_v9  ;;  %v1946_v47 = vadd.f32 %v1900_v33, %v1797_v39 }
 0x29b   : > { %v1982_v52 = vmul.f32 %v3378_v15, %v1946_v47 }
 0x29c   : > { %v1602_v51 = vpop.f32.mrf.mxu2  ;;  %v1462_v40 = vpop.f32.mrf.mxu1 }
 0x29d   : > { %v2018_v19 = vadd.f32 %v3383_v22, %v1982_v52  ;;  %v1646_v6 = vadd.f32 %v1602_v51, %v1504_v53  ;;  %v1754_v10 = vpop.f32.mrf.mxu3  ;;  %v1505_v1 = vadd.f32 %v1462_v40, %v3326_v28 }
 0x29f   : > { %v2050_v12 = vmax.f32 %v2018_v19, 0.0  ;;  %v1798_v36 = vadd.f32 %v1754_v10, %v1646_v6 }
 0x2a0   : > { %v1905_v30 = vpop.f32.mrf.mxu0 }
 0x2a1   : > { %2082 = vst.msk [vmem:[%s3392_s17 + $0xb8] sm:$0xff] %vm467_vm1, %v2050_v12  ;;  %v1947_v63 = vadd.f32 %v1903_v3, %v1798_v36 }
 0x2a3   : > { %v1983_v43 = vmul.f32 %v3378_v15, %v1947_v63 }
 0x2a4   : > { %v1604_v17 = vpop.f32.mrf.mxu2  ;;  %v1465_v24 = vpop.f32.mrf.mxu1 }
 0x2a5   : > { %v2019_v55 = vadd.f32 %v3383_v22, %v1983_v43  ;;  %v1647_v4 = vadd.f32 %v1604_v17, %v1505_v1  ;;  %v1756_v16 = vpop.f32.mrf.mxu3  ;;  %v1506_v8 = vadd.f32 %v1465_v24, %v3333_v14 }
 0x2a7   : > { %v2051_v48 = vmax.f32 %v2019_v55, 0.0  ;;  %v1799_v32 = vadd.f32 %v1756_v16, %v1647_v4 }
 0x2a8   : > { %v1908_v61 = vpop.f32.mrf.mxu0 }
 0x2a9   : > { %2083 = vst.msk [vmem:[%s3392_s17 + $0xc0] sm:$0xff] %vm467_vm1, %v2051_v48  ;;  %v1948_v20 = vadd.f32 %v1905_v30, %v1799_v32 }
 0x2ab   : > { %v1984_v21 = vmul.f32 %v3378_v15, %v1948_v20 }
 0x2ac   : > { %v1607_v41 = vpop.f32.mrf.mxu2  ;;  %v1467_v18 = vpop.f32.mrf.mxu1 }
 0x2ad   : > { %v2020_v28 = vadd.f32 %v3383_v22, %v1984_v21  ;;  %v1648_v0 = vadd.f32 %v1607_v41, %v1506_v8  ;;  %v1759_v49 = vpop.f32.mrf.mxu3  ;;  %v1507_v29 = vadd.f32 %v1467_v18, %v3340_v58 }
 0x2af   : > { %v2052_v7 = vmax.f32 %v2020_v28, 0.0  ;;  %v1800_v35 = vadd.f32 %v1759_v49, %v1648_v0 }
 0x2b0   : > { %v1910_v25 = vpop.f32.mrf.mxu0 }
 0x2b1   : > { %2084 = vst.msk [vmem:[%s3392_s17 + $0xc8] sm:$0xff] %vm467_vm1, %v2052_v7  ;;  %v1949_v54 = vadd.f32 %v1908_v61, %v1800_v35 }
 0x2b3   : > { %v1985_v37 = vmul.f32 %v3378_v15, %v1949_v54 }
 0x2b4   : > { %v1609_v5 = vpop.f32.mrf.mxu2  ;;  %v1470_v13 = vpop.f32.mrf.mxu1 }
 0x2b5   : > { %v2021_v14 = vadd.f32 %v3383_v22, %v1985_v37  ;;  %v1649_v42 = vadd.f32 %v1609_v5, %v1507_v29  ;;  %v1761_v46 = vpop.f32.mrf.mxu3  ;;  %v1508_v33 = vadd.f32 %v1470_v13, %v3347_v23 }
 0x2b7   : > { %v2053_v38 = vmax.f32 %v2021_v14, 0.0  ;;  %v1801_v26 = vadd.f32 %v1761_v46, %v1649_v42 }
 0x2b8   : > { %v1913_v50 = vpop.f32.mrf.mxu0 }
 0x2b9   : > { %2085 = vst.msk [vmem:[%s3392_s17 + $0xd0] sm:$0xff] %vm467_vm1, %v2053_v38  ;;  %v1950_v34 = vadd.f32 %v1910_v25, %v1801_v26 }
 0x2bb   : > { %v1986_v45 = vmul.f32 %v3378_v15, %v1950_v34 }
 0x2bc   : > { %v1612_v44 = vpop.f32.mrf.mxu2  ;;  %v1472_v56 = vpop.f32.mrf.mxu1 }
 0x2bd   : > { %v2022_v58 = vadd.f32 %v3383_v22, %v1986_v45  ;;  %v1650_v57 = vadd.f32 %v1612_v44, %v1508_v33  ;;  %v1764_v62 = vpop.f32.mrf.mxu3  ;;  %v1509_v39 = vadd.f32 %v1472_v56, %v3354_v60 }
 0x2bf   : > { %v2054_v59 = vmax.f32 %v2022_v58, 0.0  ;;  %v1802_v27 = vadd.f32 %v1764_v62, %v1650_v57 }
 0x2c0   : > { %v1915_v47 = vpop.f32.mrf.mxu0 }
 0x2c1   : > { %2086 = vst.msk [vmem:[%s3392_s17 + $0xd8] sm:$0xff] %vm467_vm1, %v2054_v59  ;;  %v1951_v31 = vadd.f32 %v1913_v50, %v1802_v27 }
 0x2c3   : > { %v1987_v9 = vmul.f32 %v3378_v15, %v1951_v31 }
 0x2c4   : > { %v1614_v3 = vpop.f32.mrf.mxu2  ;;  %v1475_v51 = vpop.f32.mrf.mxu1 }
 0x2c5   : > { %v2023_v23 = vadd.f32 %v3383_v22, %v1987_v9  ;;  %v1651_v52 = vadd.f32 %v1614_v3, %v1509_v39  ;;  %v1766_v53 = vpop.f32.mrf.mxu3  ;;  %v1510_v12 = vadd.f32 %v1475_v51, %v3361_v11 }
 0x2c7   : > { %v2055_v40 = vmax.f32 %v2023_v23, 0.0  ;;  %v1803_v19 = vadd.f32 %v1766_v53, %v1651_v52 }
 0x2c8   : > { %v1918_v43 = vpop.f32.mrf.mxu0 }
 0x2c9   : > { %2087 = vst.msk [vmem:[%s3392_s17 + $0xe0] sm:$0xff] %vm467_vm1, %v2055_v40  ;;  %v1952_v6 = vadd.f32 %v1915_v47, %v1803_v19 }
 0x2cb   : > { %v1988_v10 = vmul.f32 %v3378_v15, %v1952_v6 }
 0x2cc   : > { %v1617_v36 = vpop.f32.mrf.mxu2  ;;  %v1477_v24 = vpop.f32.mrf.mxu1 }
 0x2cd   : > { %v2024_v60 = vadd.f32 %v3383_v22, %v1988_v10  ;;  %v1652_v63 = vadd.f32 %v1617_v36, %v1510_v12  ;;  %v1769_v30 = vpop.f32.mrf.mxu3  ;;  %v1511_v16 = vadd.f32 %v1477_v24, %v3368_v2 }
 0x2cf   : > { %v2056_v1 = vmax.f32 %v2024_v60, 0.0  ;;  %v1804_v17 = vadd.f32 %v1769_v30, %v1652_v63 }
 0x2d0   : > { %v1920_v8 = vpop.f32.mrf.mxu0 }
 0x2d1   : > { %2088 = vst.msk [vmem:[%s3392_s17 + $0xe8] sm:$0xff] %vm467_vm1, %v2056_v1  ;;  %v1953_v55 = vadd.f32 %v1918_v43, %v1804_v17 }
 0x2d3   : > { %v1989_v4 = vmul.f32 %v3378_v15, %v1953_v55 }
 0x2d4   : > { %v1619_v48 = vpop.f32.mrf.mxu2 }
 0x2d5   : > { %v2025_v11 = vadd.f32 %v3383_v22, %v1989_v4  ;;  %v1653_v32 = vadd.f32 %v1619_v48, %v1511_v16  ;;  %v1771_v20 = vpop.f32.mrf.mxu3 }
 0x2d7   : > { %v2057_v61 = vmax.f32 %v2025_v11, 0.0  ;;  %v1805_v21 = vadd.f32 %v1771_v20, %v1653_v32 }
 0x2d9   : > { %2089 = vst.msk [vmem:[%s3392_s17 + $0xf0] sm:$0xff] %vm467_vm1, %v2057_v61  ;;  %v1954_v41 = vadd.f32 %v1920_v8, %v1805_v21 }
 0x2db   : > { %v1990_v18 = vmul.f32 %v3378_v15, %v1954_v41 }
 0x2dd   : > { %v2026_v28 = vadd.f32 %v3383_v22, %v1990_v18 }
 0x2df   : > { %v2058_v0 = vmax.f32 %v2026_v28, 0.0 }
 0x2e1   : > { %2090 = vst.msk [vmem:[%s3392_s17 + $0xf8] sm:$0xff] %vm467_vm1, %v2058_v0 }
 0x2e2 PF: > { %s14_s15 = sadd.s32 1, %s2446_s15  }
 0x2e3   : > { %p11_p4 = scmp.ge.s32.totalorder %s14_s15, 4  }
 0x2e5   :  { %13 = sbr.rel (!%p11_p4) target bundleno = 1 (0x1), region = 74 }

// kernel: inception_a_res_forward.9
= control target key start
LH: loop header
LB: loop body
LE: loop exit
PB: predicated region body
PF: predicated region fallthrough
CT: control target
= control target key end

     0   :  { %10 = vsyncpa [#allocation4], 0  ;;  %s3417_s0 = inlined_call_operand.vmem [shape: bf16[512,96], index: 0, kind: input, shape index: {}]   ;;  %s3418_s1 = inlined_call_operand.vmem [shape: bf16[96,384], index: 1, kind: input, shape index: {}]   ;;  %s3419_s2 = inlined_call_operand.vmem [shape: f32[1,384], index: 2, kind: input, shape index: {}]   ;;  %s3420_s3 = inlined_call_operand.vmem [shape: f32[1,384], index: 3, kind: input, shape index: {}]   ;;  %s3421_s4 = inlined_call_operand.vmem [shape: f32[512,384], index: 4, kind: input, shape index: {}]   ;;  %s3422_s5 = inlined_call_operand.hbm [shape: f32[512,384], index: 5, kind: output, shape index: {}]  }
   0x1   :  { %12 = vsyncpa [#allocation4 + $0x1], 0  ;;  %s2689_s18 = smov 0   ;;  %s2691_s19 = smov 0  }
   0x2   :  { %s2693_s20 = smov 0   ;;  %s2695_s21 = smov 0  }
   0x3   :  { %s2697_s22 = smov 0   ;;  %s2699_s23 = smov 0  }
   0x4 LB: > { %s2264_s24 = sadd.s32 4294967295, %s2655_s23   ;;  %s2265_s25 = sadd.s32 4294967294, %s2655_s23   ;;  %s2655_s23 = sphi %s2699_s23, %s18_s23   ;;  %s2651_s22 = sphi %s2697_s22, %s3429_s22   ;;  %s2647_s21 = sphi %s2695_s21, %s3428_s21   ;;  %s2643_s20 = sphi %s2693_s20, %s3427_s20   ;;  %s2639_s19 = sphi %s2691_s19, %s3426_s19   ;;  %s2635_s18 = sphi %s2689_s18, %s3425_s18  }
   0x5   : > { %s37_s26 = sadd.s32 1, %s2651_s22  ;;  %s182_s27 = sadd.s32 1, %s2643_s20 }
   0x6   : > { %p39_p0 = scmp.ge.s32.totalorder %s37_s26, 2  ;;  %p192_p1 = scmp.ne.s32.totalorder %s2643_s20, %s2639_s19 }
   0x7   : > { %p193_p2 = scmp.eq.s32.totalorder %s2264_s24, 1  ;;  %p198_p3 = scmp.ne.s32.totalorder %s2639_s19, %s2635_s18 }
   0x8   : > { %s3431_s26 = smov (%p39_p0, %s37_s26), 0  ;;  %p199_p5 = scmp.eq.s32.totalorder %s2265_s25, 1 }
   0x9   : > { %p2729_p4 = por %p193_p2, %p192_p1  ;;  %s177_s29 = ssub.s32 %s2651_s22, %s3431_s26 }
   0xa   : > { %p2271_p6 = scmp.ge.s32.totalorder %s2655_s23, 1  ;;  %p180_p7 = scmp.eq.s32.totalorder %s177_s29, 0 }
   0xb   : > { %p2736_p8 = por %p199_p5, %p198_p3  ;;  %p275_p9 = scmp.lt.s32.totalorder %s2655_s23, 3 }
   0xc   : > { %s2742_s6 = scalar_select %p180_p7, %s2643_s20, %s182_s27  }
   0xd   : > { %p276_p10 = pnand %p2271_p6, %p275_p9 }
   0xe   : > { %s2272_s24 = sshll.u32 (!%p276_p10), %s2647_s21, 5  ;;  %s331_s25 = sand.u32 (!%p276_p10), 1, %s2639_s19  }
   0xf   : > { %279 = sbr.rel (%p276_p10) target bundleno = 378 (0x17a), region = 40  ;;  %p335_p11 = scmp.lt.s32.totalorder (!%p276_p10), %s2272_s24, 63 }
  0x10   : > { %s2104_s11 = scalar_lea.sflag (!%p276_p10), [#allocation4], %s331_s25  ;;  %s2597_s16 = scalar_lea.hbm (!%p276_p10), %s3422_s5, 1536 }
  0x14   : > { %v2402_v0 = vld [vmem:[%s3418_s1 + $0x78] sm:$0xf]  ;;  %v2497_v1 = vld [vmem:[%s3418_s1 + $0x80] sm:$0xf0]  ;;  %v2496_v2 = vld [vmem:[%s3418_s1 + $0x7c] sm:$0xf] }
  0x15   : > { %v2403_v3 = vor.u32 %v2497_v1, %v2402_v0  ;;  %v2404_v4 = vld [vmem:[%s3418_s1 + $0x84] sm:$0xf0]  ;;  %v2410_v5 = vld [vmem:[%s3418_s1 + $0x80] sm:$0xf]  ;;  %v2498_v6 = vld [vmem:[%s3418_s1 + $0x88] sm:$0xf0] }
  0x16   : > { %v2762_v7 = vor.u32 %v2496_v2, %v2404_v4  ;;  %v2764_v8 = vor.u32 %v2498_v6, %v2410_v5  ;;  %v2390_v9 = vld [vmem:[%s3418_s1 + $0x60] sm:$0xf]  ;;  %v2494_v10 = vld [vmem:[%s3418_s1 + $0x68] sm:$0xf0]  ;;  %v2493_v11 = vld [vmem:[%s3418_s1 + $0x64] sm:$0xf] }
  0x17   : > { %859 = vmatpush.bf16.msra.mxu0 %v2403_v3  ;;  %2499 = vmatpush.bf16.msra.mxu3 %v2403_v3  ;;  %v2391_v12 = vor.u32 %v2494_v10, %v2390_v9  ;;  %v2392_v13 = vld [vmem:[%s3418_s1 + $0x6c] sm:$0xf0]  ;;  %v2398_v14 = vld [vmem:[%s3418_s1 + $0x68] sm:$0xf]  ;;  %v2495_v15 = vld [vmem:[%s3418_s1 + $0x70] sm:$0xf0] }
  0x18   : > { %948 = vmatpush.bf16.msra.mxu1 %v2762_v7  ;;  %1037 = vmatpush.bf16.msra.mxu2 %v2764_v8  ;;  %v2786_v16 = vor.u32 %v2493_v11, %v2392_v13  ;;  %v2788_v17 = vor.u32 %v2495_v15, %v2398_v14  ;;  %v2378_v18 = vld [vmem:[%s3418_s1 + $0x48] sm:$0xf]  ;;  %v2491_v19 = vld [vmem:[%s3418_s1 + $0x50] sm:$0xf0]  ;;  %v2490_v20 = vld [vmem:[%s3418_s1 + $0x4c] sm:$0xf] }
  0x19   : > { %v2380_v21 = vld [vmem:[%s3418_s1 + $0x54] sm:$0xf0]  ;;  %v2386_v22 = vld [vmem:[%s3418_s1 + $0x50] sm:$0xf]  ;;  %v2492_v23 = vld [vmem:[%s3418_s1 + $0x58] sm:$0xf0]  ;;  %v2379_v24 = vor.u32 %v2491_v19, %v2378_v18 }
  0x1a   : > { %v2383_v25 = vor.u32 %v2490_v20, %v2380_v21  ;;  %v2810_v26 = vor.u32 %v2492_v23, %v2386_v22  ;;  %v2366_v27 = vld [vmem:[%s3418_s1 + $0x30] sm:$0xf]  ;;  %v2488_v28 = vld [vmem:[%s3418_s1 + $0x38] sm:$0xf0]  ;;  %v2487_v29 = vld [vmem:[%s3418_s1 + $0x34] sm:$0xf] }
  0x1b   : > { %860 = vmatpush.bf16.msra.mxu0 %v2391_v12  ;;  %2500 = vmatpush.bf16.msra.mxu3 %v2391_v12  ;;  %v2368_v30 = vld [vmem:[%s3418_s1 + $0x3c] sm:$0xf0]  ;;  %v2374_v31 = vld [vmem:[%s3418_s1 + $0x38] sm:$0xf]  ;;  %v2489_v32 = vld [vmem:[%s3418_s1 + $0x40] sm:$0xf0]  ;;  %v2367_v33 = vor.u32 %v2488_v28, %v2366_v27 }
  0x1c   : > { %949 = vmatpush.bf16.msra.mxu1 %v2786_v16  ;;  %1038 = vmatpush.bf16.msra.mxu2 %v2788_v17  ;;  %v2354_v34 = vld [vmem:[%s3418_s1 + $0x18] sm:$0xf]  ;;  %v2485_v35 = vld [vmem:[%s3418_s1 + $0x20] sm:$0xf0]  ;;  %v2371_v36 = vor.u32 %v2487_v29, %v2368_v30  ;;  %v2375_v37 = vor.u32 %v2489_v32, %v2374_v31  ;;  %v2484_v38 = vld [vmem:[%s3418_s1 + $0x1c] sm:$0xf] }
  0x1d   : > { %v2356_v39 = vld [vmem:[%s3418_s1 + $0x24] sm:$0xf0]  ;;  %v2362_v40 = vld [vmem:[%s3418_s1 + $0x20] sm:$0xf]  ;;  %v2486_v41 = vld [vmem:[%s3418_s1 + $0x28] sm:$0xf0]  ;;  %v2355_v42 = vor.u32 %v2485_v35, %v2354_v34 }
  0x1e   : > { %v2342_v43 = vld [vmem:[%s3418_s1] sm:$0xf]  ;;  %s3433_s24 = smov (!%p335_p11, %s2272_s24), 63  ;;  %v2359_v44 = vor.u32 %v2484_v38, %v2356_v39  ;;  %v2363_v45 = vor.u32 %v2486_v41, %v2362_v40  ;;  %v2482_v46 = vld [vmem:[%s3418_s1 + $0x8] sm:$0xf0]  ;;  %vm808_vm0 = vcmask 785408  }
  0x1f   : > { %861 = vmatpush.bf16.msra.mxu0 %v2379_v24  ;;  %2501 = vmatpush.bf16.msra.mxu3 %v2379_v24  ;;  %v2481_v47 = vld [vmem:[%s3418_s1 + $0x4] sm:$0xf]  ;;  %v2344_v48 = vld [vmem:[%s3418_s1 + $0xc] sm:$0xf0]  ;;  %v2350_v49 = vld [vmem:[%s3418_s1 + $0x8] sm:$0xf]  ;;  %v2343_v51 = vor.u32 %v2482_v46, %v2342_v43 }
  0x20   : > { %950 = vmatpush.bf16.msra.mxu1 %v2383_v25  ;;  %1039 = vmatpush.bf16.msra.mxu2 %v2810_v26  ;;  %v2483_v50 = vld [vmem:[%s3418_s1 + $0x10] sm:$0xf0]  ;;  %s2273_s29 = sshll.u32 %s3433_s24, 2  ;;  %v2347_v52 = vor.u32 %v2481_v47, %v2344_v48  ;;  %v1415_v2 = vld [vmem:[%s3419_s2] sm:$0x7]  ;;  %s2518_s14 = smul.u32 24, %s3433_s24 }
  0x21   : > { %s2874_s9 = scalar_lea.vmem %s3417_s0, %s2273_s29  ;;  %v2351_v53 = vor.u32 %v2483_v50, %v2350_v49  ;;  %v1519_v3 = vld [vmem:[%s3420_s3] sm:$0x7]  ;;  %v2948_v4 = vperm.slane %v1415_v2, 0  ;;  %v2950_v5 = vperm.slane %v1415_v2, 1  ;;  %s2517_s24 = smul.u32 768, %s331_s25 }
  0x22   : > { %v2465_v54 = vld [vmem:[%s2874_s9] sm:$0xff]  ;;  %v2466_v56 = vld [vmem:[%s2874_s9 + $0x8] sm:$0xff]  ;;  %v2467_v58 = vld [vmem:[%s2874_s9 + $0x10] sm:$0xff]  ;;  %v2952_v6 = vperm.slane %v1519_v3, 0  ;;  %v2955_v9 = vperm.slane %v1519_v3, 1  ;;  %s2960_s17 = scalar_lea.vmem %s3421_s4, %s2518_s14  ;;  %v2978_v21 = vperm.slane %v1519_v3, 2 }
  0x23   : > { %862 = vmatpush.bf16.msra.mxu0 %v2367_v33  ;;  %2502 = vmatpush.bf16.msra.mxu3 %v2367_v33  ;;  %v2878_v55 = vld [vmem:[%s2874_s9 + $0x60] sm:$0xff]  ;;  %v2889_v57 = vld [vmem:[%s2874_s9 + $0x68] sm:$0xff]  ;;  %v2900_v59 = vld [vmem:[%s2874_s9 + $0x70] sm:$0xff]  ;;  %s2987_s27 = scalar_lea.vmem [#allocation3], %s2517_s24  ;;  %s2519_s29 = smul.u32 768, %s2647_s21 }
  0x24   : > { %951 = vmatpush.bf16.msra.mxu1 %v2371_v36  ;;  %1040 = vmatpush.bf16.msra.mxu2 %v2375_v37  ;;  %v2468_v60 = vld [vmem:[%s2874_s9 + $0x18] sm:$0xff]  ;;  %v2469_v62 = vld [vmem:[%s2874_s9 + $0x20] sm:$0xff]  ;;  %v2470_v63 = vld [vmem:[%s2874_s9 + $0x28] sm:$0xff] }
  0x25   : > { %v2910_v61 = vld [vmem:[%s2874_s9 + $0x78] sm:$0xff]  ;;  %v2471_v0 = vld [vmem:[%s2874_s9 + $0x30] sm:$0xff]  ;;  %v1719_v14 = vld [vmem:[%s2960_s17] sm:$0xff]  ;;  %s2118_s8 = scalar_lea.hbm %s3422_s5, %s2519_s29 }
  0x26   : > { %v2472_v1 = vld [vmem:[%s2874_s9 + $0x38] sm:$0xff]  ;;  %v1720_v18 = vld [vmem:[%s2960_s17 + $0x8] sm:$0xff]  ;;  %v1791_v33 = vld [vmem:[%s2960_s17 + $0x240] sm:$0xff]  ;;  %s2121_s10 = sshll.u32 %s2118_s8, 4  ;;  %s2122_s10 = int_to_ptr.hbm [resolvable:$true] %s2121_s10 }
  0x27   : > { %863 = vmatpush.bf16.msra.mxu0 %v2355_v42  ;;  %2503 = vmatpush.bf16.msra.mxu3 %v2355_v42  ;;  %v1722_v40 = vld [vmem:[%s2960_s17 + $0x18] sm:$0xff]  ;;  %s2591_s12 = sshra.s32 %s2122_s10, 4  ;;  %s2592_s12 = int_to_ptr.hbm [resolvable:$true] %s2591_s12 }
  0x28   : > { %952 = vmatpush.bf16.msra.mxu1 %v2359_v44  ;;  %1041 = vmatpush.bf16.msra.mxu2 %v2363_v45  ;;  %s2593_s13 = scalar_lea.hbm %s2592_s12, 768  ;;  %p2598_p1 = scmp.lt.s32.totalorder %s2592_s12, %s3422_s5 }
  0x29   : > { %p2594_p12 = scmp.ne.s32.totalorder %s2592_s12, %s2593_s13  ;;  %p2599_p2 = scmp.lt.s32.totalorder %s2597_s16, %s2593_s13 }
  0x2b   : > { %864 = vmatpush.bf16.msra.mxu0 %v2343_v51  ;;  %2504 = vmatpush.bf16.msra.mxu3 %v2343_v51  ;;  %p2595_p13 = pnand %p2594_p12, %p2729_p4  ;;  %p2600_p3 = por %p2599_p2, %p2598_p1 }
  0x2c   : > { %953 = vmatpush.bf16.msra.mxu1 %v2347_v52  ;;  %1042 = vmatpush.bf16.msra.mxu2 %v2351_v53 }
  0x2d   : > { %p2596_p0 = pneg %p2595_p13 }
  0x2e   : > { %2412 = vmatmul.msk.bf16.vlgmr.msra.gmra.mxu0 %vm808_vm0, %v2465_v54  ;;  %2424 = vmatmul.msk.bf16.vlgmr.msra.gmra.mxu3 %vm808_vm0, %v2878_v55 }
  0x2f   : > { %2505 = vmatpush.bf16.msrb.mxu3 %v2762_v7  ;;  %2428 = vmatmul.msk.bf16.vlgmr.msra.gmra.mxu1 %vm808_vm0, %v2465_v54  ;;  %v2473_v7 = vld [vmem:[%s2874_s9 + $0x40] sm:$0xff]  ;;  %p2601_p5 = pnand %p2600_p3, %p2596_p0 }
  0x30   : > { %2444 = vmatmul.msk.bf16.vlgmr.msra.gmra.mxu2 %vm808_vm0, %v2465_v54 }
  0x33   : > { %2506 = vmatpush.bf16.msrb.mxu3 %v2786_v16  ;;  %v2975_v16 = vperm.slane %v1415_v2, 2 }
  0x37   : > { %2507 = vmatpush.bf16.msrb.mxu3 %v2383_v25 }
  0x3b   : > { %2508 = vmatpush.bf16.msrb.mxu3 %v2371_v36 }
  0x3e   : > { %2413 = vmatmul.msk.bf16.gmra.mxu0 %vm808_vm0, %v2466_v56  ;;  %2425 = vmatmul.msk.bf16.gmra.mxu3 %vm808_vm0, %v2889_v57 }
  0x3f   : > { %2509 = vmatpush.bf16.msrb.mxu3 %v2359_v44  ;;  %2429 = vmatmul.msk.bf16.gmra.mxu1 %vm808_vm0, %v2466_v56  ;;  %v1723_v44 = vld [vmem:[%s2960_s17 + $0x20] sm:$0xff] }
  0x40   : > { %2445 = vmatmul.msk.bf16.gmra.mxu2 %vm808_vm0, %v2466_v56 }
  0x43   : > { %2510 = vmatpush.bf16.msrb.mxu3 %v2347_v52  ;;  %v2474_v52 = vld [vmem:[%s2874_s9 + $0x48] sm:$0xff] }
  0x47   : > { %2511 = vmatpush.bf16.msra.mxu3 %v2764_v8 }
  0x4b   : > { %2512 = vmatpush.bf16.msra.mxu3 %v2788_v17 }
  0x4e   : > { %2414 = vmatmul.msk.bf16.gmra.mxu0 %vm808_vm0, %v2467_v58  ;;  %2426 = vmatmul.msk.bf16.gmra.mxu3 %vm808_vm0, %v2900_v59 }
  0x4f   : > { %2513 = vmatpush.bf16.msra.mxu3 %v2810_v26  ;;  %2430 = vmatmul.msk.bf16.gmra.mxu1 %vm808_vm0, %v2467_v58 }
  0x50   : > { %2446 = vmatmul.msk.bf16.gmra.mxu2 %vm808_vm0, %v2467_v58 }
  0x53   : > { %2514 = vmatpush.bf16.msra.mxu3 %v2375_v37  ;;  %v1721_v37 = vld [vmem:[%s2960_s17 + $0x10] sm:$0xff] }
  0x57   : > { %2515 = vmatpush.bf16.msra.mxu3 %v2363_v45 }
  0x5b   : > { %2516 = vmatpush.bf16.msra.mxu3 %v2351_v53 }
  0x5e   : > { %2415 = vmatmul.msk.bf16.gmra.mxu0 %vm808_vm0, %v2468_v60  ;;  %2427 = vmatmul.msk.bf16.gmra.mxu3 %vm808_vm0, %v2910_v61 }
  0x5f   : > { %2431 = vmatmul.msk.bf16.gmra.mxu1 %vm808_vm0, %v2468_v60 }
  0x60   : > { %2447 = vmatmul.msk.bf16.gmra.mxu2 %vm808_vm0, %v2468_v60 }
  0x6e   : > { %2416 = vmatmul.msk.bf16.gmra.mxu0 %vm808_vm0, %v2469_v62  ;;  %2440 = vmatmul.msk.bf16.vlgmr.msrb.gmra.mxu3 %vm808_vm0, %v2878_v55 }
  0x6f   : > { %2432 = vmatmul.msk.bf16.gmra.mxu1 %vm808_vm0, %v2469_v62 }
  0x70   : > { %2448 = vmatmul.msk.bf16.gmra.mxu2 %vm808_vm0, %v2469_v62 }
  0x7e   : > { %2417 = vmatmul.msk.bf16.gmra.mxu0 %vm808_vm0, %v2470_v63  ;;  %2441 = vmatmul.msk.bf16.gmra.mxu3 %vm808_vm0, %v2889_v57 }
  0x7f   : > { %2433 = vmatmul.msk.bf16.gmra.mxu1 %vm808_vm0, %v2470_v63 }
  0x80   : > { %2449 = vmatmul.msk.bf16.gmra.mxu2 %vm808_vm0, %v2470_v63 }
  0x8e   : > { %2418 = vmatmul.msk.bf16.gmra.mxu0 %vm808_vm0, %v2471_v0  ;;  %2442 = vmatmul.msk.bf16.gmra.mxu3 %vm808_vm0, %v2900_v59 }
  0x8f   : > { %2434 = vmatmul.msk.bf16.gmra.mxu1 %vm808_vm0, %v2471_v0 }
  0x90   : > { %2450 = vmatmul.msk.bf16.gmra.mxu2 %vm808_vm0, %v2471_v0 }
  0x9e   : > { %2419 = vmatmul.msk.bf16.gmra.mxu0 %vm808_vm0, %v2472_v1  ;;  %2443 = vmatmul.msk.bf16.gmra.mxu3 %vm808_vm0, %v2910_v61 }
  0x9f   : > { %2435 = vmatmul.msk.bf16.gmra.mxu1 %vm808_vm0, %v2472_v1 }
  0xa0   : > { %2451 = vmatmul.msk.bf16.gmra.mxu2 %vm808_vm0, %v2472_v1  ;;  %v1794_v1 = vld [vmem:[%s2960_s17 + $0x258] sm:$0xff] }
  0xab   : > { %v866_v8 = vpop.f32.mrf.mxu0 }
  0xac   : > { %v1423_v10 = vmul.f32 %v2948_v4, %v866_v8  ;;  %v955_v11 = vpop.f32.mrf.mxu1  ;;  %v1724_v8 = vld [vmem:[%s2960_s17 + $0x28] sm:$0xff] }
  0xad   : > { %v1424_v12 = vmul.f32 %v2950_v5, %v955_v11 }
  0xae   : > { %v1527_v13 = vadd.f32 %v2952_v6, %v1423_v10  ;;  %2420 = vmatmul.msk.bf16.gmra.mxu0 %vm808_vm0, %v2473_v7  ;;  %2456 = vmatmul.msk.bf16.vlgmr.msra.gmra.mxu3 %vm808_vm0, %v2878_v55 }
  0xaf   : > { %v1528_v15 = vadd.f32 %v2955_v9, %v1424_v12  ;;  %2436 = vmatmul.msk.bf16.gmra.mxu1 %vm808_vm0, %v2473_v7  ;;  %v1725_v12 = vld [vmem:[%s2960_s17 + $0x30] sm:$0xff] }
  0xb0   : > { %2452 = vmatmul.msk.bf16.gmra.mxu2 %vm808_vm0, %v2473_v7  ;;  %v1623_v17 = vmax.f32 %v1527_v13, 0.0 }
  0xb1   : > { %v1624_v19 = vmax.f32 %v1528_v15, 0.0  ;;  %v926_v20 = vpop.f32.mrf.mxu3 }
  0xb2   : > { %v1815_v22 = vadd.f32 %v1719_v14, %v1623_v17  ;;  %v1495_v23 = vmul.f32 %v2948_v4, %v926_v20  ;;  %v1726_v17 = vld [vmem:[%s2960_s17 + $0x38] sm:$0xff] }
  0xb3   : > { %v1044_v24 = vpop.f32.mrf.mxu2  ;;  %v1816_v25 = vadd.f32 %v1720_v18, %v1624_v19  ;;  %v868_v27 = vpop.f32.mrf.mxu0 }
  0xb4   : > { %v1425_v26 = vmul.f32 %v2975_v16, %v1044_v24  ;;  %v1911_v28 = vmax.f32 %v1815_v22, 0.0  ;;  %v1599_v29 = vadd.f32 %v2952_v6, %v1495_v23  ;;  %v1426_v30 = vmul.f32 %v2948_v4, %v868_v27  ;;  %v957_v31 = vpop.f32.mrf.mxu1 }
  0xb5   : > { %v1912_v32 = vmax.f32 %v1816_v25, 0.0  ;;  %v1427_v35 = vmul.f32 %v2950_v5, %v957_v31 }
  0xb6   : > { %v1529_v34 = vadd.f32 %v2978_v21, %v1425_v26  ;;  %2007 = vst [vmem:[%s2987_s27] sm:$0xff] %v1911_v28  ;;  %v1695_v36 = vmax.f32 %v1599_v29, 0.0  ;;  %v1530_v38 = vadd.f32 %v2952_v6, %v1426_v30 }
  0xb7   : > { %2008 = vst [vmem:[%s2987_s27 + $0x8] sm:$0xff] %v1912_v32  ;;  %v1531_v41 = vadd.f32 %v2955_v9, %v1427_v35 }
  0xb8   : > { %v1625_v39 = vmax.f32 %v1529_v34, 0.0  ;;  %v1887_v42 = vadd.f32 %v1791_v33, %v1695_v36  ;;  %v1626_v43 = vmax.f32 %v1530_v38, 0.0  ;;  %v1797_v34 = vld [vmem:[%s2960_s17 + $0x270] sm:$0xff]  ;;  %v1727_v38 = vld [vmem:[%s2960_s17 + $0x40] sm:$0xff] }
  0xb9   : > { %v1627_v46 = vmax.f32 %v1531_v41, 0.0  ;;  %v928_v47 = vpop.f32.mrf.mxu3  ;;  %v1728_v41 = vld [vmem:[%s2960_s17 + $0x48] sm:$0xff] }
  0xba   : > { %v1817_v45 = vadd.f32 %v1721_v37, %v1625_v39  ;;  %v1983_v48 = vmax.f32 %v1887_v42, 0.0  ;;  %v1818_v49 = vadd.f32 %v1722_v40, %v1626_v43  ;;  %v1498_v50 = vmul.f32 %v2948_v4, %v928_v47 }
  0xbb   : > { %v1046_v51 = vpop.f32.mrf.mxu2  ;;  %v1819_v54 = vadd.f32 %v1723_v44, %v1627_v46  ;;  %v871_v56 = vpop.f32.mrf.mxu0 }
  0xbc   : > { %v1913_v53 = vmax.f32 %v1817_v45, 0.0  ;;  %v1428_v55 = vmul.f32 %v2975_v16, %v1046_v51  ;;  %2079 = vst [vmem:[%s2987_s27 + $0x240] sm:$0xff] %v1983_v48  ;;  %v1914_v58 = vmax.f32 %v1818_v49, 0.0  ;;  %v1602_v60 = vadd.f32 %v2952_v6, %v1498_v50  ;;  %v960_v63 = vpop.f32.mrf.mxu1  ;;  %v1729_v45 = vld [vmem:[%s2960_s17 + $0x50] sm:$0xff] }
  0xbd   : > { %v1429_v62 = vmul.f32 %v2948_v4, %v871_v56  ;;  %v1915_v0 = vmax.f32 %v1819_v54, 0.0  ;;  %v1430_v3 = vmul.f32 %v2950_v5, %v960_v63 }
  0xbe   : > { %2009 = vst [vmem:[%s2987_s27 + $0x10] sm:$0xff] %v1913_v53  ;;  %v1532_v2 = vadd.f32 %v2978_v21, %v1428_v55  ;;  %v1698_v7 = vmax.f32 %v1602_v60, 0.0  ;;  %2421 = vmatmul.msk.bf16.gmra.mxu0 %vm808_vm0, %v2474_v52  ;;  %2457 = vmatmul.msk.bf16.gmra.mxu3 %vm808_vm0, %v2889_v57  ;;  %v2475_v53 = vld [vmem:[%s2874_s9 + $0x50] sm:$0xff] }
  0xbf   : > { %2010 = vst [vmem:[%s2987_s27 + $0x18] sm:$0xff] %v1914_v58  ;;  %v1533_v10 = vadd.f32 %v2952_v6, %v1429_v62  ;;  %v1534_v13 = vadd.f32 %v2955_v9, %v1430_v3  ;;  %2437 = vmatmul.msk.bf16.gmra.mxu1 %vm808_vm0, %v2474_v52 }
  0xc0   : > { %2011 = vst [vmem:[%s2987_s27 + $0x20] sm:$0xff] %v1915_v0  ;;  %v1628_v11 = vmax.f32 %v1532_v2, 0.0  ;;  %2453 = vmatmul.msk.bf16.gmra.mxu2 %vm808_vm0, %v2474_v52  ;;  %v1890_v14 = vadd.f32 %v1794_v1, %v1698_v7  ;;  %v1800_v2 = vld [vmem:[%s2960_s17 + $0x288] sm:$0xff] }
  0xc1   : > { %v1629_v15 = vmax.f32 %v1533_v10, 0.0  ;;  %v1630_v19 = vmax.f32 %v1534_v13, 0.0  ;;  %v931_v20 = vpop.f32.mrf.mxu3  ;;  %v1730_v10 = vld [vmem:[%s2960_s17 + $0x58] sm:$0xff]  ;;  %v1731_v13 = vld [vmem:[%s2960_s17 + $0x60] sm:$0xff] }
  0xc2   : > { %v1820_v18 = vadd.f32 %v1724_v8, %v1628_v11  ;;  %v1986_v22 = vmax.f32 %v1890_v14, 0.0  ;;  %v1501_v23 = vmul.f32 %v2948_v4, %v931_v20 }
  0xc3   : > { %v1821_v57 = vadd.f32 %v1725_v12, %v1629_v15  ;;  %v1049_v24 = vpop.f32.mrf.mxu2  ;;  %v1822_v26 = vadd.f32 %v1726_v17, %v1630_v19  ;;  %v873_v28 = vpop.f32.mrf.mxu0 }
  0xc4   : > { %v1916_v25 = vmax.f32 %v1820_v18, 0.0  ;;  %v1431_v27 = vmul.f32 %v2975_v16, %v1049_v24  ;;  %2082 = vst [vmem:[%s2987_s27 + $0x258] sm:$0xff] %v1986_v22  ;;  %v1605_v30 = vadd.f32 %v2952_v6, %v1501_v23  ;;  %v1432_v31 = vmul.f32 %v2948_v4, %v873_v28  ;;  %v962_v32 = vpop.f32.mrf.mxu1  ;;  %v1732_v18 = vld [vmem:[%s2960_s17 + $0x68] sm:$0xff] }
  0xc5   : > { %v1917_v29 = vmax.f32 %v1821_v57, 0.0  ;;  %v1918_v33 = vmax.f32 %v1822_v26, 0.0  ;;  %v1433_v36 = vmul.f32 %v2950_v5, %v962_v32 }
  0xc6   : > { %2012 = vst [vmem:[%s2987_s27 + $0x28] sm:$0xff] %v1916_v25  ;;  %v1535_v35 = vadd.f32 %v2978_v21, %v1431_v27  ;;  %v1701_v37 = vmax.f32 %v1605_v30, 0.0  ;;  %v1536_v39 = vadd.f32 %v2952_v6, %v1432_v31 }
  0xc7   : > { %2013 = vst [vmem:[%s2987_s27 + $0x30] sm:$0xff] %v1917_v29  ;;  %v1537_v42 = vadd.f32 %v2955_v9, %v1433_v36 }
  0xc8   : > { %2014 = vst [vmem:[%s2987_s27 + $0x38] sm:$0xff] %v1918_v33  ;;  %v1631_v40 = vmax.f32 %v1535_v35, 0.0  ;;  %v1893_v43 = vadd.f32 %v1797_v34, %v1701_v37  ;;  %v1632_v44 = vmax.f32 %v1536_v39, 0.0  ;;  %v1803_v34 = vld [vmem:[%s2960_s17 + $0x2a0] sm:$0xff] }
  0xc9   : > { %v1633_v47 = vmax.f32 %v1537_v42, 0.0  ;;  %v933_v48 = vpop.f32.mrf.mxu3 }
  0xca   : > { %v1823_v46 = vadd.f32 %v1727_v38, %v1631_v40  ;;  %v1989_v49 = vmax.f32 %v1893_v43, 0.0  ;;  %v1824_v50 = vadd.f32 %v1728_v41, %v1632_v44  ;;  %v1504_v51 = vmul.f32 %v2948_v4, %v933_v48  ;;  %v1733_v38 = vld [vmem:[%s2960_s17 + $0x70] sm:$0xff]  ;;  %v1734_v41 = vld [vmem:[%s2960_s17 + $0x78] sm:$0xff] }
  0xcb   : > { %v1051_v52 = vpop.f32.mrf.mxu2  ;;  %v1825_v55 = vadd.f32 %v1729_v45, %v1633_v47  ;;  %v876_v58 = vpop.f32.mrf.mxu0  ;;  %v1735_v45 = vld [vmem:[%s2960_s17 + $0x80] sm:$0xff] }
  0xcc   : > { %v1919_v54 = vmax.f32 %v1823_v46, 0.0  ;;  %v1434_v56 = vmul.f32 %v2975_v16, %v1051_v52  ;;  %2085 = vst [vmem:[%s2987_s27 + $0x270] sm:$0xff] %v1989_v49  ;;  %v1920_v60 = vmax.f32 %v1824_v50, 0.0  ;;  %v1608_v62 = vadd.f32 %v2952_v6, %v1504_v51  ;;  %v965_v0 = vpop.f32.mrf.mxu1 }
  0xcd   : > { %v1435_v63 = vmul.f32 %v2948_v4, %v876_v58  ;;  %v1921_v1 = vmax.f32 %v1825_v55, 0.0  ;;  %v1436_v7 = vmul.f32 %v2950_v5, %v965_v0 }
  0xce   : > { %2015 = vst [vmem:[%s2987_s27 + $0x40] sm:$0xff] %v1919_v54  ;;  %v1538_v3 = vadd.f32 %v2978_v21, %v1434_v56  ;;  %v1704_v8 = vmax.f32 %v1608_v62, 0.0  ;;  %2422 = vmatmul.msk.bf16.gmra.mxu0 %vm808_vm0, %v2475_v53  ;;  %2458 = vmatmul.msk.bf16.gmra.mxu3 %vm808_vm0, %v2900_v59 }
  0xcf   : > { %2016 = vst [vmem:[%s2987_s27 + $0x48] sm:$0xff] %v1920_v60  ;;  %v1539_v11 = vadd.f32 %v2952_v6, %v1435_v63  ;;  %v1540_v14 = vadd.f32 %v2955_v9, %v1436_v7  ;;  %2438 = vmatmul.msk.bf16.gmra.mxu1 %vm808_vm0, %v2475_v53 }
  0xd0   : > { %2017 = vst [vmem:[%s2987_s27 + $0x50] sm:$0xff] %v1921_v1  ;;  %v1634_v12 = vmax.f32 %v1538_v3, 0.0  ;;  %2454 = vmatmul.msk.bf16.gmra.mxu2 %vm808_vm0, %v2475_v53  ;;  %v1896_v15 = vadd.f32 %v1800_v2, %v1704_v8  ;;  %v2476_v53 = vld [vmem:[%s2874_s9 + $0x58] sm:$0xff]  ;;  %s2119_s9 = sshll.u32 %s2987_s27, 4  ;;  %s2120_s9 = int_to_ptr.vmem [resolvable:$true] %s2119_s9 }
  0xd1   : > { %v1635_v17 = vmax.f32 %v1539_v11, 0.0  ;;  %v1636_v20 = vmax.f32 %v1540_v14, 0.0  ;;  %v936_v22 = vpop.f32.mrf.mxu3  ;;  %v1806_v2 = vld [vmem:[%s2960_s17 + $0x2b8] sm:$0xff] }
  0xd2   : > { %v1826_v19 = vadd.f32 %v1730_v10, %v1634_v12  ;;  %v1992_v57 = vmax.f32 %v1896_v15, 0.0  ;;  %v1507_v23 = vmul.f32 %v2948_v4, %v936_v22  ;;  %v1736_v10 = vld [vmem:[%s2960_s17 + $0x88] sm:$0xff] }
  0xd3   : > { %v1827_v59 = vadd.f32 %v1731_v13, %v1635_v17  ;;  %v1054_v24 = vpop.f32.mrf.mxu2  ;;  %v1828_v26 = vadd.f32 %v1732_v18, %v1636_v20  ;;  %v878_v28 = vpop.f32.mrf.mxu0  ;;  %v1737_v13 = vld [vmem:[%s2960_s17 + $0x90] sm:$0xff]  ;;  %v1738_v18 = vld [vmem:[%s2960_s17 + $0x98] sm:$0xff] }
  0xd4   : > { %v1922_v25 = vmax.f32 %v1826_v19, 0.0  ;;  %v1437_v27 = vmul.f32 %v2975_v16, %v1054_v24  ;;  %2088 = vst [vmem:[%s2987_s27 + $0x288] sm:$0xff] %v1992_v57  ;;  %v1611_v30 = vadd.f32 %v2952_v6, %v1507_v23  ;;  %v1438_v31 = vmul.f32 %v2948_v4, %v878_v28  ;;  %v967_v32 = vpop.f32.mrf.mxu1 }
  0xd5   : > { %v1923_v29 = vmax.f32 %v1827_v59, 0.0  ;;  %v1924_v33 = vmax.f32 %v1828_v26, 0.0  ;;  %v1439_v36 = vmul.f32 %v2950_v5, %v967_v32 }
  0xd6   : > { %2018 = vst [vmem:[%s2987_s27 + $0x58] sm:$0xff] %v1922_v25  ;;  %v1541_v35 = vadd.f32 %v2978_v21, %v1437_v27  ;;  %v1707_v37 = vmax.f32 %v1611_v30, 0.0  ;;  %v1542_v39 = vadd.f32 %v2952_v6, %v1438_v31 }
  0xd7   : > { %2019 = vst [vmem:[%s2987_s27 + $0x60] sm:$0xff] %v1923_v29  ;;  %v1543_v42 = vadd.f32 %v2955_v9, %v1439_v36 }
  0xd8   : > { %2020 = vst [vmem:[%s2987_s27 + $0x68] sm:$0xff] %v1924_v33  ;;  %v1637_v40 = vmax.f32 %v1541_v35, 0.0  ;;  %v1899_v43 = vadd.f32 %v1803_v34, %v1707_v37  ;;  %v1638_v44 = vmax.f32 %v1542_v39, 0.0  ;;  %v1809_v33 = vld [vmem:[%s2960_s17 + $0x2d0] sm:$0xff]  ;;  %v1739_v37 = vld [vmem:[%s2960_s17 + $0xa0] sm:$0xff] }
  0xd9   : > { %v1639_v47 = vmax.f32 %v1543_v42, 0.0  ;;  %v938_v48 = vpop.f32.mrf.mxu3 }
  0xda   : > { %v1829_v46 = vadd.f32 %v1733_v38, %v1637_v40  ;;  %v1995_v49 = vmax.f32 %v1899_v43, 0.0  ;;  %v1830_v50 = vadd.f32 %v1734_v41, %v1638_v44  ;;  %v1510_v51 = vmul.f32 %v2948_v4, %v938_v48  ;;  %v1740_v40 = vld [vmem:[%s2960_s17 + $0xa8] sm:$0xff]  ;;  %v1741_v44 = vld [vmem:[%s2960_s17 + $0xb0] sm:$0xff] }
  0xdb   : > { %v1056_v52 = vpop.f32.mrf.mxu2  ;;  %v1831_v55 = vadd.f32 %v1735_v45, %v1639_v47  ;;  %v881_v58 = vpop.f32.mrf.mxu0 }
  0xdc   : > { %v1925_v54 = vmax.f32 %v1829_v46, 0.0  ;;  %v1440_v56 = vmul.f32 %v2975_v16, %v1056_v52  ;;  %2091 = vst [vmem:[%s2987_s27 + $0x2a0] sm:$0xff] %v1995_v49  ;;  %v1926_v60 = vmax.f32 %v1830_v50, 0.0  ;;  %v1614_v62 = vadd.f32 %v2952_v6, %v1510_v51  ;;  %v970_v0 = vpop.f32.mrf.mxu1 }
  0xdd   : > { %v1441_v63 = vmul.f32 %v2948_v4, %v881_v58  ;;  %v1927_v1 = vmax.f32 %v1831_v55, 0.0  ;;  %v1442_v7 = vmul.f32 %v2950_v5, %v970_v0  ;;  %v1812_v0 = vld [vmem:[%s2960_s17 + $0x2e8] sm:$0xff] }
  0xde   : > { %2021 = vst [vmem:[%s2987_s27 + $0x70] sm:$0xff] %v1925_v54  ;;  %v1544_v3 = vadd.f32 %v2978_v21, %v1440_v56  ;;  %v1710_v8 = vmax.f32 %v1614_v62, 0.0  ;;  %2423 = vmatmul.msk.bf16.gmra.mxu0 %vm808_vm0, %v2476_v53  ;;  %2459 = vmatmul.msk.bf16.gmra.mxu3 %vm808_vm0, %v2910_v61 }
  0xdf   : > { %2022 = vst [vmem:[%s2987_s27 + $0x78] sm:$0xff] %v1926_v60  ;;  %v1545_v11 = vadd.f32 %v2952_v6, %v1441_v63  ;;  %v1546_v14 = vadd.f32 %v2955_v9, %v1442_v7  ;;  %2439 = vmatmul.msk.bf16.gmra.mxu1 %vm808_vm0, %v2476_v53  ;;  %v1742_v7 = vld [vmem:[%s2960_s17 + $0xb8] sm:$0xff] }
  0xe0   : > { %2023 = vst [vmem:[%s2987_s27 + $0x80] sm:$0xff] %v1927_v1  ;;  %v1640_v12 = vmax.f32 %v1544_v3, 0.0  ;;  %2455 = vmatmul.msk.bf16.gmra.mxu2 %vm808_vm0, %v2476_v53  ;;  %v1902_v15 = vadd.f32 %v1806_v2, %v1710_v8 }
  0xe1   : > { %v1641_v17 = vmax.f32 %v1545_v11, 0.0  ;;  %v1642_v20 = vmax.f32 %v1546_v14, 0.0  ;;  %v941_v22 = vpop.f32.mrf.mxu3  ;;  %v1743_v11 = vld [vmem:[%s2960_s17 + $0xc0] sm:$0xff] }
  0xe2   : > { %v1832_v19 = vadd.f32 %v1736_v10, %v1640_v12  ;;  %v1998_v57 = vmax.f32 %v1902_v15, 0.0  ;;  %v1513_v59 = vmul.f32 %v2948_v4, %v941_v22  ;;  %v1744_v15 = vld [vmem:[%s2960_s17 + $0xc8] sm:$0xff] }
  0xe3   : > { %v1833_v61 = vadd.f32 %v1737_v13, %v1641_v17  ;;  %v1059_v23 = vpop.f32.mrf.mxu2  ;;  %v1834_v25 = vadd.f32 %v1738_v18, %v1642_v20  ;;  %v883_v27 = vpop.f32.mrf.mxu0 }
  0xe4   : > { %v1928_v24 = vmax.f32 %v1832_v19, 0.0  ;;  %v1443_v26 = vmul.f32 %v2975_v16, %v1059_v23  ;;  %2094 = vst [vmem:[%s2987_s27 + $0x2b8] sm:$0xff] %v1998_v57  ;;  %v1617_v29 = vadd.f32 %v2952_v6, %v1513_v59  ;;  %v1444_v30 = vmul.f32 %v2948_v4, %v883_v27  ;;  %v972_v31 = vpop.f32.mrf.mxu1 }
  0xe5   : > { %v1929_v28 = vmax.f32 %v1833_v61, 0.0  ;;  %v1930_v32 = vmax.f32 %v1834_v25, 0.0  ;;  %v1445_v35 = vmul.f32 %v2950_v5, %v972_v31  ;;  %v1792_v31 = vld [vmem:[%s2960_s17 + $0x248] sm:$0xff] }
  0xe6   : > { %2024 = vst [vmem:[%s2987_s27 + $0x88] sm:$0xff] %v1928_v24  ;;  %v1547_v34 = vadd.f32 %v2978_v21, %v1443_v26  ;;  %v1713_v36 = vmax.f32 %v1617_v29, 0.0  ;;  %v1548_v38 = vadd.f32 %v2952_v6, %v1444_v30 }
  0xe7   : > { %2025 = vst [vmem:[%s2987_s27 + $0x90] sm:$0xff] %v1929_v28  ;;  %v1549_v41 = vadd.f32 %v2955_v9, %v1445_v35  ;;  %v1745_v35 = vld [vmem:[%s2960_s17 + $0xd0] sm:$0xff] }
  0xe8   : > { %2026 = vst [vmem:[%s2987_s27 + $0x98] sm:$0xff] %v1930_v32  ;;  %v1643_v39 = vmax.f32 %v1547_v34, 0.0  ;;  %v1905_v42 = vadd.f32 %v1809_v33, %v1713_v36  ;;  %v1644_v43 = vmax.f32 %v1548_v38, 0.0  ;;  %v1746_v38 = vld [vmem:[%s2960_s17 + $0xd8] sm:$0xff] }
  0xe9   : > { %v1645_v46 = vmax.f32 %v1549_v41, 0.0  ;;  %v943_v47 = vpop.f32.mrf.mxu3 }
  0xea   : > { %v1835_v45 = vadd.f32 %v1739_v37, %v1643_v39  ;;  %v2001_v48 = vmax.f32 %v1905_v42, 0.0  ;;  %v1836_v49 = vadd.f32 %v1740_v40, %v1644_v43  ;;  %v1516_v50 = vmul.f32 %v2948_v4, %v943_v47  ;;  %v1747_v42 = vld [vmem:[%s2960_s17 + $0xe0] sm:$0xff] }
  0xeb   : > { %v1061_v51 = vpop.f32.mrf.mxu2  ;;  %v1837_v53 = vadd.f32 %v1741_v44, %v1645_v46  ;;  %v886_v55 = vpop.f32.mrf.mxu0 }
  0xec   : > { %v1931_v52 = vmax.f32 %v1835_v45, 0.0  ;;  %v1446_v54 = vmul.f32 %v2975_v16, %v1061_v51  ;;  %2097 = vst [vmem:[%s2987_s27 + $0x2d0] sm:$0xff] %v2001_v48  ;;  %v1932_v56 = vmax.f32 %v1836_v49, 0.0  ;;  %v1620_v58 = vadd.f32 %v2952_v6, %v1516_v50  ;;  %v975_v62 = vpop.f32.mrf.mxu1 }
  0xed   : > { %v1447_v60 = vmul.f32 %v2948_v4, %v886_v55  ;;  %v1933_v63 = vmax.f32 %v1837_v53, 0.0  ;;  %v1448_v2 = vmul.f32 %v2950_v5, %v975_v62  ;;  %v1795_v62 = vld [vmem:[%s2960_s17 + $0x260] sm:$0xff] }
  0xee   : > { %2027 = vst [vmem:[%s2987_s27 + $0xa0] sm:$0xff] %v1931_v52  ;;  %v1550_v1 = vadd.f32 %v2978_v21, %v1446_v54  ;;  %v1716_v3 = vmax.f32 %v1620_v58, 0.0 }
  0xef   : > { %2028 = vst [vmem:[%s2987_s27 + $0xa8] sm:$0xff] %v1932_v56  ;;  %v1551_v8 = vadd.f32 %v2952_v6, %v1447_v60  ;;  %v1552_v12 = vadd.f32 %v2955_v9, %v1448_v2  ;;  %v1748_v2 = vld [vmem:[%s2960_s17 + $0xe8] sm:$0xff] }
  0xf0   : > { %2029 = vst [vmem:[%s2987_s27 + $0xb0] sm:$0xff] %v1933_v63  ;;  %v1646_v10 = vmax.f32 %v1550_v1, 0.0  ;;  %v1908_v13 = vadd.f32 %v1812_v0, %v1716_v3 }
  0xf1   : > { %v1647_v14 = vmax.f32 %v1551_v8, 0.0  ;;  %v1648_v18 = vmax.f32 %v1552_v12, 0.0  ;;  %v1015_v19 = vpop.f32.mrf.mxu3  ;;  %v1749_v8 = vld [vmem:[%s2960_s17 + $0xf0] sm:$0xff] }
  0xf2   : > { %v1838_v17 = vadd.f32 %v1742_v7, %v1646_v10  ;;  %v2004_v20 = vmax.f32 %v1908_v13, 0.0  ;;  %v1496_v57 = vmul.f32 %v2950_v5, %v1015_v19  ;;  %v1750_v13 = vld [vmem:[%s2960_s17 + $0xf8] sm:$0xff] }
  0xf3   : > { %v1839_v22 = vadd.f32 %v1743_v11, %v1647_v14  ;;  %v1064_v61 = vpop.f32.mrf.mxu2  ;;  %v1840_v23 = vadd.f32 %v1744_v15, %v1648_v18  ;;  %v888_v25 = vpop.f32.mrf.mxu0 }
  0xf4   : > { %v1934_v59 = vmax.f32 %v1838_v17, 0.0  ;;  %v1449_v24 = vmul.f32 %v2975_v16, %v1064_v61  ;;  %2100 = vst [vmem:[%s2987_s27 + $0x2e8] sm:$0xff] %v2004_v20  ;;  %v1600_v27 = vadd.f32 %v2955_v9, %v1496_v57  ;;  %v1450_v28 = vmul.f32 %v2948_v4, %v888_v25  ;;  %v977_v29 = vpop.f32.mrf.mxu1 }
  0xf5   : > { %v1935_v26 = vmax.f32 %v1839_v22, 0.0  ;;  %v1936_v30 = vmax.f32 %v1840_v23, 0.0  ;;  %v1451_v33 = vmul.f32 %v2950_v5, %v977_v29  ;;  %v1798_v29 = vld [vmem:[%s2960_s17 + $0x278] sm:$0xff] }
  0xf6   : > { %2030 = vst [vmem:[%s2987_s27 + $0xb8] sm:$0xff] %v1934_v59  ;;  %v1553_v32 = vadd.f32 %v2978_v21, %v1449_v24  ;;  %v1696_v34 = vmax.f32 %v1600_v27, 0.0  ;;  %v1554_v36 = vadd.f32 %v2952_v6, %v1450_v28 }
  0xf7   : > { %2031 = vst [vmem:[%s2987_s27 + $0xc0] sm:$0xff] %v1935_v26  ;;  %v1555_v39 = vadd.f32 %v2955_v9, %v1451_v33  ;;  %v1751_v33 = vld [vmem:[%s2960_s17 + $0x100] sm:$0xff] }
  0xf8   : > { %2032 = vst [vmem:[%s2987_s27 + $0xc8] sm:$0xff] %v1936_v30  ;;  %v1649_v37 = vmax.f32 %v1553_v32, 0.0  ;;  %v1888_v40 = vadd.f32 %v1792_v31, %v1696_v34  ;;  %v1650_v41 = vmax.f32 %v1554_v36, 0.0  ;;  %v1752_v36 = vld [vmem:[%s2960_s17 + $0x108] sm:$0xff] }
  0xf9   : > { %v1651_v44 = vmax.f32 %v1555_v39, 0.0  ;;  %v1017_v45 = vpop.f32.mrf.mxu3 }
  0xfa   : > { %v1841_v43 = vadd.f32 %v1745_v35, %v1649_v37  ;;  %v1984_v46 = vmax.f32 %v1888_v40, 0.0  ;;  %v1842_v47 = vadd.f32 %v1746_v38, %v1650_v41  ;;  %v1499_v48 = vmul.f32 %v2950_v5, %v1017_v45  ;;  %v1753_v40 = vld [vmem:[%s2960_s17 + $0x110] sm:$0xff] }
  0xfb   : > { %v1066_v49 = vpop.f32.mrf.mxu2  ;;  %v1843_v51 = vadd.f32 %v1747_v42, %v1651_v44  ;;  %v891_v53 = vpop.f32.mrf.mxu0 }
  0xfc   : > { %v1937_v50 = vmax.f32 %v1841_v43, 0.0  ;;  %v1452_v52 = vmul.f32 %v2975_v16, %v1066_v49  ;;  %2080 = vst [vmem:[%s2987_s27 + $0x248] sm:$0xff] %v1984_v46  ;;  %v1938_v54 = vmax.f32 %v1842_v47, 0.0  ;;  %v1603_v55 = vadd.f32 %v2955_v9, %v1499_v48  ;;  %v980_v58 = vpop.f32.mrf.mxu1 }
  0xfd   : > { %v1453_v56 = vmul.f32 %v2948_v4, %v891_v53  ;;  %v1939_v60 = vmax.f32 %v1843_v51, 0.0  ;;  %v1454_v0 = vmul.f32 %v2950_v5, %v980_v58  ;;  %v1801_v58 = vld [vmem:[%s2960_s17 + $0x290] sm:$0xff] }
  0xfe   : > { %2033 = vst [vmem:[%s2987_s27 + $0xd0] sm:$0xff] %v1937_v50  ;;  %v1556_v63 = vadd.f32 %v2978_v21, %v1452_v52  ;;  %v1699_v1 = vmax.f32 %v1603_v55, 0.0 }
  0xff   : > { %2034 = vst [vmem:[%s2987_s27 + $0xd8] sm:$0xff] %v1938_v54  ;;  %v1557_v3 = vadd.f32 %v2952_v6, %v1453_v56  ;;  %v1558_v10 = vadd.f32 %v2955_v9, %v1454_v0  ;;  %v1754_v0 = vld [vmem:[%s2960_s17 + $0x118] sm:$0xff] }
 0x100   : > { %2035 = vst [vmem:[%s2987_s27 + $0xe0] sm:$0xff] %v1939_v60  ;;  %v1652_v7 = vmax.f32 %v1556_v63, 0.0  ;;  %v1891_v11 = vadd.f32 %v1795_v62, %v1699_v1 }
 0x101   : > { %v1653_v12 = vmax.f32 %v1557_v3, 0.0  ;;  %v1654_v15 = vmax.f32 %v1558_v10, 0.0  ;;  %v1020_v17 = vpop.f32.mrf.mxu3  ;;  %v1755_v3 = vld [vmem:[%s2960_s17 + $0x120] sm:$0xff] }
 0x102   : > { %v1844_v14 = vadd.f32 %v1748_v2, %v1652_v7  ;;  %v1987_v18 = vmax.f32 %v1891_v11, 0.0  ;;  %v1502_v20 = vmul.f32 %v2950_v5, %v1020_v17  ;;  %v1756_v11 = vld [vmem:[%s2960_s17 + $0x128] sm:$0xff] }
 0x103   : > { %v1845_v19 = vadd.f32 %v1749_v8, %v1653_v12  ;;  %v1069_v22 = vpop.f32.mrf.mxu2  ;;  %v1846_v61 = vadd.f32 %v1750_v13, %v1654_v15  ;;  %v893_v23 = vpop.f32.mrf.mxu0 }
 0x104   : > { %v1940_v57 = vmax.f32 %v1844_v14, 0.0  ;;  %v1455_v59 = vmul.f32 %v2975_v16, %v1069_v22  ;;  %2083 = vst [vmem:[%s2987_s27 + $0x260] sm:$0xff] %v1987_v18  ;;  %v1606_v25 = vadd.f32 %v2955_v9, %v1502_v20  ;;  %v1456_v26 = vmul.f32 %v2948_v4, %v893_v23  ;;  %v982_v27 = vpop.f32.mrf.mxu1 }
 0x105   : > { %v1941_v24 = vmax.f32 %v1845_v19, 0.0  ;;  %v1942_v28 = vmax.f32 %v1846_v61, 0.0  ;;  %v1457_v31 = vmul.f32 %v2950_v5, %v982_v27  ;;  %v1804_v27 = vld [vmem:[%s2960_s17 + $0x2a8] sm:$0xff] }
 0x106   : > { %2036 = vst [vmem:[%s2987_s27 + $0xe8] sm:$0xff] %v1940_v57  ;;  %v1559_v30 = vadd.f32 %v2978_v21, %v1455_v59  ;;  %v1702_v32 = vmax.f32 %v1606_v25, 0.0  ;;  %v1560_v34 = vadd.f32 %v2952_v6, %v1456_v26 }
 0x107   : > { %2037 = vst [vmem:[%s2987_s27 + $0xf0] sm:$0xff] %v1941_v24  ;;  %v1561_v37 = vadd.f32 %v2955_v9, %v1457_v31  ;;  %v1757_v31 = vld [vmem:[%s2960_s17 + $0x130] sm:$0xff] }
 0x108   : > { %2038 = vst [vmem:[%s2987_s27 + $0xf8] sm:$0xff] %v1942_v28  ;;  %v1655_v35 = vmax.f32 %v1559_v30, 0.0  ;;  %v1894_v38 = vadd.f32 %v1798_v29, %v1702_v32  ;;  %v1656_v39 = vmax.f32 %v1560_v34, 0.0  ;;  %v1758_v34 = vld [vmem:[%s2960_s17 + $0x138] sm:$0xff] }
 0x109   : > { %v1657_v42 = vmax.f32 %v1561_v37, 0.0  ;;  %v1022_v43 = vpop.f32.mrf.mxu3 }
 0x10a   : > { %v1847_v41 = vadd.f32 %v1751_v33, %v1655_v35  ;;  %v1990_v44 = vmax.f32 %v1894_v38, 0.0  ;;  %v1848_v45 = vadd.f32 %v1752_v36, %v1656_v39  ;;  %v1505_v46 = vmul.f32 %v2950_v5, %v1022_v43  ;;  %v1759_v38 = vld [vmem:[%s2960_s17 + $0x140] sm:$0xff] }
 0x10b   : > { %v1071_v47 = vpop.f32.mrf.mxu2  ;;  %v1849_v49 = vadd.f32 %v1753_v40, %v1657_v42  ;;  %v896_v51 = vpop.f32.mrf.mxu0 }
 0x10c   : > { %v1943_v48 = vmax.f32 %v1847_v41, 0.0  ;;  %v1458_v50 = vmul.f32 %v2975_v16, %v1071_v47  ;;  %2086 = vst [vmem:[%s2987_s27 + $0x278] sm:$0xff] %v1990_v44  ;;  %v1944_v52 = vmax.f32 %v1848_v45, 0.0  ;;  %v1609_v53 = vadd.f32 %v2955_v9, %v1505_v46  ;;  %v985_v55 = vpop.f32.mrf.mxu1 }
 0x10d   : > { %v1459_v54 = vmul.f32 %v2948_v4, %v896_v51  ;;  %v1945_v56 = vmax.f32 %v1849_v49, 0.0  ;;  %v1460_v62 = vmul.f32 %v2950_v5, %v985_v55  ;;  %v1807_v55 = vld [vmem:[%s2960_s17 + $0x2c0] sm:$0xff] }
 0x10e   : > { %2039 = vst [vmem:[%s2987_s27 + $0x100] sm:$0xff] %v1943_v48  ;;  %v1562_v60 = vadd.f32 %v2978_v21, %v1458_v50  ;;  %v1705_v63 = vmax.f32 %v1609_v53, 0.0 }
 0x10f   : > { %2040 = vst [vmem:[%s2987_s27 + $0x108] sm:$0xff] %v1944_v52  ;;  %v1563_v1 = vadd.f32 %v2952_v6, %v1459_v54  ;;  %v1564_v7 = vadd.f32 %v2955_v9, %v1460_v62  ;;  %v1760_v62 = vld [vmem:[%s2960_s17 + $0x148] sm:$0xff] }
 0x110   : > { %2041 = vst [vmem:[%s2987_s27 + $0x110] sm:$0xff] %v1945_v56  ;;  %v1658_v2 = vmax.f32 %v1562_v60, 0.0  ;;  %v1897_v8 = vadd.f32 %v1801_v58, %v1705_v63 }
 0x111   : > { %v1659_v10 = vmax.f32 %v1563_v1, 0.0  ;;  %v1660_v13 = vmax.f32 %v1564_v7, 0.0  ;;  %v1025_v14 = vpop.f32.mrf.mxu3  ;;  %v1761_v1 = vld [vmem:[%s2960_s17 + $0x150] sm:$0xff] }
 0x112   : > { %v1850_v12 = vadd.f32 %v1754_v0, %v1658_v2  ;;  %v1993_v15 = vmax.f32 %v1897_v8, 0.0  ;;  %v1508_v18 = vmul.f32 %v2950_v5, %v1025_v14  ;;  %v1762_v8 = vld [vmem:[%s2960_s17 + $0x158] sm:$0xff] }
 0x113   : > { %v1851_v17 = vadd.f32 %v1755_v3, %v1659_v10  ;;  %v1074_v19 = vpop.f32.mrf.mxu2  ;;  %v1852_v22 = vadd.f32 %v1756_v11, %v1660_v13  ;;  %v898_v61 = vpop.f32.mrf.mxu0 }
 0x114   : > { %v1946_v20 = vmax.f32 %v1850_v12, 0.0  ;;  %v1461_v57 = vmul.f32 %v2975_v16, %v1074_v19  ;;  %2089 = vst [vmem:[%s2987_s27 + $0x290] sm:$0xff] %v1993_v15  ;;  %v1612_v23 = vadd.f32 %v2955_v9, %v1508_v18  ;;  %v1462_v24 = vmul.f32 %v2948_v4, %v898_v61  ;;  %v987_v25 = vpop.f32.mrf.mxu1 }
 0x115   : > { %v1947_v59 = vmax.f32 %v1851_v17, 0.0  ;;  %v1948_v26 = vmax.f32 %v1852_v22, 0.0  ;;  %v1463_v29 = vmul.f32 %v2950_v5, %v987_v25  ;;  %v1810_v25 = vld [vmem:[%s2960_s17 + $0x2d8] sm:$0xff] }
 0x116   : > { %2042 = vst [vmem:[%s2987_s27 + $0x118] sm:$0xff] %v1946_v20  ;;  %v1565_v28 = vadd.f32 %v2978_v21, %v1461_v57  ;;  %v1708_v30 = vmax.f32 %v1612_v23, 0.0  ;;  %v1566_v32 = vadd.f32 %v2952_v6, %v1462_v24 }
 0x117   : > { %2043 = vst [vmem:[%s2987_s27 + $0x120] sm:$0xff] %v1947_v59  ;;  %v1567_v35 = vadd.f32 %v2955_v9, %v1463_v29  ;;  %v1763_v29 = vld [vmem:[%s2960_s17 + $0x160] sm:$0xff] }
 0x118   : > { %2044 = vst [vmem:[%s2987_s27 + $0x128] sm:$0xff] %v1948_v26  ;;  %v1661_v33 = vmax.f32 %v1565_v28, 0.0  ;;  %v1900_v36 = vadd.f32 %v1804_v27, %v1708_v30  ;;  %v1662_v37 = vmax.f32 %v1566_v32, 0.0  ;;  %v1764_v32 = vld [vmem:[%s2960_s17 + $0x168] sm:$0xff] }
 0x119   : > { %v1663_v40 = vmax.f32 %v1567_v35, 0.0  ;;  %v1027_v41 = vpop.f32.mrf.mxu3 }
 0x11a   : > { %v1853_v39 = vadd.f32 %v1757_v31, %v1661_v33  ;;  %v1996_v42 = vmax.f32 %v1900_v36, 0.0  ;;  %v1854_v43 = vadd.f32 %v1758_v34, %v1662_v37  ;;  %v1511_v44 = vmul.f32 %v2950_v5, %v1027_v41  ;;  %v1765_v36 = vld [vmem:[%s2960_s17 + $0x170] sm:$0xff] }
 0x11b   : > { %v1076_v45 = vpop.f32.mrf.mxu2  ;;  %v1855_v47 = vadd.f32 %v1759_v38, %v1663_v40  ;;  %v901_v49 = vpop.f32.mrf.mxu0 }
 0x11c   : > { %v1949_v46 = vmax.f32 %v1853_v39, 0.0  ;;  %v1464_v48 = vmul.f32 %v2975_v16, %v1076_v45  ;;  %2092 = vst [vmem:[%s2987_s27 + $0x2a8] sm:$0xff] %v1996_v42  ;;  %v1950_v50 = vmax.f32 %v1854_v43, 0.0  ;;  %v1615_v51 = vadd.f32 %v2955_v9, %v1511_v44  ;;  %v990_v53 = vpop.f32.mrf.mxu1 }
 0x11d   : > { %v1465_v52 = vmul.f32 %v2948_v4, %v901_v49  ;;  %v1951_v54 = vmax.f32 %v1855_v47, 0.0  ;;  %v1466_v58 = vmul.f32 %v2950_v5, %v990_v53  ;;  %v1813_v53 = vld [vmem:[%s2960_s17 + $0x2f0] sm:$0xff] }
 0x11e   : > { %2045 = vst [vmem:[%s2987_s27 + $0x130] sm:$0xff] %v1949_v46  ;;  %v1568_v56 = vadd.f32 %v2978_v21, %v1464_v48  ;;  %v1711_v60 = vmax.f32 %v1615_v51, 0.0 }
 0x11f   : > { %2046 = vst [vmem:[%s2987_s27 + $0x138] sm:$0xff] %v1950_v50  ;;  %v1569_v63 = vadd.f32 %v2952_v6, %v1465_v52  ;;  %v1570_v2 = vadd.f32 %v2955_v9, %v1466_v58  ;;  %v1766_v58 = vld [vmem:[%s2960_s17 + $0x178] sm:$0xff] }
 0x120   : > { %2047 = vst [vmem:[%s2987_s27 + $0x140] sm:$0xff] %v1951_v54  ;;  %v1664_v0 = vmax.f32 %v1568_v56, 0.0  ;;  %v1903_v3 = vadd.f32 %v1807_v55, %v1711_v60 }
 0x121   : > { %v1665_v7 = vmax.f32 %v1569_v63, 0.0  ;;  %v1666_v11 = vmax.f32 %v1570_v2, 0.0  ;;  %v1030_v12 = vpop.f32.mrf.mxu3  ;;  %v1767_v63 = vld [vmem:[%s2960_s17 + $0x180] sm:$0xff] }
 0x122   : > { %v1856_v10 = vadd.f32 %v1760_v62, %v1664_v0  ;;  %v1999_v13 = vmax.f32 %v1903_v3, 0.0  ;;  %v1514_v15 = vmul.f32 %v2950_v5, %v1030_v12  ;;  %v1768_v3 = vld [vmem:[%s2960_s17 + $0x188] sm:$0xff] }
 0x123   : > { %v1857_v14 = vadd.f32 %v1761_v1, %v1665_v7  ;;  %v1079_v17 = vpop.f32.mrf.mxu2  ;;  %v1858_v19 = vadd.f32 %v1762_v8, %v1666_v11  ;;  %v903_v22 = vpop.f32.mrf.mxu0 }
 0x124   : > { %v1952_v18 = vmax.f32 %v1856_v10, 0.0  ;;  %v1467_v20 = vmul.f32 %v2975_v16, %v1079_v17  ;;  %2095 = vst [vmem:[%s2987_s27 + $0x2c0] sm:$0xff] %v1999_v13  ;;  %v1618_v61 = vadd.f32 %v2955_v9, %v1514_v15  ;;  %v1468_v59 = vmul.f32 %v2948_v4, %v903_v22  ;;  %v992_v23 = vpop.f32.mrf.mxu1 }
 0x125   : > { %v1953_v57 = vmax.f32 %v1857_v14, 0.0  ;;  %v1954_v24 = vmax.f32 %v1858_v19, 0.0  ;;  %v1469_v27 = vmul.f32 %v2950_v5, %v992_v23 }
 0x126   : > { %2048 = vst [vmem:[%s2987_s27 + $0x148] sm:$0xff] %v1952_v18  ;;  %v1571_v26 = vadd.f32 %v2978_v21, %v1467_v20  ;;  %v1714_v28 = vmax.f32 %v1618_v61, 0.0  ;;  %v1572_v30 = vadd.f32 %v2952_v6, %v1468_v59 }
 0x127   : > { %2049 = vst [vmem:[%s2987_s27 + $0x150] sm:$0xff] %v1953_v57  ;;  %v1573_v33 = vadd.f32 %v2955_v9, %v1469_v27 }
 0x128   : > { %2050 = vst [vmem:[%s2987_s27 + $0x158] sm:$0xff] %v1954_v24  ;;  %v1667_v31 = vmax.f32 %v1571_v26, 0.0  ;;  %v1906_v34 = vadd.f32 %v1810_v25, %v1714_v28  ;;  %v1668_v35 = vmax.f32 %v1572_v30, 0.0  ;;  %v1793_v24 = vld [vmem:[%s2960_s17 + $0x250] sm:$0xff]  ;;  %v1770_v30 = vld [vmem:[%s2960_s17 + $0x198] sm:$0xff] }
 0x129   : > { %v1669_v38 = vmax.f32 %v1573_v33, 0.0  ;;  %v1032_v39 = vpop.f32.mrf.mxu3  ;;  %v1769_v26 = vld [vmem:[%s2960_s17 + $0x190] sm:$0xff] }
 0x12a   : > { %v1859_v37 = vadd.f32 %v1763_v29, %v1667_v31  ;;  %v2002_v40 = vmax.f32 %v1906_v34, 0.0  ;;  %v1860_v41 = vadd.f32 %v1764_v32, %v1668_v35  ;;  %v1517_v42 = vmul.f32 %v2950_v5, %v1032_v39  ;;  %v1771_v34 = vld [vmem:[%s2960_s17 + $0x1a0] sm:$0xff] }
 0x12b   : > { %v1081_v43 = vpop.f32.mrf.mxu2  ;;  %v1861_v45 = vadd.f32 %v1765_v36, %v1669_v38  ;;  %v906_v47 = vpop.f32.mrf.mxu0 }
 0x12c   : > { %v1955_v44 = vmax.f32 %v1859_v37, 0.0  ;;  %v1470_v46 = vmul.f32 %v2975_v16, %v1081_v43  ;;  %2098 = vst [vmem:[%s2987_s27 + $0x2d8] sm:$0xff] %v2002_v40  ;;  %v1956_v48 = vmax.f32 %v1860_v41, 0.0  ;;  %v1621_v49 = vadd.f32 %v2955_v9, %v1517_v42  ;;  %v995_v51 = vpop.f32.mrf.mxu1 }
 0x12d   : > { %v1471_v50 = vmul.f32 %v2948_v4, %v906_v47  ;;  %v1957_v52 = vmax.f32 %v1861_v45, 0.0  ;;  %v1472_v55 = vmul.f32 %v2950_v5, %v995_v51 }
 0x12e   : > { %2051 = vst [vmem:[%s2987_s27 + $0x160] sm:$0xff] %v1955_v44  ;;  %v1574_v54 = vadd.f32 %v2978_v21, %v1470_v46  ;;  %v1717_v56 = vmax.f32 %v1621_v49, 0.0 }
 0x12f   : > { %2052 = vst [vmem:[%s2987_s27 + $0x168] sm:$0xff] %v1956_v48  ;;  %v1575_v60 = vadd.f32 %v2952_v6, %v1471_v50  ;;  %v1576_v0 = vadd.f32 %v2955_v9, %v1472_v55 }
 0x130   : > { %2053 = vst [vmem:[%s2987_s27 + $0x170] sm:$0xff] %v1957_v52  ;;  %v1670_v62 = vmax.f32 %v1574_v54, 0.0  ;;  %v1909_v1 = vadd.f32 %v1813_v53, %v1717_v56  ;;  %v1796_v52 = vld [vmem:[%s2960_s17 + $0x268] sm:$0xff] }
 0x131   : > { %v1671_v2 = vmax.f32 %v1575_v60, 0.0  ;;  %v1672_v8 = vmax.f32 %v1576_v0, 0.0  ;;  %v1104_v10 = vpop.f32.mrf.mxu3  ;;  %v1772_v54 = vld [vmem:[%s2960_s17 + $0x1a8] sm:$0xff]  ;;  %v1773_v60 = vld [vmem:[%s2960_s17 + $0x1b0] sm:$0xff] }
 0x132   : > { %v1862_v7 = vadd.f32 %v1766_v58, %v1670_v62  ;;  %v2005_v11 = vmax.f32 %v1909_v1, 0.0  ;;  %v1497_v14 = vmul.f32 %v2975_v16, %v1104_v10  ;;  %v1774_v1 = vld [vmem:[%s2960_s17 + $0x1b8] sm:$0xff] }
 0x133   : > { %v1863_v12 = vadd.f32 %v1767_v63, %v1671_v2  ;;  %v1084_v13 = vpop.f32.mrf.mxu2  ;;  %v1864_v17 = vadd.f32 %v1768_v3, %v1672_v8  ;;  %v908_v19 = vpop.f32.mrf.mxu0 }
 0x134   : > { %v1958_v15 = vmax.f32 %v1862_v7, 0.0  ;;  %v1473_v18 = vmul.f32 %v2975_v16, %v1084_v13  ;;  %2101 = vst [vmem:[%s2987_s27 + $0x2f0] sm:$0xff] %v2005_v11  ;;  %v1601_v22 = vadd.f32 %v2978_v21, %v1497_v14  ;;  %v1474_v57 = vmul.f32 %v2948_v4, %v908_v19  ;;  %v997_v61 = vpop.f32.mrf.mxu1 }
 0x135   : > { %v1959_v20 = vmax.f32 %v1863_v12, 0.0  ;;  %v1960_v59 = vmax.f32 %v1864_v17, 0.0  ;;  %v1475_v25 = vmul.f32 %v2950_v5, %v997_v61 }
 0x136   : > { %2054 = vst [vmem:[%s2987_s27 + $0x178] sm:$0xff] %v1958_v15  ;;  %v1577_v23 = vadd.f32 %v2978_v21, %v1473_v18  ;;  %v1697_v27 = vmax.f32 %v1601_v22, 0.0  ;;  %v1578_v28 = vadd.f32 %v2952_v6, %v1474_v57 }
 0x137   : > { %2055 = vst [vmem:[%s2987_s27 + $0x180] sm:$0xff] %v1959_v20  ;;  %v1579_v31 = vadd.f32 %v2955_v9, %v1475_v25 }
 0x138   : > { %2056 = vst [vmem:[%s2987_s27 + $0x188] sm:$0xff] %v1960_v59  ;;  %v1673_v29 = vmax.f32 %v1577_v23, 0.0  ;;  %v1889_v32 = vadd.f32 %v1793_v24, %v1697_v27  ;;  %v1674_v33 = vmax.f32 %v1578_v28, 0.0  ;;  %v1799_v59 = vld [vmem:[%s2960_s17 + $0x280] sm:$0xff]  ;;  %v1776_v28 = vld [vmem:[%s2960_s17 + $0x1c8] sm:$0xff] }
 0x139   : > { %v1675_v36 = vmax.f32 %v1579_v31, 0.0  ;;  %v1106_v37 = vpop.f32.mrf.mxu3  ;;  %v1775_v24 = vld [vmem:[%s2960_s17 + $0x1c0] sm:$0xff] }
 0x13a   : > { %v1865_v35 = vadd.f32 %v1769_v26, %v1673_v29  ;;  %v1985_v38 = vmax.f32 %v1889_v32, 0.0  ;;  %v1866_v39 = vadd.f32 %v1770_v30, %v1674_v33  ;;  %v1500_v41 = vmul.f32 %v2975_v16, %v1106_v37  ;;  %v1777_v32 = vld [vmem:[%s2960_s17 + $0x1d0] sm:$0xff] }
 0x13b   : > { %v1086_v40 = vpop.f32.mrf.mxu2  ;;  %v1867_v43 = vadd.f32 %v1771_v34, %v1675_v36  ;;  %v911_v45 = vpop.f32.mrf.mxu0 }
 0x13c   : > { %v1961_v42 = vmax.f32 %v1865_v35, 0.0  ;;  %v1476_v44 = vmul.f32 %v2975_v16, %v1086_v40  ;;  %2081 = vst [vmem:[%s2987_s27 + $0x250] sm:$0xff] %v1985_v38  ;;  %v1962_v46 = vmax.f32 %v1866_v39, 0.0  ;;  %v1604_v47 = vadd.f32 %v2978_v21, %v1500_v41  ;;  %v1000_v49 = vpop.f32.mrf.mxu1 }
 0x13d   : > { %v1477_v48 = vmul.f32 %v2948_v4, %v911_v45  ;;  %v1963_v50 = vmax.f32 %v1867_v43, 0.0  ;;  %v1478_v53 = vmul.f32 %v2950_v5, %v1000_v49 }
 0x13e   : > { %2057 = vst [vmem:[%s2987_s27 + $0x190] sm:$0xff] %v1961_v42  ;;  %v1580_v51 = vadd.f32 %v2978_v21, %v1476_v44  ;;  %v1700_v55 = vmax.f32 %v1604_v47, 0.0 }
 0x13f   : > { %2058 = vst [vmem:[%s2987_s27 + $0x198] sm:$0xff] %v1962_v46  ;;  %v1581_v56 = vadd.f32 %v2952_v6, %v1477_v48  ;;  %v1582_v62 = vadd.f32 %v2955_v9, %v1478_v53 }
 0x140   : > { %2059 = vst [vmem:[%s2987_s27 + $0x1a0] sm:$0xff] %v1963_v50  ;;  %v1676_v58 = vmax.f32 %v1580_v51, 0.0  ;;  %v1892_v63 = vadd.f32 %v1796_v52, %v1700_v55  ;;  %v1802_v50 = vld [vmem:[%s2960_s17 + $0x298] sm:$0xff] }
 0x141   : > { %v1677_v0 = vmax.f32 %v1581_v56, 0.0  ;;  %v1678_v3 = vmax.f32 %v1582_v62, 0.0  ;;  %v1109_v7 = vpop.f32.mrf.mxu3  ;;  %v1778_v52 = vld [vmem:[%s2960_s17 + $0x1d8] sm:$0xff]  ;;  %v1779_v56 = vld [vmem:[%s2960_s17 + $0x1e0] sm:$0xff] }
 0x142   : > { %v1868_v2 = vadd.f32 %v1772_v54, %v1676_v58  ;;  %v1988_v8 = vmax.f32 %v1892_v63, 0.0  ;;  %v1503_v12 = vmul.f32 %v2975_v16, %v1109_v7  ;;  %v1780_v63 = vld [vmem:[%s2960_s17 + $0x1e8] sm:$0xff] }
 0x143   : > { %v1869_v10 = vadd.f32 %v1773_v60, %v1677_v0  ;;  %v1089_v11 = vpop.f32.mrf.mxu2  ;;  %v1870_v14 = vadd.f32 %v1774_v1, %v1678_v3  ;;  %v913_v17 = vpop.f32.mrf.mxu0 }
 0x144   : > { %v1964_v13 = vmax.f32 %v1868_v2, 0.0  ;;  %v1479_v15 = vmul.f32 %v2975_v16, %v1089_v11  ;;  %2084 = vst [vmem:[%s2987_s27 + $0x268] sm:$0xff] %v1988_v8  ;;  %v1607_v19 = vadd.f32 %v2978_v21, %v1503_v12  ;;  %v1480_v20 = vmul.f32 %v2948_v4, %v913_v17  ;;  %v1002_v22 = vpop.f32.mrf.mxu1 }
 0x145   : > { %v1965_v18 = vmax.f32 %v1869_v10, 0.0  ;;  %v1966_v57 = vmax.f32 %v1870_v14, 0.0  ;;  %v1481_v23 = vmul.f32 %v2950_v5, %v1002_v22 }
 0x146   : > { %2060 = vst [vmem:[%s2987_s27 + $0x1a8] sm:$0xff] %v1964_v13  ;;  %v1583_v61 = vadd.f32 %v2978_v21, %v1479_v15  ;;  %v1703_v25 = vmax.f32 %v1607_v19, 0.0  ;;  %v1584_v26 = vadd.f32 %v2952_v6, %v1480_v20 }
 0x147   : > { %2061 = vst [vmem:[%s2987_s27 + $0x1b0] sm:$0xff] %v1965_v18  ;;  %v1585_v29 = vadd.f32 %v2955_v9, %v1481_v23 }
 0x148   : > { %2062 = vst [vmem:[%s2987_s27 + $0x1b8] sm:$0xff] %v1966_v57  ;;  %v1679_v27 = vmax.f32 %v1583_v61, 0.0  ;;  %v1895_v30 = vadd.f32 %v1799_v59, %v1703_v25  ;;  %v1680_v31 = vmax.f32 %v1584_v26, 0.0  ;;  %v1805_v57 = vld [vmem:[%s2960_s17 + $0x2b0] sm:$0xff]  ;;  %v1782_v26 = vld [vmem:[%s2960_s17 + $0x1f8] sm:$0xff] }
 0x149   : > { %v1681_v34 = vmax.f32 %v1585_v29, 0.0  ;;  %v1111_v35 = vpop.f32.mrf.mxu3  ;;  %v1781_v59 = vld [vmem:[%s2960_s17 + $0x1f0] sm:$0xff] }
 0x14a   : > { %v1871_v33 = vadd.f32 %v1775_v24, %v1679_v27  ;;  %v1991_v36 = vmax.f32 %v1895_v30, 0.0  ;;  %v1872_v37 = vadd.f32 %v1776_v28, %v1680_v31  ;;  %v1506_v39 = vmul.f32 %v2975_v16, %v1111_v35  ;;  %v1783_v30 = vld [vmem:[%s2960_s17 + $0x200] sm:$0xff] }
 0x14b   : > { %v1091_v38 = vpop.f32.mrf.mxu2  ;;  %v1873_v41 = vadd.f32 %v1777_v32, %v1681_v34  ;;  %v916_v43 = vpop.f32.mrf.mxu0 }
 0x14c   : > { %v1967_v40 = vmax.f32 %v1871_v33, 0.0  ;;  %v1482_v42 = vmul.f32 %v2975_v16, %v1091_v38  ;;  %2087 = vst [vmem:[%s2987_s27 + $0x280] sm:$0xff] %v1991_v36  ;;  %v1968_v44 = vmax.f32 %v1872_v37, 0.0  ;;  %v1610_v45 = vadd.f32 %v2978_v21, %v1506_v39  ;;  %v1005_v47 = vpop.f32.mrf.mxu1 }
 0x14d   : > { %v1483_v46 = vmul.f32 %v2948_v4, %v916_v43  ;;  %v1969_v48 = vmax.f32 %v1873_v41, 0.0  ;;  %v1484_v51 = vmul.f32 %v2950_v5, %v1005_v47 }
 0x14e   : > { %2063 = vst [vmem:[%s2987_s27 + $0x1c0] sm:$0xff] %v1967_v40  ;;  %v1586_v49 = vadd.f32 %v2978_v21, %v1482_v42  ;;  %v1706_v53 = vmax.f32 %v1610_v45, 0.0 }
 0x14f   : > { %2064 = vst [vmem:[%s2987_s27 + $0x1c8] sm:$0xff] %v1968_v44  ;;  %v1587_v54 = vadd.f32 %v2952_v6, %v1483_v46  ;;  %v1588_v58 = vadd.f32 %v2955_v9, %v1484_v51 }
 0x150   : > { %2065 = vst [vmem:[%s2987_s27 + $0x1d0] sm:$0xff] %v1969_v48  ;;  %v1682_v55 = vmax.f32 %v1586_v49, 0.0  ;;  %v1898_v60 = vadd.f32 %v1802_v50, %v1706_v53  ;;  %v1808_v48 = vld [vmem:[%s2960_s17 + $0x2c8] sm:$0xff] }
 0x151   : > { %v1683_v62 = vmax.f32 %v1587_v54, 0.0  ;;  %v1684_v1 = vmax.f32 %v1588_v58, 0.0  ;;  %v1114_v2 = vpop.f32.mrf.mxu3  ;;  %v1784_v50 = vld [vmem:[%s2960_s17 + $0x208] sm:$0xff]  ;;  %v1785_v54 = vld [vmem:[%s2960_s17 + $0x210] sm:$0xff] }
 0x152   : > { %v1874_v0 = vadd.f32 %v1778_v52, %v1682_v55  ;;  %v1994_v3 = vmax.f32 %v1898_v60, 0.0  ;;  %v1509_v10 = vmul.f32 %v2975_v16, %v1114_v2  ;;  %v1786_v60 = vld [vmem:[%s2960_s17 + $0x218] sm:$0xff] }
 0x153   : > { %v1875_v7 = vadd.f32 %v1779_v56, %v1683_v62  ;;  %v1094_v8 = vpop.f32.mrf.mxu2  ;;  %v1876_v12 = vadd.f32 %v1780_v63, %v1684_v1  ;;  %v918_v14 = vpop.f32.mrf.mxu0 }
 0x154   : > { %v1970_v11 = vmax.f32 %v1874_v0, 0.0  ;;  %v1485_v13 = vmul.f32 %v2975_v16, %v1094_v8  ;;  %2090 = vst [vmem:[%s2987_s27 + $0x298] sm:$0xff] %v1994_v3  ;;  %v1613_v17 = vadd.f32 %v2978_v21, %v1509_v10  ;;  %v1486_v18 = vmul.f32 %v2948_v4, %v918_v14  ;;  %v1007_v19 = vpop.f32.mrf.mxu1 }
 0x155   : > { %v1971_v15 = vmax.f32 %v1875_v7, 0.0  ;;  %v1972_v20 = vmax.f32 %v1876_v12, 0.0  ;;  %v1487_v61 = vmul.f32 %v2950_v5, %v1007_v19 }
 0x156   : > { %2066 = vst [vmem:[%s2987_s27 + $0x1d8] sm:$0xff] %v1970_v11  ;;  %v1589_v22 = vadd.f32 %v2978_v21, %v1485_v13  ;;  %v1709_v23 = vmax.f32 %v1613_v17, 0.0  ;;  %v1590_v24 = vadd.f32 %v2952_v6, %v1486_v18 }
 0x157   : > { %2067 = vst [vmem:[%s2987_s27 + $0x1e0] sm:$0xff] %v1971_v15  ;;  %v1591_v27 = vadd.f32 %v2955_v9, %v1487_v61 }
 0x158   : > { %2068 = vst [vmem:[%s2987_s27 + $0x1e8] sm:$0xff] %v1972_v20  ;;  %v1685_v25 = vmax.f32 %v1589_v22, 0.0  ;;  %v1901_v28 = vadd.f32 %v1805_v57, %v1709_v23  ;;  %v1686_v29 = vmax.f32 %v1590_v24, 0.0  ;;  %v1811_v20 = vld [vmem:[%s2960_s17 + $0x2e0] sm:$0xff]  ;;  %v1788_v24 = vld [vmem:[%s2960_s17 + $0x228] sm:$0xff] }
 0x159   : > { %v1687_v32 = vmax.f32 %v1591_v27, 0.0  ;;  %v1116_v33 = vpop.f32.mrf.mxu3  ;;  %v1787_v57 = vld [vmem:[%s2960_s17 + $0x220] sm:$0xff]  ;;  %v1789_v27 = vld [vmem:[%s2960_s17 + $0x230] sm:$0xff] }
 0x15a   : > { %v1877_v31 = vadd.f32 %v1781_v59, %v1685_v25  ;;  %v1997_v34 = vmax.f32 %v1901_v28, 0.0  ;;  %v1878_v35 = vadd.f32 %v1782_v26, %v1686_v29  ;;  %v1512_v37 = vmul.f32 %v2975_v16, %v1116_v33 }
 0x15b   : > { %v1096_v36 = vpop.f32.mrf.mxu2  ;;  %v1879_v39 = vadd.f32 %v1783_v30, %v1687_v32  ;;  %v921_v41 = vpop.f32.mrf.mxu0 }
 0x15c   : > { %v1973_v38 = vmax.f32 %v1877_v31, 0.0  ;;  %v1488_v40 = vmul.f32 %v2975_v16, %v1096_v36  ;;  %2093 = vst [vmem:[%s2987_s27 + $0x2b0] sm:$0xff] %v1997_v34  ;;  %v1974_v42 = vmax.f32 %v1878_v35, 0.0  ;;  %v1616_v43 = vadd.f32 %v2978_v21, %v1512_v37  ;;  %v1010_v45 = vpop.f32.mrf.mxu1 }
 0x15d   : > { %v1489_v44 = vmul.f32 %v2948_v4, %v921_v41  ;;  %v1975_v46 = vmax.f32 %v1879_v39, 0.0  ;;  %v1490_v49 = vmul.f32 %v2950_v5, %v1010_v45  ;;  %v1814_v39 = vld [vmem:[%s2960_s17 + $0x2f8] sm:$0xff] }
 0x15e   : > { %2069 = vst [vmem:[%s2987_s27 + $0x1f0] sm:$0xff] %v1973_v38  ;;  %v1592_v47 = vadd.f32 %v2978_v21, %v1488_v40  ;;  %v1712_v51 = vmax.f32 %v1616_v43, 0.0  ;;  %v1790_v40 = vld [vmem:[%s2960_s17 + $0x238] sm:$0xff] }
 0x15f   : > { %2070 = vst [vmem:[%s2987_s27 + $0x1f8] sm:$0xff] %v1974_v42  ;;  %v1593_v52 = vadd.f32 %v2952_v6, %v1489_v44  ;;  %v1594_v55 = vadd.f32 %v2955_v9, %v1490_v49 }
 0x160   : > { %2071 = vst [vmem:[%s2987_s27 + $0x200] sm:$0xff] %v1975_v46  ;;  %v1688_v53 = vmax.f32 %v1592_v47, 0.0  ;;  %v1904_v56 = vadd.f32 %v1808_v48, %v1712_v51 }
 0x161   : > { %v1689_v58 = vmax.f32 %v1593_v52, 0.0  ;;  %v1690_v63 = vmax.f32 %v1594_v55, 0.0  ;;  %v1119_v0 = vpop.f32.mrf.mxu3 }
 0x162   : > { %v1880_v62 = vadd.f32 %v1784_v50, %v1688_v53  ;;  %v2000_v1 = vmax.f32 %v1904_v56, 0.0  ;;  %v1515_v7 = vmul.f32 %v2975_v16, %v1119_v0 }
 0x163   : > { %v1881_v2 = vadd.f32 %v1785_v54, %v1689_v58  ;;  %v1099_v3 = vpop.f32.mrf.mxu2  ;;  %v1882_v10 = vadd.f32 %v1786_v60, %v1690_v63  ;;  %v923_v12 = vpop.f32.mrf.mxu0 }
 0x164   : > { %v1976_v8 = vmax.f32 %v1880_v62, 0.0  ;;  %v1491_v11 = vmul.f32 %v2975_v16, %v1099_v3  ;;  %2096 = vst [vmem:[%s2987_s27 + $0x2c8] sm:$0xff] %v2000_v1  ;;  %v1619_v14 = vadd.f32 %v2978_v21, %v1515_v7  ;;  %v1492_v15 = vmul.f32 %v2948_v4, %v923_v12  ;;  %v1012_v17 = vpop.f32.mrf.mxu1 }
 0x165   : > { %v1977_v13 = vmax.f32 %v1881_v2, 0.0  ;;  %v1978_v18 = vmax.f32 %v1882_v10, 0.0  ;;  %v1493_v22 = vmul.f32 %v2950_v5, %v1012_v17 }
 0x166   : > { %2072 = vst [vmem:[%s2987_s27 + $0x208] sm:$0xff] %v1976_v8  ;;  %v1595_v19 = vadd.f32 %v2978_v21, %v1491_v11  ;;  %v1715_v61 = vmax.f32 %v1619_v14, 0.0  ;;  %v1596_v59 = vadd.f32 %v2952_v6, %v1492_v15 }
 0x167   : > { %2073 = vst [vmem:[%s2987_s27 + $0x210] sm:$0xff] %v1977_v13  ;;  %v1597_v4 = vadd.f32 %v2955_v9, %v1493_v22 }
 0x168   : > { %2074 = vst [vmem:[%s2987_s27 + $0x218] sm:$0xff] %v1978_v18  ;;  %v1691_v23 = vmax.f32 %v1595_v19, 0.0  ;;  %v1907_v25 = vadd.f32 %v1811_v20, %v1715_v61  ;;  %v1692_v26 = vmax.f32 %v1596_v59, 0.0 }
 0x169   : > { %v1693_v29 = vmax.f32 %v1597_v4, 0.0  ;;  %v1121_v5 = vpop.f32.mrf.mxu3 }
 0x16a   : > { %v1883_v28 = vadd.f32 %v1787_v57, %v1691_v23  ;;  %v2003_v30 = vmax.f32 %v1907_v25, 0.0  ;;  %v1884_v31 = vadd.f32 %v1788_v24, %v1692_v26  ;;  %v1518_v32 = vmul.f32 %v2975_v16, %v1121_v5 }
 0x16b   : > { %v1101_v6 = vpop.f32.mrf.mxu2  ;;  %v1885_v9 = vadd.f32 %v1789_v27, %v1693_v29 }
 0x16c   : > { %v1979_v33 = vmax.f32 %v1883_v28, 0.0  ;;  %v1494_v34 = vmul.f32 %v2975_v16, %v1101_v6  ;;  %2099 = vst [vmem:[%s2987_s27 + $0x2e0] sm:$0xff] %v2003_v30  ;;  %v1980_v35 = vmax.f32 %v1884_v31, 0.0  ;;  %v1622_v36 = vadd.f32 %v2978_v21, %v1518_v32 }
 0x16d   : > { %v1981_v37 = vmax.f32 %v1885_v9, 0.0 }
 0x16e   : > { %2075 = vst [vmem:[%s2987_s27 + $0x220] sm:$0xff] %v1979_v33  ;;  %v1598_v38 = vadd.f32 %v2978_v21, %v1494_v34  ;;  %v1718_v41 = vmax.f32 %v1622_v36, 0.0 }
 0x16f   : > { %2076 = vst [vmem:[%s2987_s27 + $0x228] sm:$0xff] %v1980_v35 }
 0x170   : > { %2077 = vst [vmem:[%s2987_s27 + $0x230] sm:$0xff] %v1981_v37  ;;  %v1694_v16 = vmax.f32 %v1598_v38, 0.0  ;;  %v1910_v42 = vadd.f32 %v1814_v39, %v1718_v41 }
 0x172   : > { %v1886_v43 = vadd.f32 %v1790_v40, %v1694_v16  ;;  %v2006_v44 = vmax.f32 %v1910_v42, 0.0 }
 0x174   : > { %v1982_v45 = vmax.f32 %v1886_v43, 0.0  ;;  %2102 = vst [vmem:[%s2987_s27 + $0x2f8] sm:$0xff] %v2006_v44 }
 0x176   : > { %2078 = vst [vmem:[%s2987_s27 + $0x238] sm:$0xff] %v1982_v45 }
 0x177   : > { %2604 = shalt.err (!%p2601_p5)
}
 0x178   : > { %s2657_s25 = smov 384   ;;  %s2658_s27 = smov 24  }
 0x179   : > { %2520 = dma.vmem_to_hbm [thread:$0]  (%p2729_p4), %s2120_s9, 12288, %s2122_s10, %s2104_s11, %s2657_s25, %s2657_s25, %s2658_s27  }
 0x17a PF: > { %p2526_p6 = scmp.ge.s32.totalorder %s2655_s23, 2  ;;  %s2136_s29 = sand.u32 1, %s2635_s18  }
 0x17b   : > { %s2137_s21 = scalar_lea.sflag [#allocation4], %s2136_s29 }
 0x17c   : > { %p2523_p7 = pnand %p2526_p6, %p2736_p8 }
 0x17e   : > { %p2524_p9 = pneg %p2523_p7 }
 0x180   : > { %2630 = dma.done.wait (%p2524_p9), %s2137_s21, 12288  }
 0x181   : > { %2632 = vsyncadd (%p2524_p9), %s2137_s21, 4294955008  ;;  %s18_s23 = sadd.s32 1, %s2655_s23   ;;  %s3425_s18 = smov %s2639_s19 }
 0x182   : > { %p15_p10 = scmp.ge.s32.totalorder %s18_s23, 4   ;;  %s3426_s19 = smov %s2643_s20 }
 0x183   : > { %s3427_s20 = smov %s2742_s6  ;;  %s3428_s21 = smov %s2651_s22 }
 0x184   : > { %s3429_s22 = smov %s3431_s26  ;;  %17 = sbr.rel (!%p15_p10) target bundleno = 4 (0x4), region = 95 }
 0x189   :  { %2143 = vsyncpa [#allocation4], 1 }
 0x18a   :  { %2145 = vsyncpa [#allocation4 + $0x1], 1 }

</bundles_post_ra>
